<compile_context>
chip_gen: v6e
topology: v6e:2x2x1
jax: 0.10.0
libtpu: 0.0.40
codegen_flags: <defaults>
</compile_context>

<pallas_src>
import numpy as np

import jax
import jax.numpy as jnp
from jax.experimental import pallas as pl
from jax.experimental.pallas import tpu as pltpu


# ----------------------------- Pallas kernels -----------------------------

def _make_features_kernel(bt):
    """conv1 + pool/relu + conv2 + pool/relu for BT images, fully in VMEM.

    Per-image layout (image b sits at row offset 24b / 15b in the flat slabs):
      y1[24b+oh, 10*ow + o]   = conv1 output     (valid oh,ow in 0..23, o<10)
      a1[24b+2ph, 20*pw + c]  = pool1+relu       (valid ph,pw in 0..11)
      y2[15b+2oh2, 20*ow2+o]  = conv2 output     (valid oh2,ow2 in 0..7)
      a2[15b+4qh, 40*qw + o]  = pool2+relu       (valid qh,qw in 0..3)
    Rows/lanes outside the valid pattern are finite junk that only ever hits
    zero rows of the downstream (host-repacked) weights.
    """
    R1 = bt * 24
    R2 = bt * 15

    def kernel(x_ref, w1_ref, b1_ref, w2_ref, b2_ref, o_ref):
        xs = [x_ref[b] for b in range(bt)]                      # bt x (28, 28)

        # ---- conv1: 5 banded matmuls (one per kernel row kh), batched M ----
        y1 = None
        for kh in range(5):
            if bt == 1:
                xk = xs[0][kh:kh + 24, :]
            else:
                xk = jnp.concatenate([x[kh:kh + 24, :] for x in xs], axis=0)
            t = jnp.dot(xk, w1_ref[kh], preferred_element_type=jnp.float32)
            y1 = t if y1 is None else y1 + t
        y1 = y1 + b1_ref[...]                                    # (bt*24, 256)

        # ---- 2x2 maxpool + ReLU (channel stride along lanes = 10) ----
        rm = jnp.maximum(y1[0:R1 - 1, :], y1[1:R1, :])           # row pairs
        lm = jnp.maximum(rm[:, 0:246], rm[:, 10:256])            # column pairs
        a1 = jnp.maximum(lm, 0.0)                                # (bt*24-1, 246)

        # ---- conv2: 5 banded matmuls over the pooled layout, batched M ----
        y2 = None
        for kh in range(5):
            if bt == 1:
                ak = a1[2 * kh:2 * kh + 15, :]
            else:
                ak = jnp.concatenate(
                    [a1[24 * b + 2 * kh:24 * b + 2 * kh + 15, :]
                     for b in range(bt)], axis=0)
            t = jnp.dot(ak, w2_ref[kh], preferred_element_type=jnp.float32)
            y2 = t if y2 is None else y2 + t
        y2 = y2 + b2_ref[...]                                    # (bt*15, 256)
        # TODO(synk): nn.Dropout2d sits here in the PyTorch module; identity in eval mode.

        # ---- 2x2 maxpool + ReLU (valid conv2 rows are the even ones) ----
        rm2 = jnp.maximum(y2[0:R2 - 2, :], y2[2:R2, :])
        lm2 = jnp.maximum(rm2[:, 0:236], rm2[:, 20:256])         # channel stride = 20
        a2 = jnp.maximum(lm2, 0.0)                               # (bt*15-2, 236)

        # Zero-filled, lane/sublane padded (bt, 16, 256) output block.
        o_ref[...] = jnp.zeros_like(o_ref)
        for b in range(bt):
            o_ref[b, 0:13, 0:236] = a2[15 * b:15 * b + 13, :]

    return kernel


def _head_kernel(f_ref, w1_ref, b1_ref, w2_ref, b2_ref, o_ref):
    """fc1 + ReLU + fc2 + log_softmax on a row tile; feature dims padded to 128.

    Pad-class masking is pre-folded into b2 (lanes 10..127 hold -1e30)."""
    h = jnp.dot(f_ref[...], w1_ref[...], preferred_element_type=jnp.float32)
    h = jnp.maximum(h + b1_ref[...], 0.0)                        # (TM, 128)
    logits = jnp.dot(h, w2_ref[...], preferred_element_type=jnp.float32)
    logits = logits + b2_ref[...]                                # (TM, 128)
    m = jnp.max(logits, axis=-1, keepdims=True)
    s = logits - m
    lse = jnp.log(jnp.sum(jnp.exp(s), axis=-1, keepdims=True))
    o_ref[...] = s - lse


# ------------------------------- wrappers ----------------------------------

def _features(x_img, p):
    N = x_img.shape[0]
    bt = 1
    for cand in (8, 4, 2):
        if N % cand == 0:
            bt = cand
            break
    return pl.pallas_call(
        _make_features_kernel(bt),
        out_shape=jax.ShapeDtypeStruct((N, 16, 256), jnp.float32),
        grid=(N // bt,),
        in_specs=[
            pl.BlockSpec((bt, 28, 28), lambda i: (i, 0, 0)),
            pl.BlockSpec((5, 28, 256), lambda i: (0, 0, 0)),
            pl.BlockSpec((1, 256), lambda i: (0, 0)),
            pl.BlockSpec((5, 246, 256), lambda i: (0, 0, 0)),
            pl.BlockSpec((1, 256), lambda i: (0, 0)),
        ],
        out_specs=pl.BlockSpec((bt, 16, 256), lambda i: (i, 0, 0)),
        compiler_params=pltpu.CompilerParams(
            dimension_semantics=("parallel",)),
    )(x_img, p["w1b"], p["b1b"], p["w2b"], p["b2b"])


def _head(feats, p):
    N = feats.shape[0]
    tm = N if N <= 128 else 128
    return pl.pallas_call(
        _head_kernel,
        out_shape=jax.ShapeDtypeStruct((N, 128), jnp.float32),
        grid=(pl.cdiv(N, tm),),
        in_specs=[
            pl.BlockSpec((tm, 4096), lambda i: (i, 0)),
            pl.BlockSpec((4096, 128), lambda i: (0, 0)),
            pl.BlockSpec((1, 128), lambda i: (0, 0)),
            pl.BlockSpec((128, 128), lambda i: (0, 0)),
            pl.BlockSpec((1, 128), lambda i: (0, 0)),
        ],
        out_specs=pl.BlockSpec((tm, 128), lambda i: (i, 0)),
        compiler_params=pltpu.CompilerParams(
            dimension_semantics=("parallel",)),
    )(feats, p["wf1"], p["bf1"], p["wf2"], p["bf2"])


def my_network_forward(x_nchw, p):
    N = x_nchw.shape[0]
    x = x_nchw.reshape(N, 28, 28)             # drop singleton channel (free)
    feats = _features(x, p)                   # (N, 16, 256)
    feats = feats.reshape(N, 16 * 256)        # contiguous -> free
    logp = _head(feats, p)                    # (N, 128)
    return logp[:, :10]


# ----------------------- host-side weight repacking ------------------------

def prepare_params(params):
    """One-time host repack of PyTorch-shaped weights into the banded /
    lane-padded layouts the fused kernels consume (runs outside jit)."""
    w1 = np.asarray(params["w1"], np.float32)      # (10, 1, 5, 5)
    b1 = np.asarray(params["b1"], np.float32)      # (10,)
    w2 = np.asarray(params["w2"], np.float32)      # (20, 10, 5, 5)
    b2 = np.asarray(params["b2"], np.float32)      # (20,)
    wf1 = np.asarray(params["w_fc1"], np.float32)  # (50, 320)
    bf1 = np.asarray(params["b_fc1"], np.float32)  # (50,)
    wf2 = np.asarray(params["w_fc2"], np.float32)  # (10, 50)
    bf2 = np.asarray(params["b_fc2"], np.float32)  # (10,)

    # conv1 banded weights: y1[oh, 10*ow + o] = sum_kh x[oh+kh, :] @ w1b[kh]
    w1b = np.zeros((5, 28, 256), np.float32)
    for kh in range(5):
        for kw in range(5):
            for ow in range(24):
                w1b[kh, ow + kw, 10 * ow:10 * ow + 10] = w1[:, 0, kh, kw]
    b1b = np.zeros((1, 256), np.float32)
    b1b[0, :240] = np.tile(b1, 24)

    # conv2 banded weights over the pooled layout a1[2*ih, 20*iw + c]
    w2b = np.zeros((5, 246, 256), np.float32)
    for kh in range(5):
        for kw in range(5):
            for ow2 in range(8):
                iw = ow2 + kw
                for c in range(10):
                    w2b[kh, 20 * iw + c, 20 * ow2:20 * ow2 + 20] = w2[:, c, kh, kw]
    b2b = np.zeros((1, 256), np.float32)
    b2b[0, :160] = np.tile(b2, 8)

    # fc1: pool2-layout compaction + PyTorch NCHW flatten permutation folded in.
    # feature flat index = row*256 + lane, valid at row = 4*qh, lane = 40*qw + o.
    wf1big = np.zeros((16 * 256, 128), np.float32)
    for o in range(20):
        for qh in range(4):
            for qw in range(4):
                wf1big[(4 * qh) * 256 + 40 * qw + o, :50] = \
                    wf1[:, o * 16 + qh * 4 + qw]
    bf1big = np.zeros((1, 128), np.float32)
    bf1big[0, :50] = bf1

    wf2big = np.zeros((128, 128), np.float32)
    wf2big[:50, :10] = wf2.T
    bf2big = np.full((1, 128), -1e30, np.float32)  # pad-class mask folded in
    bf2big[0, :10] = bf2

    out = dict(w1b=w1b, b1b=b1b, w2b=w2b, b2b=b2b,
               wf1=wf1big, bf1=bf1big, wf2=wf2big, bf2=bf2big)
    return {k: jnp.asarray(v) for k, v in out.items()}


# --------------------------- deterministic init ----------------------------

def init_params(key):
    ks = jax.random.split(key, 8)

    def u(k, shape, fan_in):
        bound = 1.0 / jnp.sqrt(jnp.float32(fan_in))
        return jax.random.uniform(k, shape, jnp.float32, -bound, bound)

    return {
        "w1": u(ks[0], (10, 1, 5, 5), 1 * 5 * 5),
        "b1": u(ks[1], (10,), 1 * 5 * 5),
        "w2": u(ks[2], (20, 10, 5, 5), 10 * 5 * 5),
        "b2": u(ks[3], (20,), 10 * 5 * 5),
        "w_fc1": u(ks[4], (50, 320), 320),
        "b_fc1": u(ks[5], (50,), 320),
        "w_fc2": u(ks[6], (10, 50), 50),
        "b_fc2": u(ks[7], (10,), 50),
    }


# --------------------------- pure-jnp reference -----------------------------

def reference_forward(x_nchw, params):
    """Golden reference matching the PyTorch module in eval mode."""
    def conv(x, w, b):                                   # x: (N, C, H, W)
        O, C, KH, KW = w.shape
        N, _, H, W = x.shape
        OH, OW = H - KH + 1, W - KW + 1
        cols = [x[:, :, kh:kh + OH, kw:kw + OW]
                for kh in range(KH) for kw in range(KW)]
        p = jnp.stack(cols, axis=2).reshape(N, C * KH * KW, OH, OW)
        y = jnp.einsum("nkhw,ok->nohw", p, w.reshape(O, C * KH * KW),
                       precision="highest")
        return y + b[None, :, None, None]

    def pool_relu(x):
        m = jnp.maximum(jnp.maximum(x[:, :, 0::2, 0::2], x[:, :, 1::2, 0::2]),
                        jnp.maximum(x[:, :, 0::2, 1::2], x[:, :, 1::2, 1::2]))
        return jnp.maximum(m, 0.0)

    h = pool_relu(conv(x_nchw, params["w1"], params["b1"]))
    h = pool_relu(conv(h, params["w2"], params["b2"]))
    h = h.reshape(h.shape[0], 320)
    h = jnp.maximum(jnp.dot(h, params["w_fc1"].T, precision="highest")
                    + params["b_fc1"], 0.0)
    logits = jnp.dot(h, params["w_fc2"].T, precision="highest") + params["b_fc2"]
    return jax.nn.log_softmax(logits, axis=-1)


# ----------------------------------- main -----------------------------------

if __name__ == "__main__":
    key = jax.random.PRNGKey(0)
    pkey, xkey = jax.random.split(key)
    params = init_params(pkey)
    # Input must be (N, 1, 28, 28) so the flatten yields 320 features.
    x = jax.random.normal(xkey, (2, 1, 28, 28), jnp.float32)

    prepped = prepare_params(params)            # one-time host repack
    fwd = jax.jit(my_network_forward)
    out = jax.block_until_ready(fwd(x, prepped))

    assert out.shape == (2, 10), out.shape
    assert jnp.allclose(jnp.exp(out).sum(axis=-1), 1.0, atol=1e-3)

    # Golden-output comparison against the pure-jnp reference.
    ref = jax.block_until_ready(jax.jit(reference_forward)(x, params))
    np.testing.assert_allclose(np.asarray(out), np.asarray(ref),
                               atol=5e-2, rtol=5e-2)

    print("KERNEL_OK")
</pallas_src>

<mosaic_0001>
module attributes {stable_mosaic.version = 11 : i64} {
  func.func @kernel(%arg0: i32, %arg1: memref<2x28x28xf32, #tpu.memory_space<vmem>>, %arg2: memref<5x28x256xf32, #tpu.memory_space<vmem>>, %arg3: memref<1x256xf32, #tpu.memory_space<vmem>>, %arg4: memref<5x246x256xf32, #tpu.memory_space<vmem>>, %arg5: memref<1x256xf32, #tpu.memory_space<vmem>>, %arg6: memref<2x16x256xf32, #tpu.memory_space<vmem>>) attributes {dimension_semantics = [#tpu.dimension_semantics<parallel>], iteration_bounds = array<i64: 1>, scalar_prefetch = 0 : i64, scratch_operands = 0 : i64, tpu.core_type = #tpu.core_type<tc>, window_params = [{transform_indices = @transform_0, window_bounds = array<i64: 2, 28, 28>}, {pipeline_mode = #tpu.pipeline_mode<synchronous>, transform_indices = @transform_1, window_bounds = array<i64: 5, 28, 256>}, {pipeline_mode = #tpu.pipeline_mode<synchronous>, transform_indices = @transform_2, window_bounds = array<i64: 1, 256>}, {pipeline_mode = #tpu.pipeline_mode<synchronous>, transform_indices = @transform_3, window_bounds = array<i64: 5, 246, 256>}, {pipeline_mode = #tpu.pipeline_mode<synchronous>, transform_indices = @transform_4, window_bounds = array<i64: 1, 256>}, {transform_indices = @transform_5, window_bounds = array<i64: 2, 16, 256>}]} {
    %c0 = arith.constant 0 : index
    %c0_0 = arith.constant 0 : index
    %c0_1 = arith.constant 0 : index
    %0 = vector.load %arg1[%c0, %c0_0, %c0_1] : memref<2x28x28xf32, #tpu.memory_space<vmem>>, vector<1x28x28xf32>
    %1 = vector.shape_cast %0 : vector<1x28x28xf32> to vector<28x28xf32>
    %c1 = arith.constant 1 : index
    %c0_2 = arith.constant 0 : index
    %c0_3 = arith.constant 0 : index
    %2 = vector.load %arg1[%c1, %c0_2, %c0_3] : memref<2x28x28xf32, #tpu.memory_space<vmem>>, vector<1x28x28xf32>
    %3 = vector.shape_cast %2 : vector<1x28x28xf32> to vector<28x28xf32>
    %4 = vector.extract_strided_slice %1 {offsets = [0, 0], sizes = [24, 28], strides = [1, 1]} : vector<28x28xf32> to vector<24x28xf32>
    %5 = vector.extract_strided_slice %3 {offsets = [0, 0], sizes = [24, 28], strides = [1, 1]} : vector<28x28xf32> to vector<24x28xf32>
    %6 = tpu.concatenate %4, %5 in 0 : vector<24x28xf32>, vector<24x28xf32> -> vector<48x28xf32>
    %c0_4 = arith.constant 0 : index
    %c0_5 = arith.constant 0 : index
    %c0_6 = arith.constant 0 : index
    %7 = vector.load %arg2[%c0_4, %c0_5, %c0_6] : memref<5x28x256xf32, #tpu.memory_space<vmem>>, vector<1x28x256xf32>
    %8 = vector.shape_cast %7 : vector<1x28x256xf32> to vector<28x256xf32>
    %cst = arith.constant dense<0.000000e+00> : vector<48x256xf32>
    %9 = tpu.matmul %6, %8, %cst {dimension_numbers = #tpu.dot_dimension_numbers<[1], [0], [0], [1], [0, 0, 1, 1], [], []>} : vector<48x28xf32>, vector<28x256xf32>, vector<48x256xf32> -> vector<48x256xf32>
    %10 = vector.extract_strided_slice %1 {offsets = [1, 0], sizes = [24, 28], strides = [1, 1]} : vector<28x28xf32> to vector<24x28xf32>
    %11 = vector.extract_strided_slice %3 {offsets = [1, 0], sizes = [24, 28], strides = [1, 1]} : vector<28x28xf32> to vector<24x28xf32>
    %12 = tpu.concatenate %10, %11 in 0 : vector<24x28xf32>, vector<24x28xf32> -> vector<48x28xf32>
    %c1_7 = arith.constant 1 : index
    %c0_8 = arith.constant 0 : index
    %c0_9 = arith.constant 0 : index
    %13 = vector.load %arg2[%c1_7, %c0_8, %c0_9] : memref<5x28x256xf32, #tpu.memory_space<vmem>>, vector<1x28x256xf32>
    %14 = vector.shape_cast %13 : vector<1x28x256xf32> to vector<28x256xf32>
    %cst_10 = arith.constant dense<0.000000e+00> : vector<48x256xf32>
    %15 = tpu.matmul %12, %14, %cst_10 {dimension_numbers = #tpu.dot_dimension_numbers<[1], [0], [0], [1], [0, 0, 1, 1], [], []>} : vector<48x28xf32>, vector<28x256xf32>, vector<48x256xf32> -> vector<48x256xf32>
    %16 = arith.addf %9, %15 : vector<48x256xf32>
    %17 = vector.extract_strided_slice %1 {offsets = [2, 0], sizes = [24, 28], strides = [1, 1]} : vector<28x28xf32> to vector<24x28xf32>
    %18 = vector.extract_strided_slice %3 {offsets = [2, 0], sizes = [24, 28], strides = [1, 1]} : vector<28x28xf32> to vector<24x28xf32>
    %19 = tpu.concatenate %17, %18 in 0 : vector<24x28xf32>, vector<24x28xf32> -> vector<48x28xf32>
    %c2 = arith.constant 2 : index
    %c0_11 = arith.constant 0 : index
    %c0_12 = arith.constant 0 : index
    %20 = vector.load %arg2[%c2, %c0_11, %c0_12] : memref<5x28x256xf32, #tpu.memory_space<vmem>>, vector<1x28x256xf32>
    %21 = vector.shape_cast %20 : vector<1x28x256xf32> to vector<28x256xf32>
    %cst_13 = arith.constant dense<0.000000e+00> : vector<48x256xf32>
    %22 = tpu.matmul %19, %21, %cst_13 {dimension_numbers = #tpu.dot_dimension_numbers<[1], [0], [0], [1], [0, 0, 1, 1], [], []>} : vector<48x28xf32>, vector<28x256xf32>, vector<48x256xf32> -> vector<48x256xf32>
    %23 = arith.addf %16, %22 : vector<48x256xf32>
    %24 = vector.extract_strided_slice %1 {offsets = [3, 0], sizes = [24, 28], strides = [1, 1]} : vector<28x28xf32> to vector<24x28xf32>
    %25 = vector.extract_strided_slice %3 {offsets = [3, 0], sizes = [24, 28], strides = [1, 1]} : vector<28x28xf32> to vector<24x28xf32>
    %26 = tpu.concatenate %24, %25 in 0 : vector<24x28xf32>, vector<24x28xf32> -> vector<48x28xf32>
    %c3 = arith.constant 3 : index
    %c0_14 = arith.constant 0 : index
    %c0_15 = arith.constant 0 : index
    %27 = vector.load %arg2[%c3, %c0_14, %c0_15] : memref<5x28x256xf32, #tpu.memory_space<vmem>>, vector<1x28x256xf32>
    %28 = vector.shape_cast %27 : vector<1x28x256xf32> to vector<28x256xf32>
    %cst_16 = arith.constant dense<0.000000e+00> : vector<48x256xf32>
    %29 = tpu.matmul %26, %28, %cst_16 {dimension_numbers = #tpu.dot_dimension_numbers<[1], [0], [0], [1], [0, 0, 1, 1], [], []>} : vector<48x28xf32>, vector<28x256xf32>, vector<48x256xf32> -> vector<48x256xf32>
    %30 = arith.addf %23, %29 : vector<48x256xf32>
    %31 = vector.extract_strided_slice %1 {offsets = [4, 0], sizes = [24, 28], strides = [1, 1]} : vector<28x28xf32> to vector<24x28xf32>
    %32 = vector.extract_strided_slice %3 {offsets = [4, 0], sizes = [24, 28], strides = [1, 1]} : vector<28x28xf32> to vector<24x28xf32>
    %33 = tpu.concatenate %31, %32 in 0 : vector<24x28xf32>, vector<24x28xf32> -> vector<48x28xf32>
    %c4 = arith.constant 4 : index
    %c0_17 = arith.constant 0 : index
    %c0_18 = arith.constant 0 : index
    %34 = vector.load %arg2[%c4, %c0_17, %c0_18] : memref<5x28x256xf32, #tpu.memory_space<vmem>>, vector<1x28x256xf32>
    %35 = vector.shape_cast %34 : vector<1x28x256xf32> to vector<28x256xf32>
    %cst_19 = arith.constant dense<0.000000e+00> : vector<48x256xf32>
    %36 = tpu.matmul %33, %35, %cst_19 {dimension_numbers = #tpu.dot_dimension_numbers<[1], [0], [0], [1], [0, 0, 1, 1], [], []>} : vector<48x28xf32>, vector<28x256xf32>, vector<48x256xf32> -> vector<48x256xf32>
    %37 = arith.addf %30, %36 : vector<48x256xf32>
    %c0_20 = arith.constant 0 : index
    %c0_21 = arith.constant 0 : index
    %38 = vector.load %arg3[%c0_20, %c0_21] : memref<1x256xf32, #tpu.memory_space<vmem>>, vector<1x256xf32>
    %39 = vector.broadcast %38 : vector<1x256xf32> to vector<48x256xf32>
    %40 = arith.addf %37, %39 : vector<48x256xf32>
    %41 = vector.extract_strided_slice %40 {offsets = [0, 0], sizes = [47, 256], strides = [1, 1]} : vector<48x256xf32> to vector<47x256xf32>
    %42 = vector.extract_strided_slice %40 {offsets = [1, 0], sizes = [47, 256], strides = [1, 1]} : vector<48x256xf32> to vector<47x256xf32>
    %43 = arith.maximumf %41, %42 : vector<47x256xf32>
    %44 = vector.extract_strided_slice %43 {offsets = [0, 0], sizes = [47, 246], strides = [1, 1]} : vector<47x256xf32> to vector<47x246xf32>
    %45 = vector.extract_strided_slice %43 {offsets = [0, 10], sizes = [47, 246], strides = [1, 1]} : vector<47x256xf32> to vector<47x246xf32>
    %46 = arith.maximumf %44, %45 : vector<47x246xf32>
    %cst_22 = arith.constant 0.000000e+00 : f32
    %47 = vector.broadcast %cst_22 : f32 to vector<47x246xf32>
    %48 = arith.maximumf %46, %47 : vector<47x246xf32>
    %49 = vector.extract_strided_slice %48 {offsets = [0, 0], sizes = [15, 246], strides = [1, 1]} : vector<47x246xf32> to vector<15x246xf32>
    %50 = vector.extract_strided_slice %48 {offsets = [24, 0], sizes = [15, 246], strides = [1, 1]} : vector<47x246xf32> to vector<15x246xf32>
    %51 = tpu.concatenate %49, %50 in 0 : vector<15x246xf32>, vector<15x246xf32> -> vector<30x246xf32>
    %c0_23 = arith.constant 0 : index
    %c0_24 = arith.constant 0 : index
    %c0_25 = arith.constant 0 : index
    %52 = vector.load %arg4[%c0_23, %c0_24, %c0_25] : memref<5x246x256xf32, #tpu.memory_space<vmem>>, vector<1x246x256xf32>
    %53 = vector.shape_cast %52 : vector<1x246x256xf32> to vector<246x256xf32>
    %cst_26 = arith.constant dense<0.000000e+00> : vector<30x256xf32>
    %54 = tpu.matmul %51, %53, %cst_26 {dimension_numbers = #tpu.dot_dimension_numbers<[1], [0], [0], [1], [0, 0, 1, 1], [], []>} : vector<30x246xf32>, vector<246x256xf32>, vector<30x256xf32> -> vector<30x256xf32>
    %55 = vector.extract_strided_slice %48 {offsets = [2, 0], sizes = [15, 246], strides = [1, 1]} : vector<47x246xf32> to vector<15x246xf32>
    %56 = vector.extract_strided_slice %48 {offsets = [26, 0], sizes = [15, 246], strides = [1, 1]} : vector<47x246xf32> to vector<15x246xf32>
    %57 = tpu.concatenate %55, %56 in 0 : vector<15x246xf32>, vector<15x246xf32> -> vector<30x246xf32>
    %c1_27 = arith.constant 1 : index
    %c0_28 = arith.constant 0 : index
    %c0_29 = arith.constant 0 : index
    %58 = vector.load %arg4[%c1_27, %c0_28, %c0_29] : memref<5x246x256xf32, #tpu.memory_space<vmem>>, vector<1x246x256xf32>
    %59 = vector.shape_cast %58 : vector<1x246x256xf32> to vector<246x256xf32>
    %cst_30 = arith.constant dense<0.000000e+00> : vector<30x256xf32>
    %60 = tpu.matmul %57, %59, %cst_30 {dimension_numbers = #tpu.dot_dimension_numbers<[1], [0], [0], [1], [0, 0, 1, 1], [], []>} : vector<30x246xf32>, vector<246x256xf32>, vector<30x256xf32> -> vector<30x256xf32>
    %61 = arith.addf %54, %60 : vector<30x256xf32>
    %62 = vector.extract_strided_slice %48 {offsets = [4, 0], sizes = [15, 246], strides = [1, 1]} : vector<47x246xf32> to vector<15x246xf32>
    %63 = vector.extract_strided_slice %48 {offsets = [28, 0], sizes = [15, 246], strides = [1, 1]} : vector<47x246xf32> to vector<15x246xf32>
    %64 = tpu.concatenate %62, %63 in 0 : vector<15x246xf32>, vector<15x246xf32> -> vector<30x246xf32>
    %c2_31 = arith.constant 2 : index
    %c0_32 = arith.constant 0 : index
    %c0_33 = arith.constant 0 : index
    %65 = vector.load %arg4[%c2_31, %c0_32, %c0_33] : memref<5x246x256xf32, #tpu.memory_space<vmem>>, vector<1x246x256xf32>
    %66 = vector.shape_cast %65 : vector<1x246x256xf32> to vector<246x256xf32>
    %cst_34 = arith.constant dense<0.000000e+00> : vector<30x256xf32>
    %67 = tpu.matmul %64, %66, %cst_34 {dimension_numbers = #tpu.dot_dimension_numbers<[1], [0], [0], [1], [0, 0, 1, 1], [], []>} : vector<30x246xf32>, vector<246x256xf32>, vector<30x256xf32> -> vector<30x256xf32>
    %68 = arith.addf %61, %67 : vector<30x256xf32>
    %69 = vector.extract_strided_slice %48 {offsets = [6, 0], sizes = [15, 246], strides = [1, 1]} : vector<47x246xf32> to vector<15x246xf32>
    %70 = vector.extract_strided_slice %48 {offsets = [30, 0], sizes = [15, 246], strides = [1, 1]} : vector<47x246xf32> to vector<15x246xf32>
    %71 = tpu.concatenate %69, %70 in 0 : vector<15x246xf32>, vector<15x246xf32> -> vector<30x246xf32>
    %c3_35 = arith.constant 3 : index
    %c0_36 = arith.constant 0 : index
    %c0_37 = arith.constant 0 : index
    %72 = vector.load %arg4[%c3_35, %c0_36, %c0_37] : memref<5x246x256xf32, #tpu.memory_space<vmem>>, vector<1x246x256xf32>
    %73 = vector.shape_cast %72 : vector<1x246x256xf32> to vector<246x256xf32>
    %cst_38 = arith.constant dense<0.000000e+00> : vector<30x256xf32>
    %74 = tpu.matmul %71, %73, %cst_38 {dimension_numbers = #tpu.dot_dimension_numbers<[1], [0], [0], [1], [0, 0, 1, 1], [], []>} : vector<30x246xf32>, vector<246x256xf32>, vector<30x256xf32> -> vector<30x256xf32>
    %75 = arith.addf %68, %74 : vector<30x256xf32>
    %76 = vector.extract_strided_slice %48 {offsets = [8, 0], sizes = [15, 246], strides = [1, 1]} : vector<47x246xf32> to vector<15x246xf32>
    %77 = vector.extract_strided_slice %48 {offsets = [32, 0], sizes = [15, 246], strides = [1, 1]} : vector<47x246xf32> to vector<15x246xf32>
    %78 = tpu.concatenate %76, %77 in 0 : vector<15x246xf32>, vector<15x246xf32> -> vector<30x246xf32>
    %c4_39 = arith.constant 4 : index
    %c0_40 = arith.constant 0 : index
    %c0_41 = arith.constant 0 : index
    %79 = vector.load %arg4[%c4_39, %c0_40, %c0_41] : memref<5x246x256xf32, #tpu.memory_space<vmem>>, vector<1x246x256xf32>
    %80 = vector.shape_cast %79 : vector<1x246x256xf32> to vector<246x256xf32>
    %cst_42 = arith.constant dense<0.000000e+00> : vector<30x256xf32>
    %81 = tpu.matmul %78, %80, %cst_42 {dimension_numbers = #tpu.dot_dimension_numbers<[1], [0], [0], [1], [0, 0, 1, 1], [], []>} : vector<30x246xf32>, vector<246x256xf32>, vector<30x256xf32> -> vector<30x256xf32>
    %82 = arith.addf %75, %81 : vector<30x256xf32>
    %c0_43 = arith.constant 0 : index
    %c0_44 = arith.constant 0 : index
    %83 = vector.load %arg5[%c0_43, %c0_44] : memref<1x256xf32, #tpu.memory_space<vmem>>, vector<1x256xf32>
    %84 = vector.broadcast %83 : vector<1x256xf32> to vector<30x256xf32>
    %85 = arith.addf %82, %84 : vector<30x256xf32>
    %86 = vector.extract_strided_slice %85 {offsets = [0, 0], sizes = [28, 256], strides = [1, 1]} : vector<30x256xf32> to vector<28x256xf32>
    %87 = vector.extract_strided_slice %85 {offsets = [2, 0], sizes = [28, 256], strides = [1, 1]} : vector<30x256xf32> to vector<28x256xf32>
    %88 = arith.maximumf %86, %87 : vector<28x256xf32>
    %89 = vector.extract_strided_slice %88 {offsets = [0, 0], sizes = [28, 236], strides = [1, 1]} : vector<28x256xf32> to vector<28x236xf32>
    %90 = vector.extract_strided_slice %88 {offsets = [0, 20], sizes = [28, 236], strides = [1, 1]} : vector<28x256xf32> to vector<28x236xf32>
    %91 = arith.maximumf %89, %90 : vector<28x236xf32>
    %cst_45 = arith.constant 0.000000e+00 : f32
    %92 = vector.broadcast %cst_45 : f32 to vector<28x236xf32>
    %93 = arith.maximumf %91, %92 : vector<28x236xf32>
    %cst_46 = arith.constant 0.000000e+00 : f32
    %94 = vector.broadcast %cst_46 : f32 to vector<2x16x256xf32>
    %c0_47 = arith.constant 0 : index
    %c0_48 = arith.constant 0 : index
    %c0_49 = arith.constant 0 : index
    %95 = vector.load %arg6[%c0_47, %c0_48, %c0_49] : memref<2x16x256xf32, #tpu.memory_space<vmem>>, vector<2x16x256xf32>
    tpu.vector_store %arg6[%c0_47, %c0_48, %c0_49], %94 {strides = array<i32>} : memref<2x16x256xf32, #tpu.memory_space<vmem>>, vector<2x16x256xf32>,
    %96 = vector.extract_strided_slice %93 {offsets = [0, 0], sizes = [13, 236], strides = [1, 1]} : vector<28x236xf32> to vector<13x236xf32>
    %c0_50 = arith.constant 0 : index
    %c0_51 = arith.constant 0 : index
    %c0_52 = arith.constant 0 : index
    %97 = vector.load %arg6[%c0_50, %c0_51, %c0_52] : memref<2x16x256xf32, #tpu.memory_space<vmem>>, vector<1x13x236xf32>
    %98 = vector.shape_cast %97 : vector<1x13x236xf32> to vector<13x236xf32>
    %99 = vector.shape_cast %96 : vector<13x236xf32> to vector<1x13x236xf32>
    tpu.vector_store %arg6[%c0_50, %c0_51, %c0_52], %99 {strides = array<i32>} : memref<2x16x256xf32, #tpu.memory_space<vmem>>, vector<1x13x236xf32>,
    %100 = vector.extract_strided_slice %93 {offsets = [15, 0], sizes = [13, 236], strides = [1, 1]} : vector<28x236xf32> to vector<13x236xf32>
    %c1_53 = arith.constant 1 : index
    %c0_54 = arith.constant 0 : index
    %c0_55 = arith.constant 0 : index
    %101 = vector.load %arg6[%c1_53, %c0_54, %c0_55] : memref<2x16x256xf32, #tpu.memory_space<vmem>>, vector<1x13x236xf32>
    %102 = vector.shape_cast %101 : vector<1x13x236xf32> to vector<13x236xf32>
    %103 = vector.shape_cast %100 : vector<13x236xf32> to vector<1x13x236xf32>
    tpu.vector_store %arg6[%c1_53, %c0_54, %c0_55], %103 {strides = array<i32>} : memref<2x16x256xf32, #tpu.memory_space<vmem>>, vector<1x13x236xf32>,
    return
  }
  func.func @transform_0(%arg0: i32) -> (i32, i32, i32) {
    %c0_i32 = arith.constant 0 : i32
    %c0_i32_0 = arith.constant 0 : i32
    %c0_i32_1 = arith.constant 0 : i32
    return %arg0, %c0_i32, %c0_i32_0 : i32, i32, i32
  }
  func.func @transform_1(%arg0: i32) -> (i32, i32, i32) {
    %c0_i32 = arith.constant 0 : i32
    %c0_i32_0 = arith.constant 0 : i32
    %c0_i32_1 = arith.constant 0 : i32
    %c0_i32_2 = arith.constant 0 : i32
    return %c0_i32, %c0_i32_0, %c0_i32_1 : i32, i32, i32
  }
  func.func @transform_2(%arg0: i32) -> (i32, i32) {
    %c0_i32 = arith.constant 0 : i32
    %c0_i32_0 = arith.constant 0 : i32
    %c0_i32_1 = arith.constant 0 : i32
    return %c0_i32, %c0_i32_0 : i32, i32
  }
  func.func @transform_3(%arg0: i32) -> (i32, i32, i32) {
    %c0_i32 = arith.constant 0 : i32
    %c0_i32_0 = arith.constant 0 : i32
    %c0_i32_1 = arith.constant 0 : i32
    %c0_i32_2 = arith.constant 0 : i32
    return %c0_i32, %c0_i32_0, %c0_i32_1 : i32, i32, i32
  }
  func.func @transform_4(%arg0: i32) -> (i32, i32) {
    %c0_i32 = arith.constant 0 : i32
    %c0_i32_0 = arith.constant 0 : i32
    %c0_i32_1 = arith.constant 0 : i32
    return %c0_i32, %c0_i32_0 : i32, i32
  }
  func.func @transform_5(%arg0: i32) -> (i32, i32, i32) {
    %c0_i32 = arith.constant 0 : i32
    %c0_i32_0 = arith.constant 0 : i32
    %c0_i32_1 = arith.constant 0 : i32
    return %arg0, %c0_i32, %c0_i32_0 : i32, i32, i32
  }
}

module attributes {stable_mosaic.version = 11 : i64} {
  func.func @_head_kernel(%arg0: i32, %arg1: memref<2x4096xf32, #tpu.memory_space<vmem>>, %arg2: memref<4096x128xf32, #tpu.memory_space<vmem>>, %arg3: memref<1x128xf32, #tpu.memory_space<vmem>>, %arg4: memref<128x128xf32, #tpu.memory_space<vmem>>, %arg5: memref<1x128xf32, #tpu.memory_space<vmem>>, %arg6: memref<2x128xf32, #tpu.memory_space<vmem>>) attributes {dimension_semantics = [#tpu.dimension_semantics<parallel>], iteration_bounds = array<i64: 1>, scalar_prefetch = 0 : i64, scratch_operands = 0 : i64, tpu.core_type = #tpu.core_type<tc>, window_params = [{transform_indices = @transform_0, window_bounds = array<i64: 2, 4096>}, {pipeline_mode = #tpu.pipeline_mode<synchronous>, transform_indices = @transform_1, window_bounds = array<i64: 4096, 128>}, {pipeline_mode = #tpu.pipeline_mode<synchronous>, transform_indices = @transform_2, window_bounds = array<i64: 1, 128>}, {pipeline_mode = #tpu.pipeline_mode<synchronous>, transform_indices = @transform_3, window_bounds = array<i64: 128, 128>}, {pipeline_mode = #tpu.pipeline_mode<synchronous>, transform_indices = @transform_4, window_bounds = array<i64: 1, 128>}, {transform_indices = @transform_5, window_bounds = array<i64: 2, 128>}]} {
    %c0 = arith.constant 0 : index
    %c0_0 = arith.constant 0 : index
    %0 = vector.load %arg1[%c0, %c0_0] : memref<2x4096xf32, #tpu.memory_space<vmem>>, vector<2x4096xf32>
    %c0_1 = arith.constant 0 : index
    %c0_2 = arith.constant 0 : index
    %1 = vector.load %arg2[%c0_1, %c0_2] : memref<4096x128xf32, #tpu.memory_space<vmem>>, vector<4096x128xf32>
    %cst = arith.constant dense<0.000000e+00> : vector<2x128xf32>
    %2 = tpu.matmul %0, %1, %cst {dimension_numbers = #tpu.dot_dimension_numbers<[1], [0], [0], [1], [0, 0, 1, 1], [], []>} : vector<2x4096xf32>, vector<4096x128xf32>, vector<2x128xf32> -> vector<2x128xf32>
    %c0_3 = arith.constant 0 : index
    %c0_4 = arith.constant 0 : index
    %3 = vector.load %arg3[%c0_3, %c0_4] : memref<1x128xf32, #tpu.memory_space<vmem>>, vector<1x128xf32>
    %4 = vector.broadcast %3 : vector<1x128xf32> to vector<2x128xf32>
    %5 = arith.addf %2, %4 : vector<2x128xf32>
    %cst_5 = arith.constant 0.000000e+00 : f32
    %6 = vector.broadcast %cst_5 : f32 to vector<2x128xf32>
    %7 = arith.maximumf %5, %6 : vector<2x128xf32>
    %c0_6 = arith.constant 0 : index
    %c0_7 = arith.constant 0 : index
    %8 = vector.load %arg4[%c0_6, %c0_7] : memref<128x128xf32, #tpu.memory_space<vmem>>, vector<128x128xf32>
    %cst_8 = arith.constant dense<0.000000e+00> : vector<2x128xf32>
    %9 = tpu.matmul %7, %8, %cst_8 {dimension_numbers = #tpu.dot_dimension_numbers<[1], [0], [0], [1], [0, 0, 1, 1], [], []>} : vector<2x128xf32>, vector<128x128xf32>, vector<2x128xf32> -> vector<2x128xf32>
    %c0_9 = arith.constant 0 : index
    %c0_10 = arith.constant 0 : index
    %10 = vector.load %arg5[%c0_9, %c0_10] : memref<1x128xf32, #tpu.memory_space<vmem>>, vector<1x128xf32>
    %11 = vector.broadcast %10 : vector<1x128xf32> to vector<2x128xf32>
    %12 = arith.addf %9, %11 : vector<2x128xf32>
    %cst_11 = arith.constant dense<0xFF800000> : vector<2xf32>
    %13 = vector.multi_reduction <maximumf>, %12, %cst_11 [1] : vector<2x128xf32> to vector<2xf32>
    %14 = vector.shape_cast %13 : vector<2xf32> to vector<2x1xf32>
    %15 = vector.broadcast %14 : vector<2x1xf32> to vector<2x128xf32>
    %16 = arith.subf %12, %15 : vector<2x128xf32>
    %17 = math.exp %16 : vector<2x128xf32>
    %cst_12 = arith.constant dense<0.000000e+00> : vector<2xf32>
    %18 = vector.multi_reduction <add>, %17, %cst_12 [1] : vector<2x128xf32> to vector<2xf32>
    %19 = vector.shape_cast %18 : vector<2xf32> to vector<2x1xf32>
    %20 = math.log %19 : vector<2x1xf32>
    %21 = vector.broadcast %20 : vector<2x1xf32> to vector<2x128xf32>
    %22 = arith.subf %16, %21 : vector<2x128xf32>
    %c0_13 = arith.constant 0 : index
    %c0_14 = arith.constant 0 : index
    %23 = vector.load %arg6[%c0_13, %c0_14] : memref<2x128xf32, #tpu.memory_space<vmem>>, vector<2x128xf32>
    tpu.vector_store %arg6[%c0_13, %c0_14], %22 {strides = array<i32>} : memref<2x128xf32, #tpu.memory_space<vmem>>, vector<2x128xf32>,
    return
  }
  func.func @transform_0(%arg0: i32) -> (i32, i32) {
    %c0_i32 = arith.constant 0 : i32
    %c0_i32_0 = arith.constant 0 : i32
    return %arg0, %c0_i32 : i32, i32
  }
  func.func @transform_1(%arg0: i32) -> (i32, i32) {
    %c0_i32 = arith.constant 0 : i32
    %c0_i32_0 = arith.constant 0 : i32
    %c0_i32_1 = arith.constant 0 : i32
    return %c0_i32, %c0_i32_0 : i32, i32
  }
  func.func @transform_2(%arg0: i32) -> (i32, i32) {
    %c0_i32 = arith.constant 0 : i32
    %c0_i32_0 = arith.constant 0 : i32
    %c0_i32_1 = arith.constant 0 : i32
    return %c0_i32, %c0_i32_0 : i32, i32
  }
  func.func @transform_3(%arg0: i32) -> (i32, i32) {
    %c0_i32 = arith.constant 0 : i32
    %c0_i32_0 = arith.constant 0 : i32
    %c0_i32_1 = arith.constant 0 : i32
    return %c0_i32, %c0_i32_0 : i32, i32
  }
  func.func @transform_4(%arg0: i32) -> (i32, i32) {
    %c0_i32 = arith.constant 0 : i32
    %c0_i32_0 = arith.constant 0 : i32
    %c0_i32_1 = arith.constant 0 : i32
    return %c0_i32, %c0_i32_0 : i32, i32
  }
  func.func @transform_5(%arg0: i32) -> (i32, i32) {
    %c0_i32 = arith.constant 0 : i32
    %c0_i32_0 = arith.constant 0 : i32
    return %arg0, %c0_i32 : i32, i32
  }
}

</mosaic_0001>

<bundles_post_ra>
// kernel: my_network_forward.3
= control target key start
LH: loop header
LB: loop body
LE: loop exit
PB: predicated region body
PF: predicated region fallthrough
CT: control target
= control target key end

     0   :  { %10 = vsyncpa [#allocation3], 0  ;;  %s2861_s0 = inlined_call_operand.vmem [shape: f32[2,4096], index: 0, kind: input, shape index: {}]   ;;  %s2862_s1 = inlined_call_operand.hbm [shape: f32[4096,128], index: 1, kind: input, shape index: {}]   ;;  %s2863_s2 = inlined_call_operand.hbm [shape: f32[1,128], index: 2, kind: input, shape index: {}]   ;;  %s2864_s3 = inlined_call_operand.hbm [shape: f32[128,128], index: 3, kind: input, shape index: {}]   ;;  %s2865_s4 = inlined_call_operand.hbm [shape: f32[1,128], index: 4, kind: input, shape index: {}]   ;;  %s2866_s5 = inlined_call_operand.hbm [shape: f32[2,128], index: 5, kind: output, shape index: {}]  }
   0x1   :  { %11 = vsyncpa [#allocation6], 0 }
   0x2   :  { %12 = vsyncpa [#allocation9], 0 }
   0x3   :  { %13 = vsyncpa [#allocation4], 0  ;;  %s2764_s18 = smov [#allocation5]   ;;  %s2765_s20 = smov [#allocation2]  }
   0x4   :  { %s34_s19 = sshll.u32 %s2764_s18, 4  ;;  %s21_s21 = sshll.u32 %s2765_s20, 4  ;;  %s35_s19 = int_to_ptr.vmem [resolvable:$true] %s34_s19  ;;  %s22_s21 = int_to_ptr.vmem [resolvable:$true] %s21_s21 }
   0x5   :  { %s2664_s22 = scalar_lea.vmem %s35_s19, 16  ;;  %s2668_s23 = scalar_lea.vmem %s35_s19, 32 }
   0x6   :  { %p2665_p0 = scmp.ne.s32.totalorder %s35_s19, %s2664_s22  ;;  %p2669_p1 = scmp.lt.s32.totalorder %s35_s19, %s35_s19 }
   0x7   :  { %p2670_p2 = scmp.lt.s32.totalorder %s2668_s23, %s2664_s22 }
   0x9   :  { %p2671_p3 = por %p2670_p2, %p2669_p1 }
   0xb   :  { %p2672_p4 = pnand %p2671_p3, %p2665_p0 }
   0xd   :  { %2675 = shalt.err (!%p2672_p4)
}
   0xe   :  { %37 = dma.hbm_to_vmem [thread:$0]  %s2863_s2, 16, %s35_s19, [#allocation6]  }
   0xf   :  { %s2684_s26 = scalar_lea.vmem %s22_s21, 65536  ;;  %p2689_p6 = scmp.lt.s32.totalorder %s22_s21, %s22_s21 }
  0x10   :  { %p2685_p5 = scmp.ne.s32.totalorder %s22_s21, %s2684_s26  ;;  %p2690_p7 = scmp.lt.s32.totalorder %s2684_s26, %s2684_s26 }
  0x12   :  { %p2691_p8 = por %p2690_p7, %p2689_p6 }
  0x14   :  { %p2692_p9 = pnand %p2691_p8, %p2685_p5 }
  0x16   :  { %2695 = shalt.err (!%p2692_p9)
}
  0x17   :  { %s2766_s27 = smov 128   ;;  %s2767_s28 = smov 8  }
  0x18   :  { %27 = dma.hbm_to_vmem [thread:$0]  %s2862_s1, 65536, %s22_s21, [#allocation3], %s2766_s27, %s2766_s27, %s2767_s28  }
  0x19   :  { %s2768_s6 = smov [#allocation7]   ;;  %s2769_s8 = smov [#allocation8]  }
  0x1a   :  { %s43_s7 = sshll.u32 %s2768_s6, 4  ;;  %s56_s9 = sshll.u32 %s2769_s8, 4  ;;  %s44_s7 = int_to_ptr.vmem [resolvable:$true] %s43_s7  ;;  %s57_s9 = int_to_ptr.vmem [resolvable:$true] %s56_s9 }
  0x1b   :  { %s2704_s2 = scalar_lea.vmem %s44_s7, 2048  ;;  %p2709_p11 = scmp.lt.s32.totalorder %s44_s7, %s44_s7 }
  0x1c   :  { %p2705_p10 = scmp.ne.s32.totalorder %s44_s7, %s2704_s2  ;;  %p2710_p12 = scmp.lt.s32.totalorder %s2704_s2, %s2704_s2 }
  0x1e   :  { %p2711_p13 = por %p2710_p12, %p2709_p11 }
  0x20   :  { %p2712_p0 = pnand %p2711_p13, %p2705_p10 }
  0x22   :  { %2715 = shalt.err (!%p2712_p0)
}
  0x23   :  { %49 = dma.hbm_to_vmem [thread:$0]  %s2864_s3, 2048, %s44_s7, [#allocation6], %s2766_s27, %s2766_s27, %s2767_s28  }
  0x24   :  { %s2724_s12 = scalar_lea.vmem %s57_s9, 16  ;;  %s2728_s1 = scalar_lea.vmem %s57_s9, 32 }
  0x25   :  { %p2725_p1 = scmp.ne.s32.totalorder %s57_s9, %s2724_s12  ;;  %p2729_p2 = scmp.lt.s32.totalorder %s57_s9, %s57_s9 }
  0x26   :  { %p2730_p3 = scmp.lt.s32.totalorder %s2728_s1, %s2724_s12 }
  0x28   :  { %p2731_p4 = por %p2730_p3, %p2729_p2 }
  0x2a   :  { %p2732_p5 = pnand %p2731_p4, %p2725_p1 }
  0x2c   :  { %2735 = shalt.err (!%p2732_p5)
}
  0x2d   :  { %59 = dma.hbm_to_vmem [thread:$0]  %s2865_s4, 16, %s57_s9, [#allocation9]  }
  0x2e   :  { %2756 = dma.done.wait [#allocation3], 65536  }
  0x2f   :  { %2757 = vsyncadd [#allocation3], 4294901760 }
  0x30   :  { %2758 = dma.done.wait [#allocation6], 2064  }
  0x31   :  { %2759 = vsyncadd [#allocation6], 4294965232 }
  0x32   :  { %2760 = dma.done.wait [#allocation9], 16  }
  0x33   :  { %2761 = vsyncadd [#allocation9], 4294967280  ;;  %v111_v0 = vld [vmem:[#allocation2 + $0xf8] sm:$0xff]  ;;  %v110_v4 = vld [vmem:[#allocation2 + $0xf0] sm:$0xff]  ;;  %v2770_v30 = vmov 1983009808   ;;  %v611_v32 = vlaneseq }
  0x34   :  { %v143_v1 = vld [vmem:[#allocation2 + $0x1f8] sm:$0xff]  ;;  %2022 = vmatprep.subr.mxu0 %v111_v0  ;;  %v142_v5 = vld [vmem:[#allocation2 + $0x1f0] sm:$0xff]  ;;  %v109_v8 = vld [vmem:[#allocation2 + $0xe8] sm:$0xff]  ;;  %v609_v31 = vunpack.c.l.s4 %v2770_v30  ;;  %vm2772_vm0 = vmmov 0   ;;  %vm1989_vm1 = vcmask 1041408  }
  0x35   :  { %v95_v2 = vld [vmem:[#allocation2 + $0x78] sm:$0xff]  ;;  %2057 = vmatprep.subr.mxu1 %v143_v1  ;;  %v94_v6 = vld [vmem:[#allocation2 + $0x70] sm:$0xff]  ;;  %v141_v9 = vld [vmem:[#allocation2 + $0x1e8] sm:$0xff]  ;;  %v612_v42 = vshrl.u32 %v611_v32, 7 }
  0x36   :  { %v127_v3 = vld [vmem:[#allocation2 + $0x178] sm:$0xff]  ;;  %2023 = vmatpush3.msra.mxu0 %v95_v2  ;;  %v126_v7 = vld [vmem:[#allocation2 + $0x170] sm:$0xff]  ;;  %v93_v10 = vld [vmem:[#allocation2 + $0x68] sm:$0xff]  ;;  %v610_v41 = vunpack.c.0.s8 %v609_v31 }
  0x37   :  { %2058 = vmatpush3.msra.mxu1 %v127_v3  ;;  %2024 = vmatprep.subr.mxu0 %v110_v4  ;;  %v125_v11 = vld [vmem:[#allocation2 + $0x168] sm:$0xff]  ;;  %v108_v12 = vld [vmem:[#allocation2 + $0xe0] sm:$0xff]  ;;  %v107_v16 = vld [vmem:[#allocation2 + $0xd8] sm:$0xff] }
  0x38   :  { %2059 = vmatprep.subr.mxu1 %v142_v5  ;;  %2025 = vmatpush3.msra.mxu0 %v94_v6  ;;  %v140_v13 = vld [vmem:[#allocation2 + $0x1e0] sm:$0xff]  ;;  %v139_v17 = vld [vmem:[#allocation2 + $0x1d8] sm:$0xff]  ;;  %v106_v20 = vld [vmem:[#allocation2 + $0xd0] sm:$0xff]  ;;  %v2816_v51 = vsub.s32 %v610_v41, %v612_v42 }
  0x39   :  { %2060 = vmatpush3.msra.mxu1 %v126_v7  ;;  %2026 = vmatprep.subr.mxu0 %v109_v8  ;;  %v92_v14 = vld [vmem:[#allocation2 + $0x60] sm:$0xff]  ;;  %v91_v18 = vld [vmem:[#allocation2 + $0x58] sm:$0xff]  ;;  %v138_v21 = vld [vmem:[#allocation2 + $0x1d0] sm:$0xff] }
  0x3a   :  { %2061 = vmatprep.subr.mxu1 %v141_v9  ;;  %v124_v15 = vld [vmem:[#allocation2 + $0x160] sm:$0xff]  ;;  %2027 = vmatpush3.msra.mxu0 %v93_v10  ;;  %v123_v19 = vld [vmem:[#allocation2 + $0x158] sm:$0xff]  ;;  %v90_v22 = vld [vmem:[#allocation2 + $0x50] sm:$0xff] }
  0x3b   :  { %2062 = vmatpush3.msra.mxu1 %v125_v11  ;;  %2028 = vmatprep.subr.mxu0 %v108_v12  ;;  %v122_v23 = vld [vmem:[#allocation2 + $0x150] sm:$0xff]  ;;  %v105_v24 = vld [vmem:[#allocation2 + $0xc8] sm:$0xff]  ;;  %v104_v28 = vld [vmem:[#allocation2 + $0xc0] sm:$0xff] }
  0x3c   :  { %2063 = vmatprep.subr.mxu1 %v140_v13  ;;  %2029 = vmatpush3.msra.mxu0 %v92_v14  ;;  %v137_v25 = vld [vmem:[#allocation2 + $0x1c8] sm:$0xff]  ;;  %v136_v29 = vld [vmem:[#allocation2 + $0x1c0] sm:$0xff]  ;;  %v103_v35 = vld [vmem:[#allocation2 + $0xb8] sm:$0xff] }
  0x3d   :  { %2064 = vmatpush3.msra.mxu1 %v124_v15  ;;  %2030 = vmatprep.subr.mxu0 %v107_v16  ;;  %v89_v26 = vld [vmem:[#allocation2 + $0x48] sm:$0xff]  ;;  %v88_v33 = vld [vmem:[#allocation2 + $0x40] sm:$0xff]  ;;  %v135_v36 = vld [vmem:[#allocation2 + $0x1b8] sm:$0xff] }
  0x3e   :  { %2065 = vmatprep.subr.mxu1 %v139_v17  ;;  %2031 = vmatpush3.msra.mxu0 %v91_v18  ;;  %v121_v27 = vld [vmem:[#allocation2 + $0x148] sm:$0xff]  ;;  %v120_v34 = vld [vmem:[#allocation2 + $0x140] sm:$0xff]  ;;  %v87_v37 = vld [vmem:[#allocation2 + $0x38] sm:$0xff] }
  0x3f   :  { %2066 = vmatpush3.msra.mxu1 %v123_v19  ;;  %2032 = vmatprep.subr.mxu0 %v106_v20  ;;  %v119_v38 = vld [vmem:[#allocation2 + $0x138] sm:$0xff]  ;;  %v102_v39 = vld [vmem:[#allocation2 + $0xb0] sm:$0xff]  ;;  %v101_v45 = vld [vmem:[#allocation2 + $0xa8] sm:$0xff] }
  0x40   :  { %2067 = vmatprep.subr.mxu1 %v138_v21  ;;  %2033 = vmatpush3.msra.mxu0 %v90_v22  ;;  %v134_v40 = vld [vmem:[#allocation2 + $0x1b0] sm:$0xff]  ;;  %v133_v46 = vld [vmem:[#allocation2 + $0x1a8] sm:$0xff]  ;;  %v100_v49 = vld [vmem:[#allocation2 + $0xa0] sm:$0xff] }
  0x41   :  { %2068 = vmatpush3.msra.mxu1 %v122_v23  ;;  %2034 = vmatprep.subr.mxu0 %v105_v24  ;;  %v86_v43 = vld [vmem:[#allocation2 + $0x30] sm:$0xff]  ;;  %v85_v47 = vld [vmem:[#allocation2 + $0x28] sm:$0xff]  ;;  %v132_v50 = vld [vmem:[#allocation2 + $0x1a0] sm:$0xff] }
  0x42   :  { %2069 = vmatprep.subr.mxu1 %v137_v25  ;;  %2035 = vmatpush3.msra.mxu0 %v89_v26  ;;  %v118_v44 = vld [vmem:[#allocation2 + $0x130] sm:$0xff]  ;;  %v117_v48 = vld [vmem:[#allocation2 + $0x128] sm:$0xff]  ;;  %v84_v52 = vld [vmem:[#allocation2 + $0x20] sm:$0xff] }
  0x43   :  { %2070 = vmatpush3.msra.mxu1 %v121_v27  ;;  %2036 = vmatprep.subr.mxu0 %v104_v28  ;;  %v116_v53 = vld [vmem:[#allocation2 + $0x120] sm:$0xff]  ;;  %v99_v55 = vld [vmem:[#allocation2 + $0x98] sm:$0xff]  ;;  %v98_v60 = vld [vmem:[#allocation2 + $0x90] sm:$0xff] }
  0x44   :  { %2071 = vmatprep.subr.mxu1 %v136_v29  ;;  %2037 = vmatpush3.msra.mxu0 %v88_v33  ;;  %v72_v54 = vld [vmem:[%s2861_s0] sm:$0xff]  ;;  %v131_v56 = vld [vmem:[#allocation2 + $0x198] sm:$0xff]  ;;  %v130_v61 = vld [vmem:[#allocation2 + $0x190] sm:$0xff] }
  0x45   :  { %2072 = vmatpush3.msra.mxu1 %v120_v34  ;;  %2038 = vmatprep.subr.mxu0 %v103_v35  ;;  %v607_v57 = vcombine.high %v72_v54, %v72_v54  ;;  %v83_v58 = vld [vmem:[#allocation2 + $0x18] sm:$0xff]  ;;  %v614_v62 = vrot.slane %v72_v54, %v2816_v51  ;;  %v82_v63 = vld [vmem:[#allocation2 + $0x10] sm:$0xff]  ;;  %v97_v1 = vld [vmem:[#allocation2 + $0x88] sm:$0xff] }
  0x46   :  { %2073 = vmatprep.subr.mxu1 %v135_v36  ;;  %2039 = vmatpush3.msra.mxu0 %v87_v37  ;;  %v115_v59 = vld [vmem:[#allocation2 + $0x118] sm:$0xff]  ;;  %v114_v0 = vld [vmem:[#allocation2 + $0x110] sm:$0xff]  ;;  %v129_v2 = vld [vmem:[#allocation2 + $0x188] sm:$0xff] }
  0x47   :  { %2074 = vmatpush3.msra.mxu1 %v119_v38  ;;  %2040 = vmatprep.subr.mxu0 %v102_v39  ;;  %v621_v3 = vrot.slane %v607_v57, %v2816_v51  ;;  %v81_v4 = vld [vmem:[#allocation2 + $0x8] sm:$0xff]  ;;  %v96_v6 = vld [vmem:[#allocation2 + $0x80] sm:$0xff]  ;;  %v622_v8 = vcombine.high %v614_v62, %v614_v62  ;;  %v175_v12 = vld [vmem:[#allocation2 + $0x2f8] sm:$0xff] }
  0x48   :  { %2075 = vmatprep.subr.mxu1 %v134_v40  ;;  %2041 = vmatpush3.msra.mxu0 %v86_v43  ;;  %v113_v5 = vld [vmem:[#allocation2 + $0x108] sm:$0xff]  ;;  %v128_v7 = vld [vmem:[#allocation2 + $0x180] sm:$0xff]  ;;  %v207_v13 = vld [vmem:[#allocation2 + $0x3f8] sm:$0xff] }
  0x49   :  { %2076 = vmatpush3.msra.mxu1 %v118_v44  ;;  %2042 = vmatprep.subr.mxu0 %v101_v45  ;;  %v80_v9 = vld [vmem:[#allocation2] sm:$0xff]  ;;  %v623_v11 = vcombine.high %v621_v3, %v621_v3  ;;  %v159_v14 = vld [vmem:[#allocation2 + $0x278] sm:$0xff]  ;;  %v174_v16 = vld [vmem:[#allocation2 + $0x2f0] sm:$0xff] }
  0x4a   :  { %2077 = vmatprep.subr.mxu1 %v133_v46  ;;  %2043 = vmatpush3.msra.mxu0 %v85_v47  ;;  %v112_v10 = vld [vmem:[#allocation2 + $0x100] sm:$0xff]  ;;  %v191_v15 = vld [vmem:[#allocation2 + $0x378] sm:$0xff]  ;;  %v206_v17 = vld [vmem:[#allocation2 + $0x3f0] sm:$0xff] }
  0x4b   :  { %2078 = vmatpush3.msra.mxu1 %v117_v48  ;;  %2044 = vmatprep.subr.mxu0 %v100_v49  ;;  %v158_v18 = vld [vmem:[#allocation2 + $0x270] sm:$0xff]  ;;  %v173_v20 = vld [vmem:[#allocation2 + $0x2e8] sm:$0xff]  ;;  %v172_v24 = vld [vmem:[#allocation2 + $0x2e0] sm:$0xff] }
  0x4c   :  { %2079 = vmatprep.subr.mxu1 %v132_v50  ;;  %2045 = vmatpush3.msra.mxu0 %v84_v52  ;;  %v190_v19 = vld [vmem:[#allocation2 + $0x370] sm:$0xff]  ;;  %v205_v21 = vld [vmem:[#allocation2 + $0x3e8] sm:$0xff]  ;;  %v204_v25 = vld [vmem:[#allocation2 + $0x3e0] sm:$0xff] }
  0x4d   :  { %2080 = vmatpush3.msra.mxu1 %v116_v53  ;;  %2046 = vmatprep.subr.mxu0 %v99_v55  ;;  %v157_v22 = vld [vmem:[#allocation2 + $0x268] sm:$0xff]  ;;  %v156_v26 = vld [vmem:[#allocation2 + $0x260] sm:$0xff]  ;;  %v171_v28 = vld [vmem:[#allocation2 + $0x2d8] sm:$0xff] }
  0x4e   :  { %2081 = vmatprep.subr.mxu1 %v131_v56  ;;  %2047 = vmatpush3.msra.mxu0 %v83_v58  ;;  %v189_v23 = vld [vmem:[#allocation2 + $0x368] sm:$0xff]  ;;  %v188_v27 = vld [vmem:[#allocation2 + $0x360] sm:$0xff]  ;;  %v203_v29 = vld [vmem:[#allocation2 + $0x3d8] sm:$0xff] }
  0x4f   :  { %2082 = vmatpush3.msra.mxu1 %v115_v59  ;;  %2048 = vmatprep.subr.mxu0 %v98_v60  ;;  %v155_v30 = vld [vmem:[#allocation2 + $0x258] sm:$0xff]  ;;  %v170_v32 = vld [vmem:[#allocation2 + $0x2d0] sm:$0xff]  ;;  %v169_v36 = vld [vmem:[#allocation2 + $0x2c8] sm:$0xff] }
  0x50   :  { %2083 = vmatprep.subr.mxu1 %v130_v61  ;;  %2049 = vmatpush3.msra.mxu0 %v82_v63  ;;  %v187_v31 = vld [vmem:[#allocation2 + $0x358] sm:$0xff]  ;;  %v202_v33 = vld [vmem:[#allocation2 + $0x3d0] sm:$0xff]  ;;  %v201_v37 = vld [vmem:[#allocation2 + $0x3c8] sm:$0xff] }
  0x51   :  { %2084 = vmatpush3.msra.mxu1 %v114_v0  ;;  %2050 = vmatprep.subr.mxu0 %v97_v1  ;;  %v154_v34 = vld [vmem:[#allocation2 + $0x250] sm:$0xff]  ;;  %v153_v38 = vld [vmem:[#allocation2 + $0x248] sm:$0xff]  ;;  %v168_v40 = vld [vmem:[#allocation2 + $0x2c0] sm:$0xff] }
  0x52   :  { %2085 = vmatprep.subr.mxu1 %v129_v2  ;;  %2051 = vmatpush3.msra.mxu0 %v81_v4  ;;  %v186_v35 = vld [vmem:[#allocation2 + $0x350] sm:$0xff]  ;;  %v185_v39 = vld [vmem:[#allocation2 + $0x348] sm:$0xff]  ;;  %v200_v41 = vld [vmem:[#allocation2 + $0x3c0] sm:$0xff] }
  0x53   :  { %2086 = vmatpush3.msra.mxu1 %v113_v5  ;;  %2052 = vmatprep.subr.mxu0 %v96_v6  ;;  %v152_v42 = vld [vmem:[#allocation2 + $0x240] sm:$0xff]  ;;  %v167_v44 = vld [vmem:[#allocation2 + $0x2b8] sm:$0xff]  ;;  %v166_v48 = vld [vmem:[#allocation2 + $0x2b0] sm:$0xff] }
  0x54   :  { %2087 = vmatprep.subr.mxu1 %v128_v7  ;;  %2053 = vmatpush3.msra.mxu0 %v80_v9  ;;  %v184_v43 = vld [vmem:[#allocation2 + $0x340] sm:$0xff]  ;;  %v199_v45 = vld [vmem:[#allocation2 + $0x3b8] sm:$0xff]  ;;  %v198_v49 = vld [vmem:[#allocation2 + $0x3b0] sm:$0xff] }
  0x55   :  { %839 = vmatprep.mubr.f32.mxu0 %v622_v8  ;;  %2088 = vmatpush3.msra.mxu1 %v112_v10  ;;  %v151_v46 = vld [vmem:[#allocation2 + $0x238] sm:$0xff]  ;;  %v150_v50 = vld [vmem:[#allocation2 + $0x230] sm:$0xff]  ;;  %v165_v53 = vld [vmem:[#allocation2 + $0x2a8] sm:$0xff] }
  0x56   :  { %840 = vmatmul.mubr.f32.vlgmr.msra.gmra.mxu0 %v614_v62  ;;  %909 = vmatprep.mubr.f32.mxu1 %v623_v11  ;;  %v183_v47 = vld [vmem:[#allocation2 + $0x338] sm:$0xff]  ;;  %v182_v52 = vld [vmem:[#allocation2 + $0x330] sm:$0xff]  ;;  %v197_v54 = vld [vmem:[#allocation2 + $0x3a8] sm:$0xff] }
  0x57   :  { %2092 = vmatprep.subr.mxu0 %v175_v12  ;;  %2127 = vmatprep.subr.mxu1 %v207_v13  ;;  %v149_v55 = vld [vmem:[#allocation2 + $0x228] sm:$0xff]  ;;  %v164_v58 = vld [vmem:[#allocation2 + $0x2a0] sm:$0xff]  ;;  %v163_v62 = vld [vmem:[#allocation2 + $0x298] sm:$0xff] }
  0x58   :  { %910 = vmatmul.mubr.f32.vlgmr.msra.gmra.mxu1 %v621_v3  ;;  %2093 = vmatpush3.msra.mxu0 %v159_v14  ;;  %v181_v56 = vld [vmem:[#allocation2 + $0x328] sm:$0xff]  ;;  %v196_v59 = vld [vmem:[#allocation2 + $0x3a0] sm:$0xff]  ;;  %v195_v63 = vld [vmem:[#allocation2 + $0x398] sm:$0xff] }
  0x59   :  { %2128 = vmatpush3.msra.mxu1 %v191_v15  ;;  %2094 = vmatprep.subr.mxu0 %v174_v16  ;;  %v73_v57 = vld [vmem:[%s2861_s0 + $0x8] sm:$0xff]  ;;  %v148_v60 = vld [vmem:[#allocation2 + $0x220] sm:$0xff]  ;;  %v147_v1 = vld [vmem:[#allocation2 + $0x218] sm:$0xff] }
  0x5a   :  { %2129 = vmatprep.subr.mxu1 %v206_v17  ;;  %2095 = vmatpush3.msra.mxu0 %v158_v18  ;;  %v180_v61 = vld [vmem:[#allocation2 + $0x320] sm:$0xff]  ;;  %v624_v0 = vcombine.high %v73_v57, %v73_v57  ;;  %v179_v2 = vld [vmem:[#allocation2 + $0x318] sm:$0xff]  ;;  %v162_v3 = vld [vmem:[#allocation2 + $0x290] sm:$0xff]  ;;  %v631_v5 = vrot.slane %v73_v57, %v2816_v51 }
  0x5b   :  { %2130 = vmatpush3.msra.mxu1 %v190_v19  ;;  %2096 = vmatprep.subr.mxu0 %v173_v20  ;;  %v194_v4 = vld [vmem:[#allocation2 + $0x390] sm:$0xff]  ;;  %v161_v8 = vld [vmem:[#allocation2 + $0x288] sm:$0xff]  ;;  %v160_v13 = vld [vmem:[#allocation2 + $0x280] sm:$0xff] }
  0x5c   :  { %2131 = vmatprep.subr.mxu1 %v205_v21  ;;  %2097 = vmatpush3.msra.mxu0 %v157_v22  ;;  %v146_v6 = vld [vmem:[#allocation2 + $0x210] sm:$0xff]  ;;  %v193_v9 = vld [vmem:[#allocation2 + $0x388] sm:$0xff]  ;;  %v638_v10 = vrot.slane %v624_v0, %v2816_v51  ;;  %v192_v14 = vld [vmem:[#allocation2 + $0x380] sm:$0xff]  ;;  %v639_v15 = vcombine.high %v631_v5, %v631_v5 }
  0x5d   :  { %2132 = vmatpush3.msra.mxu1 %v189_v23  ;;  %2098 = vmatprep.subr.mxu0 %v172_v24  ;;  %v178_v7 = vld [vmem:[#allocation2 + $0x310] sm:$0xff]  ;;  %v145_v11 = vld [vmem:[#allocation2 + $0x208] sm:$0xff]  ;;  %v144_v16 = vld [vmem:[#allocation2 + $0x200] sm:$0xff] }
  0x5e   :  { %2133 = vmatprep.subr.mxu1 %v204_v25  ;;  %2099 = vmatpush3.msra.mxu0 %v156_v26  ;;  %v177_v12 = vld [vmem:[#allocation2 + $0x308] sm:$0xff]  ;;  %v176_v17 = vld [vmem:[#allocation2 + $0x300] sm:$0xff]  ;;  %v640_v18 = vcombine.high %v638_v10, %v638_v10  ;;  %v239_v19 = vld [vmem:[#allocation2 + $0x4f8] sm:$0xff] }
  0x5f   :  { %2134 = vmatpush3.msra.mxu1 %v188_v27  ;;  %2100 = vmatprep.subr.mxu0 %v171_v28  ;;  %v271_v20 = vld [vmem:[#allocation2 + $0x5f8] sm:$0xff]  ;;  %v238_v23 = vld [vmem:[#allocation2 + $0x4f0] sm:$0xff]  ;;  %v237_v27 = vld [vmem:[#allocation2 + $0x4e8] sm:$0xff] }
  0x60   :  { %2135 = vmatprep.subr.mxu1 %v203_v29  ;;  %2101 = vmatpush3.msra.mxu0 %v155_v30  ;;  %v223_v21 = vld [vmem:[#allocation2 + $0x478] sm:$0xff]  ;;  %v270_v24 = vld [vmem:[#allocation2 + $0x5f0] sm:$0xff]  ;;  %v269_v28 = vld [vmem:[#allocation2 + $0x5e8] sm:$0xff] }
  0x61   :  { %2136 = vmatpush3.msra.mxu1 %v187_v31  ;;  %2102 = vmatprep.subr.mxu0 %v170_v32  ;;  %v255_v22 = vld [vmem:[#allocation2 + $0x578] sm:$0xff]  ;;  %v222_v25 = vld [vmem:[#allocation2 + $0x470] sm:$0xff]  ;;  %v221_v29 = vld [vmem:[#allocation2 + $0x468] sm:$0xff] }
  0x62   :  { %2137 = vmatprep.subr.mxu1 %v202_v33  ;;  %2103 = vmatpush3.msra.mxu0 %v154_v34  ;;  %v254_v26 = vld [vmem:[#allocation2 + $0x570] sm:$0xff]  ;;  %v253_v30 = vld [vmem:[#allocation2 + $0x568] sm:$0xff]  ;;  %v236_v31 = vld [vmem:[#allocation2 + $0x4e0] sm:$0xff] }
  0x63   :  { %2138 = vmatpush3.msra.mxu1 %v186_v35  ;;  %2104 = vmatprep.subr.mxu0 %v169_v36  ;;  %v268_v32 = vld [vmem:[#allocation2 + $0x5e0] sm:$0xff]  ;;  %v235_v35 = vld [vmem:[#allocation2 + $0x4d8] sm:$0xff]  ;;  %v262_v57 = vld [vmem:[#allocation2 + $0x5b0] sm:$0xff] }
  0x64   :  { %2139 = vmatprep.subr.mxu1 %v201_v37  ;;  %2105 = vmatpush3.msra.mxu0 %v153_v38  ;;  %v220_v33 = vld [vmem:[#allocation2 + $0x460] sm:$0xff]  ;;  %v267_v36 = vld [vmem:[#allocation2 + $0x5d8] sm:$0xff]  ;;  %v74_v0 = vld [vmem:[%s2861_s0 + $0x10] sm:$0xff] }
  0x65   :  { %2140 = vmatpush3.msra.mxu1 %v185_v39  ;;  %2106 = vmatprep.subr.mxu0 %v168_v40  ;;  %v252_v34 = vld [vmem:[#allocation2 + $0x560] sm:$0xff]  ;;  %v219_v37 = vld [vmem:[#allocation2 + $0x458] sm:$0xff]  ;;  %v234_v39 = vld [vmem:[#allocation2 + $0x4d0] sm:$0xff] }
  0x66   :  { %2141 = vmatprep.subr.mxu1 %v200_v41  ;;  %2107 = vmatpush3.msra.mxu0 %v152_v42  ;;  %v251_v38 = vld [vmem:[#allocation2 + $0x558] sm:$0xff]  ;;  %v266_v40 = vld [vmem:[#allocation2 + $0x5d0] sm:$0xff] }
  0x67   :  { %2142 = vmatpush3.msra.mxu1 %v184_v43  ;;  %2108 = vmatprep.subr.mxu0 %v167_v44  ;;  %v218_v41 = vld [vmem:[#allocation2 + $0x450] sm:$0xff]  ;;  %v233_v43 = vld [vmem:[#allocation2 + $0x4c8] sm:$0xff] }
  0x68   :  { %2143 = vmatprep.subr.mxu1 %v199_v45  ;;  %2109 = vmatpush3.msra.mxu0 %v151_v46  ;;  %v250_v42 = vld [vmem:[#allocation2 + $0x550] sm:$0xff]  ;;  %v265_v44 = vld [vmem:[#allocation2 + $0x5c8] sm:$0xff] }
  0x69   :  { %2144 = vmatpush3.msra.mxu1 %v183_v47  ;;  %2110 = vmatprep.subr.mxu0 %v166_v48  ;;  %v217_v45 = vld [vmem:[#allocation2 + $0x448] sm:$0xff]  ;;  %v232_v47 = vld [vmem:[#allocation2 + $0x4c0] sm:$0xff] }
  0x6a   :  { %2145 = vmatprep.subr.mxu1 %v198_v49  ;;  %2111 = vmatpush3.msra.mxu0 %v150_v50  ;;  %v249_v46 = vld [vmem:[#allocation2 + $0x548] sm:$0xff]  ;;  %v264_v48 = vld [vmem:[#allocation2 + $0x5c0] sm:$0xff] }
  0x6b   :  { %2146 = vmatpush3.msra.mxu1 %v182_v52  ;;  %2112 = vmatprep.subr.mxu0 %v165_v53  ;;  %v216_v49 = vld [vmem:[#allocation2 + $0x440] sm:$0xff]  ;;  %v231_v52 = vld [vmem:[#allocation2 + $0x4b8] sm:$0xff] }
  0x6c   :  { %2147 = vmatprep.subr.mxu1 %v197_v54  ;;  %2113 = vmatpush3.msra.mxu0 %v149_v55  ;;  %v248_v50 = vld [vmem:[#allocation2 + $0x540] sm:$0xff]  ;;  %v263_v53 = vld [vmem:[#allocation2 + $0x5b8] sm:$0xff] }
  0x6d   :  { %2148 = vmatpush3.msra.mxu1 %v181_v56  ;;  %2114 = vmatprep.subr.mxu0 %v164_v58  ;;  %v215_v54 = vld [vmem:[#allocation2 + $0x438] sm:$0xff]  ;;  %v230_v56 = vld [vmem:[#allocation2 + $0x4b0] sm:$0xff] }
  0x6e   :  { %2149 = vmatprep.subr.mxu1 %v196_v59  ;;  %2115 = vmatpush3.msra.mxu0 %v148_v60  ;;  %v247_v55 = vld [vmem:[#allocation2 + $0x538] sm:$0xff]  ;;  %v214_v58 = vld [vmem:[#allocation2 + $0x430] sm:$0xff]  ;;  %v229_v60 = vld [vmem:[#allocation2 + $0x4a8] sm:$0xff] }
  0x6f   :  { %2150 = vmatpush3.msra.mxu1 %v180_v61  ;;  %2116 = vmatprep.subr.mxu0 %v163_v62  ;;  %v246_v59 = vld [vmem:[#allocation2 + $0x530] sm:$0xff]  ;;  %v261_v61 = vld [vmem:[#allocation2 + $0x5a8] sm:$0xff] }
  0x70   :  { %2151 = vmatprep.subr.mxu1 %v195_v63  ;;  %2117 = vmatpush3.msra.mxu0 %v147_v1  ;;  %v213_v62 = vld [vmem:[#allocation2 + $0x428] sm:$0xff]  ;;  %v228_v1 = vld [vmem:[#allocation2 + $0x4a0] sm:$0xff] }
  0x71   :  { %2152 = vmatpush3.msra.mxu1 %v179_v2  ;;  %2118 = vmatprep.subr.mxu0 %v162_v3  ;;  %v245_v63 = vld [vmem:[#allocation2 + $0x528] sm:$0xff]  ;;  %v260_v2 = vld [vmem:[#allocation2 + $0x5a0] sm:$0xff] }
  0x72   :  { %2153 = vmatprep.subr.mxu1 %v194_v4  ;;  %2119 = vmatpush3.msra.mxu0 %v146_v6  ;;  %v212_v3 = vld [vmem:[#allocation2 + $0x420] sm:$0xff]  ;;  %v259_v6 = vld [vmem:[#allocation2 + $0x598] sm:$0xff] }
  0x73   :  { %2154 = vmatpush3.msra.mxu1 %v178_v7  ;;  %2120 = vmatprep.subr.mxu0 %v161_v8  ;;  %v244_v4 = vld [vmem:[#allocation2 + $0x520] sm:$0xff]  ;;  %v641_v7 = vcombine.high %v74_v0, %v74_v0  ;;  %v211_v8 = vld [vmem:[#allocation2 + $0x418] sm:$0xff] }
  0x74   :  { %2155 = vmatprep.subr.mxu1 %v193_v9  ;;  %2121 = vmatpush3.msra.mxu0 %v145_v11  ;;  %v243_v9 = vld [vmem:[#allocation2 + $0x518] sm:$0xff]  ;;  %v258_v11 = vld [vmem:[#allocation2 + $0x590] sm:$0xff] }
  0x75   :  { %2156 = vmatpush3.msra.mxu1 %v177_v12  ;;  %2122 = vmatprep.subr.mxu0 %v160_v13  ;;  %v648_v12 = vrot.slane %v74_v0, %v2816_v51  ;;  %v210_v13 = vld [vmem:[#allocation2 + $0x410] sm:$0xff] }
  0x76   :  { %2157 = vmatprep.subr.mxu1 %v192_v14  ;;  %2123 = vmatpush3.msra.mxu0 %v144_v16  ;;  %v242_v14 = vld [vmem:[#allocation2 + $0x510] sm:$0xff]  ;;  %v257_v16 = vld [vmem:[#allocation2 + $0x588] sm:$0xff] }
  0x77   :  { %979 = vmatprep.mubr.f32.mxu0 %v639_v15  ;;  %2158 = vmatpush3.msra.mxu1 %v176_v17  ;;  %v225_v15 = vld [vmem:[#allocation2 + $0x488] sm:$0xff]  ;;  %v655_v17 = vrot.slane %v641_v7, %v2816_v51  ;;  %v326_v0 = vld [vmem:[#allocation2 + $0x7b0] sm:$0xff]  ;;  %v75_v7 = vld [vmem:[%s2861_s0 + $0x18] sm:$0xff] }
  0x78   :  { %980 = vmatmul.mubr.f32.vlgmr.msra.gmra.mxu0 %v631_v5  ;;  %1049 = vmatprep.mubr.f32.mxu1 %v640_v18  ;;  %v227_v5 = vld [vmem:[#allocation2 + $0x498] sm:$0xff]  ;;  %v209_v18 = vld [vmem:[#allocation2 + $0x408] sm:$0xff] }
  0x79   :  { %2162 = vmatprep.subr.mxu0 %v239_v19  ;;  %2197 = vmatprep.subr.mxu1 %v271_v20  ;;  %v241_v19 = vld [vmem:[#allocation2 + $0x508] sm:$0xff]  ;;  %v224_v20 = vld [vmem:[#allocation2 + $0x480] sm:$0xff] }
  0x7a   :  { %1050 = vmatmul.mubr.f32.vlgmr.msra.gmra.mxu1 %v638_v10  ;;  %2163 = vmatpush3.msra.mxu0 %v223_v21  ;;  %v226_v10 = vld [vmem:[#allocation2 + $0x490] sm:$0xff]  ;;  %v256_v21 = vld [vmem:[#allocation2 + $0x580] sm:$0xff] }
  0x7b   :  { %2198 = vmatpush3.msra.mxu1 %v255_v22  ;;  %2164 = vmatprep.subr.mxu0 %v238_v23  ;;  %v656_v22 = vcombine.high %v648_v12, %v648_v12  ;;  %v208_v23 = vld [vmem:[#allocation2 + $0x400] sm:$0xff] }
  0x7c   :  { %2199 = vmatprep.subr.mxu1 %v270_v24  ;;  %2165 = vmatpush3.msra.mxu0 %v222_v25  ;;  %v240_v24 = vld [vmem:[#allocation2 + $0x500] sm:$0xff]  ;;  %v657_v25 = vcombine.high %v655_v17, %v655_v17 }
  0x7d   :  { %2200 = vmatpush3.msra.mxu1 %v254_v26  ;;  %2166 = vmatprep.subr.mxu0 %v237_v27  ;;  %v303_v26 = vld [vmem:[#allocation2 + $0x6f8] sm:$0xff] }
  0x7e   :  { %2201 = vmatprep.subr.mxu1 %v269_v28  ;;  %2167 = vmatpush3.msra.mxu0 %v221_v29  ;;  %v335_v27 = vld [vmem:[#allocation2 + $0x7f8] sm:$0xff] }
  0x7f   :  { %2202 = vmatpush3.msra.mxu1 %v253_v30  ;;  %2168 = vmatprep.subr.mxu0 %v236_v31  ;;  %v287_v28 = vld [vmem:[#allocation2 + $0x678] sm:$0xff]  ;;  %v302_v30 = vld [vmem:[#allocation2 + $0x6f0] sm:$0xff] }
  0x80   :  { %2203 = vmatprep.subr.mxu1 %v268_v32  ;;  %2169 = vmatpush3.msra.mxu0 %v220_v33  ;;  %v319_v29 = vld [vmem:[#allocation2 + $0x778] sm:$0xff]  ;;  %v334_v31 = vld [vmem:[#allocation2 + $0x7f0] sm:$0xff] }
  0x81   :  { %2204 = vmatpush3.msra.mxu1 %v252_v34  ;;  %2170 = vmatprep.subr.mxu0 %v235_v35  ;;  %v286_v32 = vld [vmem:[#allocation2 + $0x670] sm:$0xff]  ;;  %v301_v34 = vld [vmem:[#allocation2 + $0x6e8] sm:$0xff] }
  0x82   :  { %2205 = vmatprep.subr.mxu1 %v267_v36  ;;  %2171 = vmatpush3.msra.mxu0 %v219_v37  ;;  %v318_v33 = vld [vmem:[#allocation2 + $0x770] sm:$0xff]  ;;  %v333_v35 = vld [vmem:[#allocation2 + $0x7e8] sm:$0xff] }
  0x83   :  { %2206 = vmatpush3.msra.mxu1 %v251_v38  ;;  %2172 = vmatprep.subr.mxu0 %v234_v39  ;;  %v285_v36 = vld [vmem:[#allocation2 + $0x668] sm:$0xff]  ;;  %v300_v38 = vld [vmem:[#allocation2 + $0x6e0] sm:$0xff] }
  0x84   :  { %2207 = vmatprep.subr.mxu1 %v266_v40  ;;  %2173 = vmatpush3.msra.mxu0 %v218_v41  ;;  %v317_v37 = vld [vmem:[#allocation2 + $0x768] sm:$0xff]  ;;  %v332_v39 = vld [vmem:[#allocation2 + $0x7e0] sm:$0xff] }
  0x85   :  { %2208 = vmatpush3.msra.mxu1 %v250_v42  ;;  %2174 = vmatprep.subr.mxu0 %v233_v43  ;;  %v284_v40 = vld [vmem:[#allocation2 + $0x660] sm:$0xff]  ;;  %v299_v42 = vld [vmem:[#allocation2 + $0x6d8] sm:$0xff] }
  0x86   :  { %2209 = vmatprep.subr.mxu1 %v265_v44  ;;  %2175 = vmatpush3.msra.mxu0 %v217_v45  ;;  %v316_v41 = vld [vmem:[#allocation2 + $0x760] sm:$0xff]  ;;  %v331_v43 = vld [vmem:[#allocation2 + $0x7d8] sm:$0xff] }
  0x87   :  { %2210 = vmatpush3.msra.mxu1 %v249_v46  ;;  %2176 = vmatprep.subr.mxu0 %v232_v47  ;;  %v283_v44 = vld [vmem:[#allocation2 + $0x658] sm:$0xff]  ;;  %v298_v46 = vld [vmem:[#allocation2 + $0x6d0] sm:$0xff] }
  0x88   :  { %2211 = vmatprep.subr.mxu1 %v264_v48  ;;  %2177 = vmatpush3.msra.mxu0 %v216_v49  ;;  %v315_v45 = vld [vmem:[#allocation2 + $0x758] sm:$0xff]  ;;  %v330_v47 = vld [vmem:[#allocation2 + $0x7d0] sm:$0xff] }
  0x89   :  { %2212 = vmatpush3.msra.mxu1 %v248_v50  ;;  %2178 = vmatprep.subr.mxu0 %v231_v52  ;;  %v282_v48 = vld [vmem:[#allocation2 + $0x650] sm:$0xff]  ;;  %v297_v50 = vld [vmem:[#allocation2 + $0x6c8] sm:$0xff] }
  0x8a   :  { %2213 = vmatprep.subr.mxu1 %v263_v53  ;;  %2179 = vmatpush3.msra.mxu0 %v215_v54  ;;  %v314_v49 = vld [vmem:[#allocation2 + $0x750] sm:$0xff]  ;;  %v329_v52 = vld [vmem:[#allocation2 + $0x7c8] sm:$0xff] }
  0x8b   :  { %2214 = vmatpush3.msra.mxu1 %v247_v55  ;;  %2180 = vmatprep.subr.mxu0 %v230_v56  ;;  %v281_v53 = vld [vmem:[#allocation2 + $0x648] sm:$0xff]  ;;  %v296_v55 = vld [vmem:[#allocation2 + $0x6c0] sm:$0xff] }
  0x8c   :  { %2215 = vmatprep.subr.mxu1 %v262_v57  ;;  %2181 = vmatpush3.msra.mxu0 %v214_v58  ;;  %v313_v54 = vld [vmem:[#allocation2 + $0x748] sm:$0xff]  ;;  %v328_v56 = vld [vmem:[#allocation2 + $0x7c0] sm:$0xff] }
  0x8d   :  { %2216 = vmatpush3.msra.mxu1 %v246_v59  ;;  %2182 = vmatprep.subr.mxu0 %v229_v60  ;;  %v280_v57 = vld [vmem:[#allocation2 + $0x640] sm:$0xff]  ;;  %v295_v59 = vld [vmem:[#allocation2 + $0x6b8] sm:$0xff] }
  0x8e   :  { %2217 = vmatprep.subr.mxu1 %v261_v61  ;;  %2183 = vmatpush3.msra.mxu0 %v213_v62  ;;  %v312_v58 = vld [vmem:[#allocation2 + $0x740] sm:$0xff]  ;;  %v327_v60 = vld [vmem:[#allocation2 + $0x7b8] sm:$0xff] }
  0x8f   :  { %2218 = vmatpush3.msra.mxu1 %v245_v63  ;;  %2184 = vmatprep.subr.mxu0 %v228_v1  ;;  %v279_v61 = vld [vmem:[#allocation2 + $0x638] sm:$0xff]  ;;  %v294_v63 = vld [vmem:[#allocation2 + $0x6b0] sm:$0xff] }
  0x90   :  { %2219 = vmatprep.subr.mxu1 %v260_v2  ;;  %2185 = vmatpush3.msra.mxu0 %v212_v3  ;;  %v311_v62 = vld [vmem:[#allocation2 + $0x738] sm:$0xff]  ;;  %v278_v1 = vld [vmem:[#allocation2 + $0x630] sm:$0xff]  ;;  %v293_v3 = vld [vmem:[#allocation2 + $0x6a8] sm:$0xff] }
  0x91   :  { %2220 = vmatpush3.msra.mxu1 %v244_v4  ;;  %2186 = vmatprep.subr.mxu0 %v227_v5  ;;  %v310_v2 = vld [vmem:[#allocation2 + $0x730] sm:$0xff]  ;;  %v325_v4 = vld [vmem:[#allocation2 + $0x7a8] sm:$0xff] }
  0x92   :  { %2221 = vmatprep.subr.mxu1 %v259_v6  ;;  %2187 = vmatpush3.msra.mxu0 %v211_v8  ;;  %v277_v5 = vld [vmem:[#allocation2 + $0x628] sm:$0xff]  ;;  %v292_v8 = vld [vmem:[#allocation2 + $0x6a0] sm:$0xff] }
  0x93   :  { %2222 = vmatpush3.msra.mxu1 %v243_v9  ;;  %2188 = vmatprep.subr.mxu0 %v226_v10  ;;  %v309_v6 = vld [vmem:[#allocation2 + $0x728] sm:$0xff]  ;;  %v324_v9 = vld [vmem:[#allocation2 + $0x7a0] sm:$0xff] }
  0x94   :  { %2223 = vmatprep.subr.mxu1 %v258_v11  ;;  %2189 = vmatpush3.msra.mxu0 %v210_v13  ;;  %v276_v10 = vld [vmem:[#allocation2 + $0x620] sm:$0xff]  ;;  %v323_v13 = vld [vmem:[#allocation2 + $0x798] sm:$0xff] }
  0x95   :  { %2224 = vmatpush3.msra.mxu1 %v242_v14  ;;  %2190 = vmatprep.subr.mxu0 %v225_v15  ;;  %v308_v11 = vld [vmem:[#allocation2 + $0x720] sm:$0xff]  ;;  %v658_v14 = vcombine.high %v75_v7, %v75_v7  ;;  %v275_v15 = vld [vmem:[#allocation2 + $0x618] sm:$0xff] }
  0x96   :  { %2225 = vmatprep.subr.mxu1 %v257_v16  ;;  %2191 = vmatpush3.msra.mxu0 %v209_v18  ;;  %v307_v16 = vld [vmem:[#allocation2 + $0x718] sm:$0xff]  ;;  %v322_v18 = vld [vmem:[#allocation2 + $0x790] sm:$0xff] }
  0x97   :  { %2226 = vmatpush3.msra.mxu1 %v241_v19  ;;  %2192 = vmatprep.subr.mxu0 %v224_v20  ;;  %v665_v19 = vrot.slane %v75_v7, %v2816_v51  ;;  %v274_v20 = vld [vmem:[#allocation2 + $0x610] sm:$0xff] }
  0x98   :  { %2227 = vmatprep.subr.mxu1 %v256_v21  ;;  %2193 = vmatpush3.msra.mxu0 %v208_v23  ;;  %v306_v21 = vld [vmem:[#allocation2 + $0x710] sm:$0xff]  ;;  %v321_v23 = vld [vmem:[#allocation2 + $0x788] sm:$0xff] }
  0x99   :  { %1119 = vmatprep.mubr.f32.mxu0 %v656_v22  ;;  %2228 = vmatpush3.msra.mxu1 %v240_v24  ;;  %v289_v22 = vld [vmem:[#allocation2 + $0x688] sm:$0xff]  ;;  %v672_v24 = vrot.slane %v658_v14, %v2816_v51  ;;  %v390_v7 = vld [vmem:[#allocation2 + $0x9b0] sm:$0xff]  ;;  %v76_v14 = vld [vmem:[%s2861_s0 + $0x20] sm:$0xff] }
  0x9a   :  { %1120 = vmatmul.mubr.f32.vlgmr.msra.gmra.mxu0 %v648_v12  ;;  %1189 = vmatprep.mubr.f32.mxu1 %v657_v25  ;;  %v291_v12 = vld [vmem:[#allocation2 + $0x698] sm:$0xff]  ;;  %v273_v25 = vld [vmem:[#allocation2 + $0x608] sm:$0xff] }
  0x9b   :  { %2232 = vmatprep.subr.mxu0 %v303_v26  ;;  %2267 = vmatprep.subr.mxu1 %v335_v27  ;;  %v305_v26 = vld [vmem:[#allocation2 + $0x708] sm:$0xff]  ;;  %v288_v27 = vld [vmem:[#allocation2 + $0x680] sm:$0xff] }
  0x9c   :  { %1190 = vmatmul.mubr.f32.vlgmr.msra.gmra.mxu1 %v655_v17  ;;  %2233 = vmatpush3.msra.mxu0 %v287_v28  ;;  %v290_v17 = vld [vmem:[#allocation2 + $0x690] sm:$0xff]  ;;  %v320_v28 = vld [vmem:[#allocation2 + $0x780] sm:$0xff] }
  0x9d   :  { %2268 = vmatpush3.msra.mxu1 %v319_v29  ;;  %2234 = vmatprep.subr.mxu0 %v302_v30  ;;  %v673_v29 = vcombine.high %v665_v19, %v665_v19  ;;  %v272_v30 = vld [vmem:[#allocation2 + $0x600] sm:$0xff] }
  0x9e   :  { %2269 = vmatprep.subr.mxu1 %v334_v31  ;;  %2235 = vmatpush3.msra.mxu0 %v286_v32  ;;  %v304_v31 = vld [vmem:[#allocation2 + $0x700] sm:$0xff]  ;;  %v674_v32 = vcombine.high %v672_v24, %v672_v24 }
  0x9f   :  { %2270 = vmatpush3.msra.mxu1 %v318_v33  ;;  %2236 = vmatprep.subr.mxu0 %v301_v34  ;;  %v367_v33 = vld [vmem:[#allocation2 + $0x8f8] sm:$0xff] }
  0xa0   :  { %2271 = vmatprep.subr.mxu1 %v333_v35  ;;  %2237 = vmatpush3.msra.mxu0 %v285_v36  ;;  %v399_v34 = vld [vmem:[#allocation2 + $0x9f8] sm:$0xff] }
  0xa1   :  { %2272 = vmatpush3.msra.mxu1 %v317_v37  ;;  %2238 = vmatprep.subr.mxu0 %v300_v38  ;;  %v351_v35 = vld [vmem:[#allocation2 + $0x878] sm:$0xff]  ;;  %v366_v37 = vld [vmem:[#allocation2 + $0x8f0] sm:$0xff] }
  0xa2   :  { %2273 = vmatprep.subr.mxu1 %v332_v39  ;;  %2239 = vmatpush3.msra.mxu0 %v284_v40  ;;  %v383_v36 = vld [vmem:[#allocation2 + $0x978] sm:$0xff]  ;;  %v398_v38 = vld [vmem:[#allocation2 + $0x9f0] sm:$0xff] }
  0xa3   :  { %2274 = vmatpush3.msra.mxu1 %v316_v41  ;;  %2240 = vmatprep.subr.mxu0 %v299_v42  ;;  %v350_v39 = vld [vmem:[#allocation2 + $0x870] sm:$0xff]  ;;  %v365_v41 = vld [vmem:[#allocation2 + $0x8e8] sm:$0xff] }
  0xa4   :  { %2275 = vmatprep.subr.mxu1 %v331_v43  ;;  %2241 = vmatpush3.msra.mxu0 %v283_v44  ;;  %v382_v40 = vld [vmem:[#allocation2 + $0x970] sm:$0xff]  ;;  %v397_v42 = vld [vmem:[#allocation2 + $0x9e8] sm:$0xff] }
  0xa5   :  { %2276 = vmatpush3.msra.mxu1 %v315_v45  ;;  %2242 = vmatprep.subr.mxu0 %v298_v46  ;;  %v349_v43 = vld [vmem:[#allocation2 + $0x868] sm:$0xff]  ;;  %v364_v45 = vld [vmem:[#allocation2 + $0x8e0] sm:$0xff] }
  0xa6   :  { %2277 = vmatprep.subr.mxu1 %v330_v47  ;;  %2243 = vmatpush3.msra.mxu0 %v282_v48  ;;  %v381_v44 = vld [vmem:[#allocation2 + $0x968] sm:$0xff]  ;;  %v396_v46 = vld [vmem:[#allocation2 + $0x9e0] sm:$0xff] }
  0xa7   :  { %2278 = vmatpush3.msra.mxu1 %v314_v49  ;;  %2244 = vmatprep.subr.mxu0 %v297_v50  ;;  %v348_v47 = vld [vmem:[#allocation2 + $0x860] sm:$0xff]  ;;  %v363_v49 = vld [vmem:[#allocation2 + $0x8d8] sm:$0xff] }
  0xa8   :  { %2279 = vmatprep.subr.mxu1 %v329_v52  ;;  %2245 = vmatpush3.msra.mxu0 %v281_v53  ;;  %v380_v48 = vld [vmem:[#allocation2 + $0x960] sm:$0xff]  ;;  %v395_v50 = vld [vmem:[#allocation2 + $0x9d8] sm:$0xff] }
  0xa9   :  { %2280 = vmatpush3.msra.mxu1 %v313_v54  ;;  %2246 = vmatprep.subr.mxu0 %v296_v55  ;;  %v347_v52 = vld [vmem:[#allocation2 + $0x858] sm:$0xff]  ;;  %v362_v54 = vld [vmem:[#allocation2 + $0x8d0] sm:$0xff] }
  0xaa   :  { %2281 = vmatprep.subr.mxu1 %v328_v56  ;;  %2247 = vmatpush3.msra.mxu0 %v280_v57  ;;  %v379_v53 = vld [vmem:[#allocation2 + $0x958] sm:$0xff]  ;;  %v394_v55 = vld [vmem:[#allocation2 + $0x9d0] sm:$0xff] }
  0xab   :  { %2282 = vmatpush3.msra.mxu1 %v312_v58  ;;  %2248 = vmatprep.subr.mxu0 %v295_v59  ;;  %v346_v56 = vld [vmem:[#allocation2 + $0x850] sm:$0xff]  ;;  %v361_v58 = vld [vmem:[#allocation2 + $0x8c8] sm:$0xff] }
  0xac   :  { %2283 = vmatprep.subr.mxu1 %v327_v60  ;;  %2249 = vmatpush3.msra.mxu0 %v279_v61  ;;  %v378_v57 = vld [vmem:[#allocation2 + $0x950] sm:$0xff]  ;;  %v393_v59 = vld [vmem:[#allocation2 + $0x9c8] sm:$0xff] }
  0xad   :  { %2284 = vmatpush3.msra.mxu1 %v311_v62  ;;  %2250 = vmatprep.subr.mxu0 %v294_v63  ;;  %v345_v60 = vld [vmem:[#allocation2 + $0x848] sm:$0xff]  ;;  %v360_v62 = vld [vmem:[#allocation2 + $0x8c0] sm:$0xff] }
  0xae   :  { %2285 = vmatprep.subr.mxu1 %v326_v0  ;;  %2251 = vmatpush3.msra.mxu0 %v278_v1  ;;  %v377_v61 = vld [vmem:[#allocation2 + $0x948] sm:$0xff]  ;;  %v392_v63 = vld [vmem:[#allocation2 + $0x9c0] sm:$0xff] }
  0xaf   :  { %2286 = vmatpush3.msra.mxu1 %v310_v2  ;;  %2252 = vmatprep.subr.mxu0 %v293_v3  ;;  %v344_v0 = vld [vmem:[#allocation2 + $0x840] sm:$0xff]  ;;  %v359_v2 = vld [vmem:[#allocation2 + $0x8b8] sm:$0xff] }
  0xb0   :  { %2287 = vmatprep.subr.mxu1 %v325_v4  ;;  %2253 = vmatpush3.msra.mxu0 %v277_v5  ;;  %v376_v1 = vld [vmem:[#allocation2 + $0x940] sm:$0xff]  ;;  %v391_v3 = vld [vmem:[#allocation2 + $0x9b8] sm:$0xff] }
  0xb1   :  { %2288 = vmatpush3.msra.mxu1 %v309_v6  ;;  %2254 = vmatprep.subr.mxu0 %v292_v8  ;;  %v343_v4 = vld [vmem:[#allocation2 + $0x838] sm:$0xff]  ;;  %v358_v6 = vld [vmem:[#allocation2 + $0x8b0] sm:$0xff] }
  0xb2   :  { %2289 = vmatprep.subr.mxu1 %v324_v9  ;;  %2255 = vmatpush3.msra.mxu0 %v276_v10  ;;  %v375_v5 = vld [vmem:[#allocation2 + $0x938] sm:$0xff]  ;;  %v342_v8 = vld [vmem:[#allocation2 + $0x830] sm:$0xff]  ;;  %v357_v10 = vld [vmem:[#allocation2 + $0x8a8] sm:$0xff] }
  0xb3   :  { %2290 = vmatpush3.msra.mxu1 %v308_v11  ;;  %2256 = vmatprep.subr.mxu0 %v291_v12  ;;  %v374_v9 = vld [vmem:[#allocation2 + $0x930] sm:$0xff]  ;;  %v389_v11 = vld [vmem:[#allocation2 + $0x9a8] sm:$0xff] }
  0xb4   :  { %2291 = vmatprep.subr.mxu1 %v323_v13  ;;  %2257 = vmatpush3.msra.mxu0 %v275_v15  ;;  %v341_v12 = vld [vmem:[#allocation2 + $0x828] sm:$0xff]  ;;  %v356_v15 = vld [vmem:[#allocation2 + $0x8a0] sm:$0xff] }
  0xb5   :  { %2292 = vmatpush3.msra.mxu1 %v307_v16  ;;  %2258 = vmatprep.subr.mxu0 %v290_v17  ;;  %v373_v13 = vld [vmem:[#allocation2 + $0x928] sm:$0xff]  ;;  %v388_v16 = vld [vmem:[#allocation2 + $0x9a0] sm:$0xff] }
  0xb6   :  { %2293 = vmatprep.subr.mxu1 %v322_v18  ;;  %2259 = vmatpush3.msra.mxu0 %v274_v20  ;;  %v340_v17 = vld [vmem:[#allocation2 + $0x820] sm:$0xff]  ;;  %v387_v20 = vld [vmem:[#allocation2 + $0x998] sm:$0xff] }
  0xb7   :  { %2294 = vmatpush3.msra.mxu1 %v306_v21  ;;  %2260 = vmatprep.subr.mxu0 %v289_v22  ;;  %v372_v18 = vld [vmem:[#allocation2 + $0x920] sm:$0xff]  ;;  %v675_v21 = vcombine.high %v76_v14, %v76_v14  ;;  %v339_v22 = vld [vmem:[#allocation2 + $0x818] sm:$0xff] }
  0xb8   :  { %2295 = vmatprep.subr.mxu1 %v321_v23  ;;  %2261 = vmatpush3.msra.mxu0 %v273_v25  ;;  %v371_v23 = vld [vmem:[#allocation2 + $0x918] sm:$0xff]  ;;  %v386_v25 = vld [vmem:[#allocation2 + $0x990] sm:$0xff] }
  0xb9   :  { %2296 = vmatpush3.msra.mxu1 %v305_v26  ;;  %2262 = vmatprep.subr.mxu0 %v288_v27  ;;  %v682_v26 = vrot.slane %v76_v14, %v2816_v51  ;;  %v338_v27 = vld [vmem:[#allocation2 + $0x810] sm:$0xff] }
  0xba   :  { %2297 = vmatprep.subr.mxu1 %v320_v28  ;;  %2263 = vmatpush3.msra.mxu0 %v272_v30  ;;  %v370_v28 = vld [vmem:[#allocation2 + $0x910] sm:$0xff]  ;;  %v385_v30 = vld [vmem:[#allocation2 + $0x988] sm:$0xff] }
  0xbb   :  { %1259 = vmatprep.mubr.f32.mxu0 %v673_v29  ;;  %2298 = vmatpush3.msra.mxu1 %v304_v31  ;;  %v353_v29 = vld [vmem:[#allocation2 + $0x888] sm:$0xff]  ;;  %v689_v31 = vrot.slane %v675_v21, %v2816_v51  ;;  %v454_v14 = vld [vmem:[#allocation2 + $0xbb0] sm:$0xff] }
  0xbc   :  { %1260 = vmatmul.mubr.f32.vlgmr.msra.gmra.mxu0 %v665_v19  ;;  %1329 = vmatprep.mubr.f32.mxu1 %v674_v32  ;;  %v355_v19 = vld [vmem:[#allocation2 + $0x898] sm:$0xff]  ;;  %v337_v32 = vld [vmem:[#allocation2 + $0x808] sm:$0xff] }
  0xbd   :  { %2302 = vmatprep.subr.mxu0 %v367_v33  ;;  %2337 = vmatprep.subr.mxu1 %v399_v34  ;;  %v369_v33 = vld [vmem:[#allocation2 + $0x908] sm:$0xff]  ;;  %v352_v34 = vld [vmem:[#allocation2 + $0x880] sm:$0xff] }
  0xbe   :  { %1330 = vmatmul.mubr.f32.vlgmr.msra.gmra.mxu1 %v672_v24  ;;  %2303 = vmatpush3.msra.mxu0 %v351_v35  ;;  %v354_v24 = vld [vmem:[#allocation2 + $0x890] sm:$0xff]  ;;  %v384_v35 = vld [vmem:[#allocation2 + $0x980] sm:$0xff]  ;;  %v77_v21 = vld [vmem:[%s2861_s0 + $0x28] sm:$0xff] }
  0xbf   :  { %2338 = vmatpush3.msra.mxu1 %v383_v36  ;;  %2304 = vmatprep.subr.mxu0 %v366_v37  ;;  %v690_v36 = vcombine.high %v682_v26, %v682_v26  ;;  %v336_v37 = vld [vmem:[#allocation2 + $0x800] sm:$0xff] }
  0xc0   :  { %2339 = vmatprep.subr.mxu1 %v398_v38  ;;  %2305 = vmatpush3.msra.mxu0 %v350_v39  ;;  %v368_v38 = vld [vmem:[#allocation2 + $0x900] sm:$0xff]  ;;  %v691_v39 = vcombine.high %v689_v31, %v689_v31 }
  0xc1   :  { %2340 = vmatpush3.msra.mxu1 %v382_v40  ;;  %2306 = vmatprep.subr.mxu0 %v365_v41  ;;  %v431_v40 = vld [vmem:[#allocation2 + $0xaf8] sm:$0xff] }
  0xc2   :  { %2341 = vmatprep.subr.mxu1 %v397_v42  ;;  %2307 = vmatpush3.msra.mxu0 %v349_v43  ;;  %v463_v41 = vld [vmem:[#allocation2 + $0xbf8] sm:$0xff] }
  0xc3   :  { %2342 = vmatpush3.msra.mxu1 %v381_v44  ;;  %2308 = vmatprep.subr.mxu0 %v364_v45  ;;  %v415_v42 = vld [vmem:[#allocation2 + $0xa78] sm:$0xff]  ;;  %v430_v44 = vld [vmem:[#allocation2 + $0xaf0] sm:$0xff] }
  0xc4   :  { %2343 = vmatprep.subr.mxu1 %v396_v46  ;;  %2309 = vmatpush3.msra.mxu0 %v348_v47  ;;  %v447_v43 = vld [vmem:[#allocation2 + $0xb78] sm:$0xff]  ;;  %v462_v45 = vld [vmem:[#allocation2 + $0xbf0] sm:$0xff] }
  0xc5   :  { %2344 = vmatpush3.msra.mxu1 %v380_v48  ;;  %2310 = vmatprep.subr.mxu0 %v363_v49  ;;  %v414_v46 = vld [vmem:[#allocation2 + $0xa70] sm:$0xff]  ;;  %v429_v48 = vld [vmem:[#allocation2 + $0xae8] sm:$0xff] }
  0xc6   :  { %2345 = vmatprep.subr.mxu1 %v395_v50  ;;  %2311 = vmatpush3.msra.mxu0 %v347_v52  ;;  %v446_v47 = vld [vmem:[#allocation2 + $0xb70] sm:$0xff]  ;;  %v461_v49 = vld [vmem:[#allocation2 + $0xbe8] sm:$0xff] }
  0xc7   :  { %2346 = vmatpush3.msra.mxu1 %v379_v53  ;;  %2312 = vmatprep.subr.mxu0 %v362_v54  ;;  %v413_v50 = vld [vmem:[#allocation2 + $0xa68] sm:$0xff]  ;;  %v428_v53 = vld [vmem:[#allocation2 + $0xae0] sm:$0xff] }
  0xc8   :  { %2347 = vmatprep.subr.mxu1 %v394_v55  ;;  %2313 = vmatpush3.msra.mxu0 %v346_v56  ;;  %v445_v52 = vld [vmem:[#allocation2 + $0xb68] sm:$0xff]  ;;  %v460_v54 = vld [vmem:[#allocation2 + $0xbe0] sm:$0xff] }
  0xc9   :  { %2348 = vmatpush3.msra.mxu1 %v378_v57  ;;  %2314 = vmatprep.subr.mxu0 %v361_v58  ;;  %v412_v55 = vld [vmem:[#allocation2 + $0xa60] sm:$0xff]  ;;  %v427_v57 = vld [vmem:[#allocation2 + $0xad8] sm:$0xff] }
  0xca   :  { %2349 = vmatprep.subr.mxu1 %v393_v59  ;;  %2315 = vmatpush3.msra.mxu0 %v345_v60  ;;  %v444_v56 = vld [vmem:[#allocation2 + $0xb60] sm:$0xff]  ;;  %v459_v58 = vld [vmem:[#allocation2 + $0xbd8] sm:$0xff] }
  0xcb   :  { %2350 = vmatpush3.msra.mxu1 %v377_v61  ;;  %2316 = vmatprep.subr.mxu0 %v360_v62  ;;  %v411_v59 = vld [vmem:[#allocation2 + $0xa58] sm:$0xff]  ;;  %v426_v61 = vld [vmem:[#allocation2 + $0xad0] sm:$0xff] }
  0xcc   :  { %2351 = vmatprep.subr.mxu1 %v392_v63  ;;  %2317 = vmatpush3.msra.mxu0 %v344_v0  ;;  %v443_v60 = vld [vmem:[#allocation2 + $0xb58] sm:$0xff]  ;;  %v458_v62 = vld [vmem:[#allocation2 + $0xbd0] sm:$0xff] }
  0xcd   :  { %2352 = vmatpush3.msra.mxu1 %v376_v1  ;;  %2318 = vmatprep.subr.mxu0 %v359_v2  ;;  %v410_v63 = vld [vmem:[#allocation2 + $0xa50] sm:$0xff]  ;;  %v425_v1 = vld [vmem:[#allocation2 + $0xac8] sm:$0xff] }
  0xce   :  { %2353 = vmatprep.subr.mxu1 %v391_v3  ;;  %2319 = vmatpush3.msra.mxu0 %v343_v4  ;;  %v442_v0 = vld [vmem:[#allocation2 + $0xb50] sm:$0xff]  ;;  %v457_v2 = vld [vmem:[#allocation2 + $0xbc8] sm:$0xff] }
  0xcf   :  { %2354 = vmatpush3.msra.mxu1 %v375_v5  ;;  %2320 = vmatprep.subr.mxu0 %v358_v6  ;;  %v409_v3 = vld [vmem:[#allocation2 + $0xa48] sm:$0xff]  ;;  %v424_v5 = vld [vmem:[#allocation2 + $0xac0] sm:$0xff] }
  0xd0   :  { %2355 = vmatprep.subr.mxu1 %v390_v7  ;;  %2321 = vmatpush3.msra.mxu0 %v342_v8  ;;  %v441_v4 = vld [vmem:[#allocation2 + $0xb48] sm:$0xff]  ;;  %v456_v6 = vld [vmem:[#allocation2 + $0xbc0] sm:$0xff] }
  0xd1   :  { %2356 = vmatpush3.msra.mxu1 %v374_v9  ;;  %2322 = vmatprep.subr.mxu0 %v357_v10  ;;  %v408_v7 = vld [vmem:[#allocation2 + $0xa40] sm:$0xff]  ;;  %v423_v9 = vld [vmem:[#allocation2 + $0xab8] sm:$0xff] }
  0xd2   :  { %2357 = vmatprep.subr.mxu1 %v389_v11  ;;  %2323 = vmatpush3.msra.mxu0 %v341_v12  ;;  %v440_v8 = vld [vmem:[#allocation2 + $0xb40] sm:$0xff]  ;;  %v455_v10 = vld [vmem:[#allocation2 + $0xbb8] sm:$0xff] }
  0xd3   :  { %2358 = vmatpush3.msra.mxu1 %v373_v13  ;;  %2324 = vmatprep.subr.mxu0 %v356_v15  ;;  %v407_v11 = vld [vmem:[#allocation2 + $0xa38] sm:$0xff]  ;;  %v422_v13 = vld [vmem:[#allocation2 + $0xab0] sm:$0xff] }
  0xd4   :  { %2359 = vmatprep.subr.mxu1 %v388_v16  ;;  %2325 = vmatpush3.msra.mxu0 %v340_v17  ;;  %v439_v12 = vld [vmem:[#allocation2 + $0xb38] sm:$0xff]  ;;  %v406_v15 = vld [vmem:[#allocation2 + $0xa30] sm:$0xff]  ;;  %v421_v17 = vld [vmem:[#allocation2 + $0xaa8] sm:$0xff] }
  0xd5   :  { %2360 = vmatpush3.msra.mxu1 %v372_v18  ;;  %2326 = vmatprep.subr.mxu0 %v355_v19  ;;  %v438_v16 = vld [vmem:[#allocation2 + $0xb30] sm:$0xff]  ;;  %v453_v18 = vld [vmem:[#allocation2 + $0xba8] sm:$0xff] }
  0xd6   :  { %2361 = vmatprep.subr.mxu1 %v387_v20  ;;  %2327 = vmatpush3.msra.mxu0 %v339_v22  ;;  %v405_v19 = vld [vmem:[#allocation2 + $0xa28] sm:$0xff]  ;;  %v420_v22 = vld [vmem:[#allocation2 + $0xaa0] sm:$0xff] }
  0xd7   :  { %2362 = vmatpush3.msra.mxu1 %v371_v23  ;;  %2328 = vmatprep.subr.mxu0 %v354_v24  ;;  %v437_v20 = vld [vmem:[#allocation2 + $0xb28] sm:$0xff]  ;;  %v452_v23 = vld [vmem:[#allocation2 + $0xba0] sm:$0xff] }
  0xd8   :  { %2363 = vmatprep.subr.mxu1 %v386_v25  ;;  %2329 = vmatpush3.msra.mxu0 %v338_v27  ;;  %v404_v24 = vld [vmem:[#allocation2 + $0xa20] sm:$0xff]  ;;  %v451_v27 = vld [vmem:[#allocation2 + $0xb98] sm:$0xff] }
  0xd9   :  { %2364 = vmatpush3.msra.mxu1 %v370_v28  ;;  %2330 = vmatprep.subr.mxu0 %v353_v29  ;;  %v436_v25 = vld [vmem:[#allocation2 + $0xb20] sm:$0xff]  ;;  %v692_v28 = vcombine.high %v77_v21, %v77_v21  ;;  %v403_v29 = vld [vmem:[#allocation2 + $0xa18] sm:$0xff] }
  0xda   :  { %2365 = vmatprep.subr.mxu1 %v385_v30  ;;  %2331 = vmatpush3.msra.mxu0 %v337_v32  ;;  %v435_v30 = vld [vmem:[#allocation2 + $0xb18] sm:$0xff]  ;;  %v450_v32 = vld [vmem:[#allocation2 + $0xb90] sm:$0xff] }
  0xdb   :  { %2366 = vmatpush3.msra.mxu1 %v369_v33  ;;  %2332 = vmatprep.subr.mxu0 %v352_v34  ;;  %v699_v33 = vrot.slane %v77_v21, %v2816_v51  ;;  %v402_v34 = vld [vmem:[#allocation2 + $0xa10] sm:$0xff] }
  0xdc   :  { %2367 = vmatprep.subr.mxu1 %v384_v35  ;;  %2333 = vmatpush3.msra.mxu0 %v336_v37  ;;  %v434_v35 = vld [vmem:[#allocation2 + $0xb10] sm:$0xff]  ;;  %v449_v37 = vld [vmem:[#allocation2 + $0xb88] sm:$0xff] }
  0xdd   :  { %1399 = vmatprep.mubr.f32.mxu0 %v690_v36  ;;  %2368 = vmatpush3.msra.mxu1 %v368_v38  ;;  %v417_v36 = vld [vmem:[#allocation2 + $0xa88] sm:$0xff]  ;;  %v706_v38 = vrot.slane %v692_v28, %v2816_v51  ;;  %v518_v21 = vld [vmem:[#allocation2 + $0xdb0] sm:$0xff] }
  0xde   :  { %1400 = vmatmul.mubr.f32.vlgmr.msra.gmra.mxu0 %v682_v26  ;;  %1469 = vmatprep.mubr.f32.mxu1 %v691_v39  ;;  %v419_v26 = vld [vmem:[#allocation2 + $0xa98] sm:$0xff]  ;;  %v401_v39 = vld [vmem:[#allocation2 + $0xa08] sm:$0xff]  ;;  %v78_v28 = vld [vmem:[%s2861_s0 + $0x30] sm:$0xff] }
  0xdf   :  { %2372 = vmatprep.subr.mxu0 %v431_v40  ;;  %2407 = vmatprep.subr.mxu1 %v463_v41  ;;  %v433_v40 = vld [vmem:[#allocation2 + $0xb08] sm:$0xff]  ;;  %v416_v41 = vld [vmem:[#allocation2 + $0xa80] sm:$0xff] }
  0xe0   :  { %1470 = vmatmul.mubr.f32.vlgmr.msra.gmra.mxu1 %v689_v31  ;;  %2373 = vmatpush3.msra.mxu0 %v415_v42  ;;  %v418_v31 = vld [vmem:[#allocation2 + $0xa90] sm:$0xff]  ;;  %v448_v42 = vld [vmem:[#allocation2 + $0xb80] sm:$0xff] }
  0xe1   :  { %2408 = vmatpush3.msra.mxu1 %v447_v43  ;;  %2374 = vmatprep.subr.mxu0 %v430_v44  ;;  %v707_v43 = vcombine.high %v699_v33, %v699_v33  ;;  %v400_v44 = vld [vmem:[#allocation2 + $0xa00] sm:$0xff] }
  0xe2   :  { %2409 = vmatprep.subr.mxu1 %v462_v45  ;;  %2375 = vmatpush3.msra.mxu0 %v414_v46  ;;  %v432_v45 = vld [vmem:[#allocation2 + $0xb00] sm:$0xff]  ;;  %v708_v46 = vcombine.high %v706_v38, %v706_v38 }
  0xe3   :  { %2410 = vmatpush3.msra.mxu1 %v446_v47  ;;  %2376 = vmatprep.subr.mxu0 %v429_v48  ;;  %v495_v47 = vld [vmem:[#allocation2 + $0xcf8] sm:$0xff] }
  0xe4   :  { %2411 = vmatprep.subr.mxu1 %v461_v49  ;;  %2377 = vmatpush3.msra.mxu0 %v413_v50  ;;  %v527_v48 = vld [vmem:[#allocation2 + $0xdf8] sm:$0xff] }
  0xe5   :  { %2412 = vmatpush3.msra.mxu1 %v445_v52  ;;  %2378 = vmatprep.subr.mxu0 %v428_v53  ;;  %v479_v49 = vld [vmem:[#allocation2 + $0xc78] sm:$0xff]  ;;  %v494_v52 = vld [vmem:[#allocation2 + $0xcf0] sm:$0xff] }
  0xe6   :  { %2413 = vmatprep.subr.mxu1 %v460_v54  ;;  %2379 = vmatpush3.msra.mxu0 %v412_v55  ;;  %v511_v50 = vld [vmem:[#allocation2 + $0xd78] sm:$0xff]  ;;  %v526_v53 = vld [vmem:[#allocation2 + $0xdf0] sm:$0xff] }
  0xe7   :  { %2414 = vmatpush3.msra.mxu1 %v444_v56  ;;  %2380 = vmatprep.subr.mxu0 %v427_v57  ;;  %v478_v54 = vld [vmem:[#allocation2 + $0xc70] sm:$0xff]  ;;  %v493_v56 = vld [vmem:[#allocation2 + $0xce8] sm:$0xff] }
  0xe8   :  { %2415 = vmatprep.subr.mxu1 %v459_v58  ;;  %2381 = vmatpush3.msra.mxu0 %v411_v59  ;;  %v510_v55 = vld [vmem:[#allocation2 + $0xd70] sm:$0xff]  ;;  %v525_v57 = vld [vmem:[#allocation2 + $0xde8] sm:$0xff] }
  0xe9   :  { %2416 = vmatpush3.msra.mxu1 %v443_v60  ;;  %2382 = vmatprep.subr.mxu0 %v426_v61  ;;  %v477_v58 = vld [vmem:[#allocation2 + $0xc68] sm:$0xff]  ;;  %v492_v60 = vld [vmem:[#allocation2 + $0xce0] sm:$0xff] }
  0xea   :  { %2417 = vmatprep.subr.mxu1 %v458_v62  ;;  %2383 = vmatpush3.msra.mxu0 %v410_v63  ;;  %v509_v59 = vld [vmem:[#allocation2 + $0xd68] sm:$0xff]  ;;  %v524_v61 = vld [vmem:[#allocation2 + $0xde0] sm:$0xff] }
  0xeb   :  { %2418 = vmatpush3.msra.mxu1 %v442_v0  ;;  %2384 = vmatprep.subr.mxu0 %v425_v1  ;;  %v476_v62 = vld [vmem:[#allocation2 + $0xc60] sm:$0xff]  ;;  %v491_v0 = vld [vmem:[#allocation2 + $0xcd8] sm:$0xff] }
  0xec   :  { %2419 = vmatprep.subr.mxu1 %v457_v2  ;;  %2385 = vmatpush3.msra.mxu0 %v409_v3  ;;  %v508_v63 = vld [vmem:[#allocation2 + $0xd60] sm:$0xff]  ;;  %v523_v1 = vld [vmem:[#allocation2 + $0xdd8] sm:$0xff] }
  0xed   :  { %2420 = vmatpush3.msra.mxu1 %v441_v4  ;;  %2386 = vmatprep.subr.mxu0 %v424_v5  ;;  %v475_v2 = vld [vmem:[#allocation2 + $0xc58] sm:$0xff]  ;;  %v490_v4 = vld [vmem:[#allocation2 + $0xcd0] sm:$0xff] }
  0xee   :  { %2421 = vmatprep.subr.mxu1 %v456_v6  ;;  %2387 = vmatpush3.msra.mxu0 %v408_v7  ;;  %v507_v3 = vld [vmem:[#allocation2 + $0xd58] sm:$0xff]  ;;  %v522_v5 = vld [vmem:[#allocation2 + $0xdd0] sm:$0xff] }
  0xef   :  { %2422 = vmatpush3.msra.mxu1 %v440_v8  ;;  %2388 = vmatprep.subr.mxu0 %v423_v9  ;;  %v474_v6 = vld [vmem:[#allocation2 + $0xc50] sm:$0xff]  ;;  %v489_v8 = vld [vmem:[#allocation2 + $0xcc8] sm:$0xff] }
  0xf0   :  { %2423 = vmatprep.subr.mxu1 %v455_v10  ;;  %2389 = vmatpush3.msra.mxu0 %v407_v11  ;;  %v506_v7 = vld [vmem:[#allocation2 + $0xd50] sm:$0xff]  ;;  %v521_v9 = vld [vmem:[#allocation2 + $0xdc8] sm:$0xff] }
  0xf1   :  { %2424 = vmatpush3.msra.mxu1 %v439_v12  ;;  %2390 = vmatprep.subr.mxu0 %v422_v13  ;;  %v473_v10 = vld [vmem:[#allocation2 + $0xc48] sm:$0xff]  ;;  %v488_v12 = vld [vmem:[#allocation2 + $0xcc0] sm:$0xff] }
  0xf2   :  { %2425 = vmatprep.subr.mxu1 %v454_v14  ;;  %2391 = vmatpush3.msra.mxu0 %v406_v15  ;;  %v505_v11 = vld [vmem:[#allocation2 + $0xd48] sm:$0xff]  ;;  %v520_v13 = vld [vmem:[#allocation2 + $0xdc0] sm:$0xff] }
  0xf3   :  { %2426 = vmatpush3.msra.mxu1 %v438_v16  ;;  %2392 = vmatprep.subr.mxu0 %v421_v17  ;;  %v472_v14 = vld [vmem:[#allocation2 + $0xc40] sm:$0xff]  ;;  %v487_v16 = vld [vmem:[#allocation2 + $0xcb8] sm:$0xff] }
  0xf4   :  { %2427 = vmatprep.subr.mxu1 %v453_v18  ;;  %2393 = vmatpush3.msra.mxu0 %v405_v19  ;;  %v504_v15 = vld [vmem:[#allocation2 + $0xd40] sm:$0xff]  ;;  %v519_v17 = vld [vmem:[#allocation2 + $0xdb8] sm:$0xff] }
  0xf5   :  { %2428 = vmatpush3.msra.mxu1 %v437_v20  ;;  %2394 = vmatprep.subr.mxu0 %v420_v22  ;;  %v471_v18 = vld [vmem:[#allocation2 + $0xc38] sm:$0xff]  ;;  %v486_v20 = vld [vmem:[#allocation2 + $0xcb0] sm:$0xff] }
  0xf6   :  { %2429 = vmatprep.subr.mxu1 %v452_v23  ;;  %2395 = vmatpush3.msra.mxu0 %v404_v24  ;;  %v503_v19 = vld [vmem:[#allocation2 + $0xd38] sm:$0xff]  ;;  %v470_v22 = vld [vmem:[#allocation2 + $0xc30] sm:$0xff]  ;;  %v485_v24 = vld [vmem:[#allocation2 + $0xca8] sm:$0xff] }
  0xf7   :  { %2430 = vmatpush3.msra.mxu1 %v436_v25  ;;  %2396 = vmatprep.subr.mxu0 %v419_v26  ;;  %v502_v23 = vld [vmem:[#allocation2 + $0xd30] sm:$0xff]  ;;  %v517_v25 = vld [vmem:[#allocation2 + $0xda8] sm:$0xff] }
  0xf8   :  { %2431 = vmatprep.subr.mxu1 %v451_v27  ;;  %2397 = vmatpush3.msra.mxu0 %v403_v29  ;;  %v469_v26 = vld [vmem:[#allocation2 + $0xc28] sm:$0xff]  ;;  %v484_v29 = vld [vmem:[#allocation2 + $0xca0] sm:$0xff] }
  0xf9   :  { %2432 = vmatpush3.msra.mxu1 %v435_v30  ;;  %2398 = vmatprep.subr.mxu0 %v418_v31  ;;  %v501_v27 = vld [vmem:[#allocation2 + $0xd28] sm:$0xff]  ;;  %v516_v30 = vld [vmem:[#allocation2 + $0xda0] sm:$0xff] }
  0xfa   :  { %2433 = vmatprep.subr.mxu1 %v450_v32  ;;  %2399 = vmatpush3.msra.mxu0 %v402_v34  ;;  %v468_v31 = vld [vmem:[#allocation2 + $0xc20] sm:$0xff]  ;;  %v515_v34 = vld [vmem:[#allocation2 + $0xd98] sm:$0xff] }
  0xfb   :  { %2434 = vmatpush3.msra.mxu1 %v434_v35  ;;  %2400 = vmatprep.subr.mxu0 %v417_v36  ;;  %v500_v32 = vld [vmem:[#allocation2 + $0xd20] sm:$0xff]  ;;  %v709_v35 = vcombine.high %v78_v28, %v78_v28  ;;  %v467_v36 = vld [vmem:[#allocation2 + $0xc18] sm:$0xff] }
  0xfc   :  { %2435 = vmatprep.subr.mxu1 %v449_v37  ;;  %2401 = vmatpush3.msra.mxu0 %v401_v39  ;;  %v499_v37 = vld [vmem:[#allocation2 + $0xd18] sm:$0xff]  ;;  %v514_v39 = vld [vmem:[#allocation2 + $0xd90] sm:$0xff] }
  0xfd   :  { %2436 = vmatpush3.msra.mxu1 %v433_v40  ;;  %2402 = vmatprep.subr.mxu0 %v416_v41  ;;  %v716_v40 = vrot.slane %v78_v28, %v2816_v51  ;;  %v466_v41 = vld [vmem:[#allocation2 + $0xc10] sm:$0xff] }
  0xfe   :  { %2437 = vmatprep.subr.mxu1 %v448_v42  ;;  %2403 = vmatpush3.msra.mxu0 %v400_v44  ;;  %v498_v42 = vld [vmem:[#allocation2 + $0xd10] sm:$0xff]  ;;  %v513_v44 = vld [vmem:[#allocation2 + $0xd88] sm:$0xff] }
  0xff   :  { %1539 = vmatprep.mubr.f32.mxu0 %v707_v43  ;;  %2438 = vmatpush3.msra.mxu1 %v432_v45  ;;  %v481_v43 = vld [vmem:[#allocation2 + $0xc88] sm:$0xff]  ;;  %v723_v45 = vrot.slane %v709_v35, %v2816_v51  ;;  %v582_v28 = vld [vmem:[#allocation2 + $0xfb0] sm:$0xff] }
 0x100   :  { %1540 = vmatmul.mubr.f32.vlgmr.msra.gmra.mxu0 %v699_v33  ;;  %1609 = vmatprep.mubr.f32.mxu1 %v708_v46  ;;  %v483_v33 = vld [vmem:[#allocation2 + $0xc98] sm:$0xff]  ;;  %v465_v46 = vld [vmem:[#allocation2 + $0xc08] sm:$0xff] }
 0x101   :  { %2442 = vmatprep.subr.mxu0 %v495_v47  ;;  %2477 = vmatprep.subr.mxu1 %v527_v48  ;;  %v497_v47 = vld [vmem:[#allocation2 + $0xd08] sm:$0xff]  ;;  %v480_v48 = vld [vmem:[#allocation2 + $0xc80] sm:$0xff] }
 0x102   :  { %1610 = vmatmul.mubr.f32.vlgmr.msra.gmra.mxu1 %v706_v38  ;;  %2443 = vmatpush3.msra.mxu0 %v479_v49  ;;  %v482_v38 = vld [vmem:[#allocation2 + $0xc90] sm:$0xff]  ;;  %v512_v49 = vld [vmem:[#allocation2 + $0xd80] sm:$0xff]  ;;  %v565_v35 = vld [vmem:[#allocation2 + $0xf28] sm:$0xff] }
 0x103   :  { %2478 = vmatpush3.msra.mxu1 %v511_v50  ;;  %2444 = vmatprep.subr.mxu0 %v494_v52  ;;  %v724_v50 = vcombine.high %v716_v40, %v716_v40  ;;  %v464_v52 = vld [vmem:[#allocation2 + $0xc00] sm:$0xff] }
 0x104   :  { %2479 = vmatprep.subr.mxu1 %v526_v53  ;;  %2445 = vmatpush3.msra.mxu0 %v478_v54  ;;  %v496_v53 = vld [vmem:[#allocation2 + $0xd00] sm:$0xff]  ;;  %v725_v54 = vcombine.high %v723_v45, %v723_v45 }
 0x105   :  { %2480 = vmatpush3.msra.mxu1 %v510_v55  ;;  %2446 = vmatprep.subr.mxu0 %v493_v56  ;;  %v559_v55 = vld [vmem:[#allocation2 + $0xef8] sm:$0xff] }
 0x106   :  { %2481 = vmatprep.subr.mxu1 %v525_v57  ;;  %2447 = vmatpush3.msra.mxu0 %v477_v58  ;;  %v591_v56 = vld [vmem:[#allocation2 + $0xff8] sm:$0xff] }
 0x107   :  { %2482 = vmatpush3.msra.mxu1 %v509_v59  ;;  %2448 = vmatprep.subr.mxu0 %v492_v60  ;;  %v543_v57 = vld [vmem:[#allocation2 + $0xe78] sm:$0xff]  ;;  %v558_v59 = vld [vmem:[#allocation2 + $0xef0] sm:$0xff] }
 0x108   :  { %2483 = vmatprep.subr.mxu1 %v524_v61  ;;  %2449 = vmatpush3.msra.mxu0 %v476_v62  ;;  %v575_v58 = vld [vmem:[#allocation2 + $0xf78] sm:$0xff]  ;;  %v590_v60 = vld [vmem:[#allocation2 + $0xff0] sm:$0xff] }
 0x109   :  { %2484 = vmatpush3.msra.mxu1 %v508_v63  ;;  %2450 = vmatprep.subr.mxu0 %v491_v0  ;;  %v542_v61 = vld [vmem:[#allocation2 + $0xe70] sm:$0xff]  ;;  %v557_v63 = vld [vmem:[#allocation2 + $0xee8] sm:$0xff] }
 0x10a   :  { %2485 = vmatprep.subr.mxu1 %v523_v1  ;;  %2451 = vmatpush3.msra.mxu0 %v475_v2  ;;  %v574_v62 = vld [vmem:[#allocation2 + $0xf70] sm:$0xff]  ;;  %v589_v0 = vld [vmem:[#allocation2 + $0xfe8] sm:$0xff] }
 0x10b   :  { %2486 = vmatpush3.msra.mxu1 %v507_v3  ;;  %2452 = vmatprep.subr.mxu0 %v490_v4  ;;  %v541_v1 = vld [vmem:[#allocation2 + $0xe68] sm:$0xff]  ;;  %v556_v3 = vld [vmem:[#allocation2 + $0xee0] sm:$0xff] }
 0x10c   :  { %2487 = vmatprep.subr.mxu1 %v522_v5  ;;  %2453 = vmatpush3.msra.mxu0 %v474_v6  ;;  %v573_v2 = vld [vmem:[#allocation2 + $0xf68] sm:$0xff]  ;;  %v588_v4 = vld [vmem:[#allocation2 + $0xfe0] sm:$0xff] }
 0x10d   :  { %2488 = vmatpush3.msra.mxu1 %v506_v7  ;;  %2454 = vmatprep.subr.mxu0 %v489_v8  ;;  %v540_v5 = vld [vmem:[#allocation2 + $0xe60] sm:$0xff]  ;;  %v555_v7 = vld [vmem:[#allocation2 + $0xed8] sm:$0xff] }
 0x10e   :  { %2489 = vmatprep.subr.mxu1 %v521_v9  ;;  %2455 = vmatpush3.msra.mxu0 %v473_v10  ;;  %v572_v6 = vld [vmem:[#allocation2 + $0xf60] sm:$0xff]  ;;  %v587_v8 = vld [vmem:[#allocation2 + $0xfd8] sm:$0xff] }
 0x10f   :  { %2490 = vmatpush3.msra.mxu1 %v505_v11  ;;  %2456 = vmatprep.subr.mxu0 %v488_v12  ;;  %v539_v9 = vld [vmem:[#allocation2 + $0xe58] sm:$0xff]  ;;  %v554_v11 = vld [vmem:[#allocation2 + $0xed0] sm:$0xff] }
 0x110   :  { %2491 = vmatprep.subr.mxu1 %v520_v13  ;;  %2457 = vmatpush3.msra.mxu0 %v472_v14  ;;  %v571_v10 = vld [vmem:[#allocation2 + $0xf58] sm:$0xff]  ;;  %v586_v12 = vld [vmem:[#allocation2 + $0xfd0] sm:$0xff] }
 0x111   :  { %2492 = vmatpush3.msra.mxu1 %v504_v15  ;;  %2458 = vmatprep.subr.mxu0 %v487_v16  ;;  %v538_v13 = vld [vmem:[#allocation2 + $0xe50] sm:$0xff]  ;;  %v553_v15 = vld [vmem:[#allocation2 + $0xec8] sm:$0xff] }
 0x112   :  { %2493 = vmatprep.subr.mxu1 %v519_v17  ;;  %2459 = vmatpush3.msra.mxu0 %v471_v18  ;;  %v570_v14 = vld [vmem:[#allocation2 + $0xf50] sm:$0xff]  ;;  %v585_v16 = vld [vmem:[#allocation2 + $0xfc8] sm:$0xff] }
 0x113   :  { %2494 = vmatpush3.msra.mxu1 %v503_v19  ;;  %2460 = vmatprep.subr.mxu0 %v486_v20  ;;  %v537_v17 = vld [vmem:[#allocation2 + $0xe48] sm:$0xff]  ;;  %v552_v19 = vld [vmem:[#allocation2 + $0xec0] sm:$0xff] }
 0x114   :  { %2495 = vmatprep.subr.mxu1 %v518_v21  ;;  %2461 = vmatpush3.msra.mxu0 %v470_v22  ;;  %v569_v18 = vld [vmem:[#allocation2 + $0xf48] sm:$0xff]  ;;  %v584_v20 = vld [vmem:[#allocation2 + $0xfc0] sm:$0xff] }
 0x115   :  { %2496 = vmatpush3.msra.mxu1 %v502_v23  ;;  %2462 = vmatprep.subr.mxu0 %v485_v24  ;;  %v536_v21 = vld [vmem:[#allocation2 + $0xe40] sm:$0xff]  ;;  %v551_v23 = vld [vmem:[#allocation2 + $0xeb8] sm:$0xff] }
 0x116   :  { %2497 = vmatprep.subr.mxu1 %v517_v25  ;;  %2463 = vmatpush3.msra.mxu0 %v469_v26  ;;  %v568_v22 = vld [vmem:[#allocation2 + $0xf40] sm:$0xff]  ;;  %v583_v24 = vld [vmem:[#allocation2 + $0xfb8] sm:$0xff] }
 0x117   :  { %2498 = vmatpush3.msra.mxu1 %v501_v27  ;;  %2464 = vmatprep.subr.mxu0 %v484_v29  ;;  %v535_v25 = vld [vmem:[#allocation2 + $0xe38] sm:$0xff]  ;;  %v550_v27 = vld [vmem:[#allocation2 + $0xeb0] sm:$0xff] }
 0x118   :  { %2499 = vmatprep.subr.mxu1 %v516_v30  ;;  %2465 = vmatpush3.msra.mxu0 %v468_v31  ;;  %v567_v26 = vld [vmem:[#allocation2 + $0xf38] sm:$0xff]  ;;  %v534_v29 = vld [vmem:[#allocation2 + $0xe30] sm:$0xff]  ;;  %v549_v31 = vld [vmem:[#allocation2 + $0xea8] sm:$0xff] }
 0x119   :  { %2500 = vmatpush3.msra.mxu1 %v500_v32  ;;  %2466 = vmatprep.subr.mxu0 %v483_v33  ;;  %v566_v30 = vld [vmem:[#allocation2 + $0xf30] sm:$0xff]  ;;  %v581_v32 = vld [vmem:[#allocation2 + $0xfa8] sm:$0xff]  ;;  %v79_v33 = vld [vmem:[%s2861_s0 + $0x38] sm:$0xff]  ;;  %s2773_s0 = smov [#allocation10]  }
 0x11a   :  { %2501 = vmatprep.subr.mxu1 %v515_v34  ;;  %2467 = vmatpush3.msra.mxu0 %v467_v36  ;;  %v533_v34 = vld [vmem:[#allocation2 + $0xe28] sm:$0xff]  ;;  %v548_v36 = vld [vmem:[#allocation2 + $0xea0] sm:$0xff]  ;;  %s2009_s29 = sshll.u32 %s2773_s0, 4  ;;  %s2010_s29 = int_to_ptr.vmem [resolvable:$true] %s2009_s29 }
 0x11b   :  { %2502 = vmatpush3.msra.mxu1 %v499_v37  ;;  %2468 = vmatprep.subr.mxu0 %v482_v38  ;;  %v580_v37 = vld [vmem:[#allocation2 + $0xfa0] sm:$0xff]  ;;  %s2736_s30 = scalar_lea.vmem %s2010_s29, 32  ;;  %p2741_p7 = scmp.lt.s32.totalorder %s2010_s29, %s2010_s29 }
 0x11c   :  { %2503 = vmatprep.subr.mxu1 %v514_v39  ;;  %2469 = vmatpush3.msra.mxu0 %v466_v41  ;;  %v532_v38 = vld [vmem:[#allocation2 + $0xe20] sm:$0xff]  ;;  %v547_v41 = vld [vmem:[#allocation2 + $0xe98] sm:$0xff]  ;;  %p2737_p6 = scmp.ne.s32.totalorder %s2010_s29, %s2736_s30  ;;  %p2742_p8 = scmp.lt.s32.totalorder %s2736_s30, %s2736_s30 }
 0x11d   :  { %2504 = vmatpush3.msra.mxu1 %v498_v42  ;;  %2470 = vmatprep.subr.mxu0 %v481_v43  ;;  %v564_v39 = vld [vmem:[#allocation2 + $0xf20] sm:$0xff]  ;;  %v579_v42 = vld [vmem:[#allocation2 + $0xf98] sm:$0xff] }
 0x11e   :  { %2505 = vmatprep.subr.mxu1 %v513_v44  ;;  %2471 = vmatpush3.msra.mxu0 %v465_v46  ;;  %v531_v43 = vld [vmem:[#allocation2 + $0xe18] sm:$0xff]  ;;  %v578_v46 = vld [vmem:[#allocation2 + $0xf90] sm:$0xff]  ;;  %p2743_p9 = por %p2742_p8, %p2741_p7 }
 0x11f   :  { %2506 = vmatpush3.msra.mxu1 %v497_v47  ;;  %2472 = vmatprep.subr.mxu0 %v480_v48  ;;  %v563_v44 = vld [vmem:[#allocation2 + $0xf18] sm:$0xff]  ;;  %v733_v47 = vrot.slane %v79_v33, %v2816_v51  ;;  %v530_v48 = vld [vmem:[#allocation2 + $0xe10] sm:$0xff] }
 0x120   :  { %2507 = vmatprep.subr.mxu1 %v512_v49  ;;  %2473 = vmatpush3.msra.mxu0 %v464_v52  ;;  %v562_v49 = vld [vmem:[#allocation2 + $0xf10] sm:$0xff]  ;;  %v545_v52 = vld [vmem:[#allocation2 + $0xe88] sm:$0xff]  ;;  %p2744_p10 = pnand %p2743_p9, %p2737_p6 }
 0x121   :  { %1679 = vmatprep.mubr.f32.mxu0 %v724_v50  ;;  %2508 = vmatpush3.msra.mxu1 %v496_v53  ;;  %v577_v53 = vld [vmem:[#allocation2 + $0xf88] sm:$0xff] }
 0x122   :  { %1680 = vmatmul.mubr.f32.vlgmr.msra.gmra.mxu0 %v716_v40  ;;  %1749 = vmatprep.mubr.f32.mxu1 %v725_v54  ;;  %v726_v40 = vcombine.high %v79_v33, %v79_v33  ;;  %v529_v54 = vld [vmem:[#allocation2 + $0xe08] sm:$0xff] }
 0x123   :  { %2512 = vmatprep.subr.mxu0 %v559_v55  ;;  %2547 = vmatprep.subr.mxu1 %v591_v56  ;;  %v561_v55 = vld [vmem:[#allocation2 + $0xf08] sm:$0xff]  ;;  %v544_v56 = vld [vmem:[#allocation2 + $0xe80] sm:$0xff] }
 0x124   :  { %1750 = vmatmul.mubr.f32.vlgmr.msra.gmra.mxu1 %v723_v45  ;;  %2513 = vmatpush3.msra.mxu0 %v543_v57  ;;  %v546_v45 = vld [vmem:[#allocation2 + $0xe90] sm:$0xff]  ;;  %v740_v50 = vrot.slane %v726_v40, %v2816_v51  ;;  %v576_v57 = vld [vmem:[#allocation2 + $0xf80] sm:$0xff] }
 0x125   :  { %2548 = vmatpush3.msra.mxu1 %v575_v58  ;;  %2514 = vmatprep.subr.mxu0 %v558_v59  ;;  %v741_v58 = vcombine.high %v733_v47, %v733_v47  ;;  %v528_v59 = vld [vmem:[#allocation2 + $0xe00] sm:$0xff] }
 0x126   :  { %2549 = vmatprep.subr.mxu1 %v590_v60  ;;  %2515 = vmatpush3.msra.mxu0 %v542_v61  ;;  %v742_v60 = vcombine.high %v740_v50, %v740_v50  ;;  %v560_v51 = vld [vmem:[#allocation2 + $0xf00] sm:$0xff] }
 0x127   :  { %2550 = vmatpush3.msra.mxu1 %v574_v62  ;;  %2516 = vmatprep.subr.mxu0 %v557_v63  ;;  %v1911_v61 = vld [vmem:[#allocation7 + $0x78] sm:$0xff]  ;;  %v2771_v62 = vmov 0.0   ;;  %v1910_v63 = vld [vmem:[#allocation7 + $0x70] sm:$0xff] }
 0x128   :  { %2551 = vmatprep.subr.mxu1 %v589_v0  ;;  %2517 = vmatpush3.msra.mxu0 %v541_v1  ;;  %v1909_v0 = vld [vmem:[#allocation7 + $0x68] sm:$0xff]  ;;  %v1908_v1 = vld [vmem:[#allocation7 + $0x60] sm:$0xff] }
 0x129   :  { %2552 = vmatpush3.msra.mxu1 %v573_v2  ;;  %2518 = vmatprep.subr.mxu0 %v556_v3  ;;  %v1907_v2 = vld [vmem:[#allocation7 + $0x58] sm:$0xff]  ;;  %v1906_v3 = vld [vmem:[#allocation7 + $0x50] sm:$0xff] }
 0x12a   :  { %2553 = vmatprep.subr.mxu1 %v588_v4  ;;  %2519 = vmatpush3.msra.mxu0 %v540_v5  ;;  %v1905_v4 = vld [vmem:[#allocation7 + $0x48] sm:$0xff]  ;;  %v1904_v5 = vld [vmem:[#allocation7 + $0x40] sm:$0xff] }
 0x12b   :  { %2554 = vmatpush3.msra.mxu1 %v572_v6  ;;  %2520 = vmatprep.subr.mxu0 %v555_v7  ;;  %v1903_v6 = vld [vmem:[#allocation7 + $0x38] sm:$0xff]  ;;  %v1902_v7 = vld [vmem:[#allocation7 + $0x30] sm:$0xff] }
 0x12c   :  { %2555 = vmatprep.subr.mxu1 %v587_v8  ;;  %2521 = vmatpush3.msra.mxu0 %v539_v9  ;;  %v1901_v8 = vld [vmem:[#allocation7 + $0x28] sm:$0xff]  ;;  %v1900_v9 = vld [vmem:[#allocation7 + $0x20] sm:$0xff] }
 0x12d   :  { %2556 = vmatpush3.msra.mxu1 %v571_v10  ;;  %2522 = vmatprep.subr.mxu0 %v554_v11  ;;  %v1899_v10 = vld [vmem:[#allocation7 + $0x18] sm:$0xff]  ;;  %v1898_v11 = vld [vmem:[#allocation7 + $0x10] sm:$0xff] }
 0x12e   :  { %2557 = vmatprep.subr.mxu1 %v586_v12  ;;  %2523 = vmatpush3.msra.mxu0 %v538_v13  ;;  %v1897_v12 = vld [vmem:[#allocation7 + $0x8] sm:$0xff]  ;;  %v1896_v13 = vld [vmem:[#allocation7] sm:$0xff] }
 0x12f   :  { %2558 = vmatpush3.msra.mxu1 %v570_v14  ;;  %2524 = vmatprep.subr.mxu0 %v553_v15  ;;  %v2054_v14 = vpop.f32.mrf.mxu0  ;;  %v2089_v15 = vpop.f32.mrf.mxu1 }
 0x130   :  { %2559 = vmatprep.subr.mxu1 %v585_v16  ;;  %2525 = vmatpush3.msra.mxu0 %v537_v17 }
 0x131   :  { %2560 = vmatpush3.msra.mxu1 %v569_v18  ;;  %2526 = vmatprep.subr.mxu0 %v552_v19  ;;  %v2055_v16 = vpop.f32.mrf.mxu0  ;;  %v2020_v19 = vld [vmem:[#allocation5] ss:$0 sm:$0xff] }
 0x132   :  { %2561 = vmatprep.subr.mxu1 %v584_v20  ;;  %2527 = vmatpush3.msra.mxu0 %v536_v21  ;;  %v2056_v18 = vadd.f32 %v2055_v16, %v2054_v14  ;;  %v2090_v20 = vpop.f32.mrf.mxu1  ;;  %v2021_v16 = vld [vmem:[#allocation8] ss:$0 sm:$0xff] }
 0x133   :  { %2562 = vmatpush3.msra.mxu1 %v568_v22  ;;  %2528 = vmatprep.subr.mxu0 %v551_v23 }
 0x134   :  { %2563 = vmatprep.subr.mxu1 %v583_v24  ;;  %2529 = vmatpush3.msra.mxu0 %v535_v25  ;;  %v842_v23 = vadd.f32 %v2056_v18, %v2020_v19  ;;  %v2091_v24 = vadd.f32 %v2090_v20, %v2089_v15 }
 0x135   :  { %2564 = vmatpush3.msra.mxu1 %v567_v26  ;;  %2530 = vmatprep.subr.mxu0 %v550_v27 }
 0x136   :  { %2565 = vmatprep.subr.mxu1 %v582_v28  ;;  %2531 = vmatpush3.msra.mxu0 %v534_v29  ;;  %v912_v28 = vadd.f32 %v2091_v24, %v842_v23 }
 0x137   :  { %2566 = vmatpush3.msra.mxu1 %v566_v30  ;;  %2532 = vmatprep.subr.mxu0 %v549_v31 }
 0x138   :  { %2567 = vmatprep.subr.mxu1 %v581_v32  ;;  %2533 = vmatpush3.msra.mxu0 %v533_v34  ;;  %v2124_v17 = vpop.f32.mrf.mxu0 }
 0x139   :  { %2568 = vmatpush3.msra.mxu1 %v565_v35  ;;  %2534 = vmatprep.subr.mxu0 %v548_v36 }
 0x13a   :  { %2569 = vmatprep.subr.mxu1 %v580_v37  ;;  %2535 = vmatpush3.msra.mxu0 %v532_v38  ;;  %v2159_v21 = vpop.f32.mrf.mxu1  ;;  %v2125_v22 = vpop.f32.mrf.mxu0 }
 0x13b   :  { %2570 = vmatpush3.msra.mxu1 %v564_v39  ;;  %2536 = vmatprep.subr.mxu0 %v547_v41  ;;  %v2126_v26 = vadd.f32 %v2125_v22, %v2124_v17 }
 0x13c   :  { %2571 = vmatprep.subr.mxu1 %v579_v42  ;;  %2537 = vmatpush3.msra.mxu0 %v531_v43  ;;  %v2160_v27 = vpop.f32.mrf.mxu1 }
 0x13d   :  { %2572 = vmatpush3.msra.mxu1 %v563_v44  ;;  %2538 = vmatprep.subr.mxu0 %v546_v45  ;;  %v982_v31 = vadd.f32 %v2126_v26, %v912_v28  ;;  %v2161_v32 = vadd.f32 %v2160_v27, %v2159_v21 }
 0x13e   :  { %2573 = vmatprep.subr.mxu1 %v578_v46  ;;  %2539 = vmatpush3.msra.mxu0 %v530_v48 }
 0x13f   :  { %2574 = vmatpush3.msra.mxu1 %v562_v49  ;;  %2540 = vmatprep.subr.mxu0 %v545_v52  ;;  %v1052_v36 = vadd.f32 %v2161_v32, %v982_v31 }
 0x140   :  { %2575 = vmatprep.subr.mxu1 %v577_v53  ;;  %2541 = vmatpush3.msra.mxu0 %v529_v54 }
 0x141   :  { %2576 = vmatpush3.msra.mxu1 %v561_v55  ;;  %2542 = vmatprep.subr.mxu0 %v544_v56 }
 0x142   :  { %2577 = vmatprep.subr.mxu1 %v576_v57  ;;  %2543 = vmatpush3.msra.mxu0 %v528_v59 }
 0x143   :  { %1819 = vmatprep.mubr.f32.mxu0 %v741_v58  ;;  %2578 = vmatpush3.msra.mxu1 %v560_v51 }
 0x144   :  { %1889 = vmatprep.mubr.f32.mxu1 %v742_v60  ;;  %1820 = vmatmul.mubr.f32.vlgmr.msra.gmra.mxu0 %v733_v47 }
 0x145   :  { %1890 = vmatmul.mubr.f32.vlgmr.msra.gmra.mxu1 %v740_v50  ;;  %2599 = vmatprep.subr.mxu0 %v2771_v62 }
 0x146   :  { %2600 = vmatpush3.msra.mxu0 %v1911_v61  ;;  %2631 = vmatprep.mubr.msk.f32.mxu0 %vm2772_vm0, %v2771_v62 }
 0x147   :  { %2601 = vmatprep.subr.mxu0 %v2771_v62 }
 0x148   :  { %2602 = vmatpush3.msra.mxu0 %v1910_v63 }
 0x149   :  { %2603 = vmatprep.subr.mxu0 %v2771_v62 }
 0x14a   :  { %2604 = vmatpush3.msra.mxu0 %v1909_v0 }
 0x14b   :  { %2605 = vmatprep.subr.mxu0 %v2771_v62 }
 0x14c   :  { %2606 = vmatpush3.msra.mxu0 %v1908_v1 }
 0x14d   :  { %2607 = vmatprep.subr.mxu0 %v2771_v62 }
 0x14e   :  { %2608 = vmatpush3.msra.mxu0 %v1907_v2 }
 0x14f   :  { %2609 = vmatprep.subr.mxu0 %v2771_v62 }
 0x150   :  { %2610 = vmatpush3.msra.mxu0 %v1906_v3 }
 0x151   :  { %2611 = vmatprep.subr.mxu0 %v2771_v62 }
 0x152   :  { %2612 = vmatpush3.msra.mxu0 %v1905_v4 }
 0x153   :  { %2613 = vmatprep.subr.mxu0 %v2771_v62 }
 0x154   :  { %2614 = vmatpush3.msra.mxu0 %v1904_v5 }
 0x155   :  { %2615 = vmatprep.subr.mxu0 %v2771_v62 }
 0x156   :  { %2616 = vmatpush3.msra.mxu0 %v1903_v6 }
 0x157   :  { %2617 = vmatprep.subr.mxu0 %v2771_v62 }
 0x158   :  { %2618 = vmatpush3.msra.mxu0 %v1902_v7 }
 0x159   :  { %2619 = vmatprep.subr.mxu0 %v2771_v62 }
 0x15a   :  { %2620 = vmatpush3.msra.mxu0 %v1901_v8  ;;  %v2194_v25 = vpop.f32.mrf.mxu0 }
 0x15b   :  { %2621 = vmatprep.subr.mxu0 %v2771_v62 }
 0x15c   :  { %2622 = vmatpush3.msra.mxu0 %v1900_v9  ;;  %v2229_v29 = vpop.f32.mrf.mxu1  ;;  %v2195_v30 = vpop.f32.mrf.mxu0 }
 0x15d   :  { %2623 = vmatprep.subr.mxu0 %v2771_v62  ;;  %v2196_v34 = vadd.f32 %v2195_v30, %v2194_v25 }
 0x15e   :  { %2624 = vmatpush3.msra.mxu0 %v1899_v10  ;;  %v2230_v35 = vpop.f32.mrf.mxu1 }
 0x15f   :  { %2625 = vmatprep.subr.mxu0 %v2771_v62  ;;  %v1122_v39 = vadd.f32 %v2196_v34, %v1052_v36  ;;  %v2231_v40 = vadd.f32 %v2230_v35, %v2229_v29 }
 0x160   :  { %2626 = vmatpush3.msra.mxu0 %v1898_v11 }
 0x161   :  { %2627 = vmatprep.subr.mxu0 %v2771_v62  ;;  %v1192_v44 = vadd.f32 %v2231_v40, %v1122_v39 }
 0x162   :  { %2628 = vmatpush3.msra.mxu0 %v1897_v12 }
 0x163   :  { %2629 = vmatprep.subr.mxu0 %v2771_v62 }
 0x164   :  { %2630 = vmatpush3.msra.mxu0 %v1896_v13 }
 0x17c   :  { %v2264_v33 = vpop.f32.mrf.mxu0 }
 0x17e   :  { %v2299_v37 = vpop.f32.mrf.mxu1  ;;  %v2265_v38 = vpop.f32.mrf.mxu0 }
 0x17f   :  { %v2266_v42 = vadd.f32 %v2265_v38, %v2264_v33 }
 0x180   :  { %v2300_v43 = vpop.f32.mrf.mxu1 }
 0x181   :  { %v1262_v47 = vadd.f32 %v2266_v42, %v1192_v44  ;;  %v2301_v48 = vadd.f32 %v2300_v43, %v2299_v37 }
 0x183   :  { %v1332_v53 = vadd.f32 %v2301_v48, %v1262_v47 }
 0x19e   :  { %v2334_v41 = vpop.f32.mrf.mxu0 }
 0x1a0   :  { %v2369_v45 = vpop.f32.mrf.mxu1  ;;  %v2335_v46 = vpop.f32.mrf.mxu0 }
 0x1a1   :  { %v2336_v50 = vadd.f32 %v2335_v46, %v2334_v41 }
 0x1a2   :  { %v2370_v52 = vpop.f32.mrf.mxu1 }
 0x1a3   :  { %v1402_v56 = vadd.f32 %v2336_v50, %v1332_v53  ;;  %v2371_v57 = vadd.f32 %v2370_v52, %v2369_v45 }
 0x1a5   :  { %v1472_v51 = vadd.f32 %v2371_v57, %v1402_v56 }
 0x1c0   :  { %v2404_v49 = vpop.f32.mrf.mxu0 }
 0x1c2   :  { %v2439_v54 = vpop.f32.mrf.mxu1  ;;  %v2405_v55 = vpop.f32.mrf.mxu0 }
 0x1c3   :  { %v2406_v59 = vadd.f32 %v2405_v55, %v2404_v49 }
 0x1c4   :  { %v2440_v60 = vpop.f32.mrf.mxu1 }
 0x1c5   :  { %v1542_v63 = vadd.f32 %v2406_v59, %v1472_v51  ;;  %v2441_v0 = vadd.f32 %v2440_v60, %v2439_v54 }
 0x1c7   :  { %v1612_v3 = vadd.f32 %v2441_v0, %v1542_v63 }
 0x1e2   :  { %v2474_v58 = vpop.f32.mrf.mxu0 }
 0x1e4   :  { %v2509_v61 = vpop.f32.mrf.mxu1  ;;  %v2475_v62 = vpop.f32.mrf.mxu0 }
 0x1e5   :  { %v2476_v1 = vadd.f32 %v2475_v62, %v2474_v58 }
 0x1e6   :  { %v2510_v2 = vpop.f32.mrf.mxu1 }
 0x1e7   :  { %v1682_v4 = vadd.f32 %v2476_v1, %v1612_v3  ;;  %v2511_v5 = vadd.f32 %v2510_v2, %v2509_v61 }
 0x1e9   :  { %v1752_v10 = vadd.f32 %v2511_v5, %v1682_v4 }
 0x204   :  { %v2544_v6 = vpop.f32.mrf.mxu0 }
 0x205   :  { %v2579_v7 = vpop.f32.mrf.mxu1 }
 0x206   :  { %v2545_v8 = vpop.f32.mrf.mxu0 }
 0x207   :  { %v2580_v9 = vpop.f32.mrf.mxu1  ;;  %v2546_v11 = vadd.f32 %v2545_v8, %v2544_v6 }
 0x208   :  { %v2581_v13 = vadd.f32 %v2580_v9, %v2579_v7 }
 0x209   :  { %v1822_v12 = vadd.f32 %v2546_v11, %v1752_v10 }
 0x20b   :  { %v1892_v14 = vadd.f32 %v2581_v13, %v1822_v12 }
 0x20d   :  { %v1895_v15 = vmax.f32 %v1892_v14, 0.0 }
 0x20f   :  { %2632 = vmatmul.mubr.f32.vlgmr.msra.gmra.mxu0 %v1895_v15 }
 0x2cf   :  { %v1985_v17 = vpop.f32.mrf.mxu0 }
 0x2d0   :  { %v1986_v18 = vadd.f32 %v2021_v16, %v1985_v17 }
 0x2d1   :  { %v2633_v19 = vpop.f32.mrf.mxu0 }
 0x2d2   :  { %v1990_v20 = vsel %vm1989_vm1, %v1986_v18, -inf }
 0x2d3   :  { %1991 = vmax.xlane.f32.xlu0 %v1990_v20 }
 0x35c   :  { %v1992_v21 = vpop.xlane.xlu0 %1991 }
 0x35d   :  { %v1993_v22 = vsub.f32 %v1986_v18, %v1992_v21 }
 0x35f   :  { %v1994_v23 = vmul.f32 1.442695, %v1993_v22 }
 0x361   :  { %2652 = vpow2.f32 %v1994_v23 }
 0x36e   :  { %v2653_v24 = vpop.eup %2652 }
 0x36f   :  { %v1996_v25 = vsel %vm1989_vm1, %v2653_v24, 0.0 }
 0x370   :  { %1997 = vadd.xlane.f32.xlu0 %v1996_v25 }
 0x3f9   :  { %v1998_v26 = vpop.xlane.xlu0 %1997 }
 0x3fa   :  { %2654 = vlog2.f32 %v1998_v26 }
 0x407   :  { %v2655_v27 = vpop.eup %2654 }
 0x408   :  { %v2000_v28 = vmul.f32 0.6931472, %v2655_v27 }
 0x40a   :  { %v2001_v29 = vsub.f32 %v1993_v22, %v2000_v28 }
 0x40c   :  { %2002 = vst [vmem:[#allocation10] sm:$0x3] %v2001_v29 }
 0x40d   :  { %2747 = shalt.err (!%p2744_p10)
}
 0x40e   :  { %2012 = dma.vmem_to_hbm [thread:$0]  %s2010_s29, 32, %s2866_s5, [#allocation4]  }
 0x40f   :  { %2762 = dma.done.wait [#allocation4], 32  }
 0x410   :  { %2763 = vsyncadd [#allocation4], 4294967264 }
 0x411   :  { %2016 = vsyncpa [#allocation3], 1 }
 0x412   :  { %2017 = vsyncpa [#allocation6], 1 }
 0x413   :  { %2018 = vsyncpa [#allocation9], 1 }
 0x414   :  { %2019 = vsyncpa [#allocation4], 1 }

// kernel: my_network_forward.2
= control target key start
LH: loop header
LB: loop body
LE: loop exit
PB: predicated region body
PF: predicated region fallthrough
CT: control target
= control target key end

     0   :  { %10 = vsyncpa [#allocation3], 0  ;;  %s3001_s0 = inlined_call_operand.vmem [shape: f32[2,28,28], index: 0, kind: input, shape index: {}]   ;;  %s3002_s1 = inlined_call_operand.hbm [shape: f32[5,28,256], index: 1, kind: input, shape index: {}]   ;;  %s3003_s2 = inlined_call_operand.hbm [shape: f32[1,256], index: 2, kind: input, shape index: {}]   ;;  %s3004_s3 = inlined_call_operand.hbm [shape: f32[5,246,256], index: 3, kind: input, shape index: {}]   ;;  %s3005_s4 = inlined_call_operand.hbm [shape: f32[1,256], index: 4, kind: input, shape index: {}]   ;;  %s3006_s5 = inlined_call_operand.vmem [shape: f32[2,16,256], index: 5, kind: output, shape index: {}]  }
   0x1   :  { %11 = vsyncpa [#allocation5], 0 }
   0x2   :  { %12 = vsyncpa [#allocation8], 0  ;;  %s2313_s18 = smov [#allocation4]   ;;  %s2314_s20 = smov [#allocation2]  }
   0x3   :  { %s33_s19 = sshll.u32 %s2313_s18, 4  ;;  %s20_s21 = sshll.u32 %s2314_s20, 4  ;;  %s34_s19 = int_to_ptr.vmem [resolvable:$true] %s33_s19  ;;  %s21_s21 = int_to_ptr.vmem [resolvable:$true] %s20_s21 }
   0x4   :  { %s2235_s22 = scalar_lea.vmem %s34_s19, 32  ;;  %p2240_p1 = scmp.lt.s32.totalorder %s34_s19, %s34_s19 }
   0x5   :  { %p2236_p0 = scmp.ne.s32.totalorder %s34_s19, %s2235_s22  ;;  %p2241_p2 = scmp.lt.s32.totalorder %s2235_s22, %s2235_s22 }
   0x7   :  { %p2242_p3 = por %p2241_p2, %p2240_p1 }
   0x9   :  { %p2243_p4 = pnand %p2242_p3, %p2236_p0 }
   0xb   :  { %2246 = shalt.err (!%p2243_p4)
}
   0xc   :  { %36 = dma.hbm_to_vmem [thread:$0]  %s3003_s2, 32, %s34_s19, [#allocation5]  }
   0xd   :  { %s2255_s25 = scalar_lea.vmem %s21_s21, 5120  ;;  %p2260_p6 = scmp.lt.s32.totalorder %s21_s21, %s21_s21 }
   0xe   :  { %p2256_p5 = scmp.ne.s32.totalorder %s21_s21, %s2255_s25  ;;  %p2261_p7 = scmp.lt.s32.totalorder %s2255_s25, %s2255_s25 }
  0x10   :  { %p2262_p8 = por %p2261_p7, %p2260_p6 }
  0x12   :  { %p2263_p9 = pnand %p2262_p8, %p2256_p5 }
  0x14   :  { %2266 = shalt.err (!%p2263_p9)
}
  0x15   :  { %s2315_s26 = smov 256   ;;  %s2316_s27 = smov 16  }
  0x16   :  { %26 = dma.hbm_to_vmem [thread:$0]  %s3002_s1, 5120, %s21_s21, [#allocation3], %s2315_s26, %s2315_s26, %s2316_s27  }
  0x17   :  { %s2317_s30 = smov [#allocation6]   ;;  %s2318_s7 = smov [#allocation7]  }
  0x18   :  { %s42_s6 = sshll.u32 %s2317_s30, 4  ;;  %s55_s8 = sshll.u32 %s2318_s7, 4  ;;  %s43_s6 = int_to_ptr.vmem [resolvable:$true] %s42_s6  ;;  %s56_s8 = int_to_ptr.vmem [resolvable:$true] %s55_s8 }
  0x19   :  { %s2275_s2 = scalar_lea.vmem %s43_s6, 39680  ;;  %p2280_p11 = scmp.lt.s32.totalorder %s43_s6, %s43_s6 }
  0x1a   :  { %p2276_p10 = scmp.ne.s32.totalorder %s43_s6, %s2275_s2  ;;  %p2281_p12 = scmp.lt.s32.totalorder %s2275_s2, %s2275_s2 }
  0x1c   :  { %p2282_p13 = por %p2281_p12, %p2280_p11 }
  0x1e   :  { %p2283_p0 = pnand %p2282_p13, %p2276_p10 }
  0x20   :  { %2286 = shalt.err (!%p2283_p0)
}
  0x21   :  { %48 = dma.hbm_to_vmem [thread:$0]  %s3004_s3, 39680, %s43_s6, [#allocation5], %s2315_s26, %s2315_s26, %s2316_s27  }
  0x22   :  { %s2295_s11 = scalar_lea.vmem %s56_s8, 32  ;;  %p2300_p2 = scmp.lt.s32.totalorder %s56_s8, %s56_s8 }
  0x23   :  { %p2296_p1 = scmp.ne.s32.totalorder %s56_s8, %s2295_s11  ;;  %p2301_p3 = scmp.lt.s32.totalorder %s2295_s11, %s2295_s11 }
  0x25   :  { %p2302_p4 = por %p2301_p3, %p2300_p2 }
  0x27   :  { %p2303_p5 = pnand %p2302_p4, %p2296_p1 }
  0x29   :  { %2306 = shalt.err (!%p2303_p5)
}
  0x2a   :  { %58 = dma.hbm_to_vmem [thread:$0]  %s3005_s4, 32, %s56_s8, [#allocation8]  }
  0x2b   :  { %2307 = dma.done.wait [#allocation3], 5120  }
  0x2c   :  { %2308 = vsyncadd [#allocation3], 4294962176 }
  0x2d   :  { %2309 = dma.done.wait [#allocation5], 39712  }
  0x2e   :  { %2310 = vsyncadd [#allocation5], 4294927584 }
  0x2f   :  { %2311 = dma.done.wait [#allocation8], 32  }
  0x30   :  { %2312 = vsyncadd [#allocation8], 4294967264  ;;  %v2319_v0 = vmov 0.0   ;;  %vm133_vm0 = vcmask 1043456   ;;  %v119_v1 = vld [vmem:[#allocation2 + $0x78] sm:$0xf] }
  0x31   :  { %204 = vmatprep.mubr.f32.mxu0 %v2319_v0  ;;  %2078 = vst [vmem:[%s3006_s5 + $0x8] sm:$0xff] %v2319_v0  ;;  %2079 = vst [vmem:[%s3006_s5 + $0x10] sm:$0xff] %v2319_v0  ;;  %347 = vmatprep.mubr.f32.mxu1 %v2319_v0  ;;  %v118_v2 = vld [vmem:[#allocation2 + $0x70] sm:$0xf]  ;;  %v117_v3 = vld [vmem:[#allocation2 + $0x68] sm:$0xff]  ;;  %vm92_vm1 = vcmask 1046528  }
  0x32   :  { %2080 = vst [vmem:[%s3006_s5 + $0x18] sm:$0xff] %v2319_v0  ;;  %2082 = vst [vmem:[%s3006_s5 + $0x28] sm:$0xff] %v2319_v0  ;;  %2126 = vmatprep.subr.msk.mxu0 %vm133_vm0, %v119_v1  ;;  %v116_v4 = vld [vmem:[#allocation2 + $0x60] sm:$0xff]  ;;  %v115_v5 = vld [vmem:[#allocation2 + $0x58] sm:$0xff]  ;;  %vm120_vm2 = vcmask 228352   ;;  %vm515_vm3 = vcmask 1044480  }
  0x33   :  { %2083 = vst [vmem:[%s3006_s5 + $0x30] sm:$0xff] %v2319_v0  ;;  %2084 = vst [vmem:[%s3006_s5 + $0x38] sm:$0xff] %v2319_v0  ;;  %2127 = vmatpush1.msk.msra.mxu0 %vm133_vm0, %v118_v2  ;;  %v114_v6 = vld [vmem:[#allocation2 + $0x50] sm:$0xff]  ;;  %v113_v7 = vld [vmem:[#allocation2 + $0x48] sm:$0xff]  ;;  %vm360_vm4 = vcmask 1045504   ;;  %vm942_vm5 = vcmask 965632  }
  0x34   :  { %v2395_v8 = vld [vmem:[%s3001_s0] sm:$0xff]  ;;  %166 = vmatprep.subr.mxu0 %v117_v3  ;;  %v2400_v9 = vld [vmem:[%s3001_s0 + $0x8] sm:$0xff]  ;;  %v87_v11 = vld [vmem:[#allocation2 + $0x38] sm:$0xf]  ;;  %vm1384_vm6 = vcmask 1042432   ;;  %vm1576_vm7 = vcmask 1041408  }
  0x35   :  { %v93_v10 = vrot.slane %v2395_v8, 1  ;;  %v86_v12 = vld [vmem:[#allocation2 + $0x30] sm:$0xf]  ;;  %167 = vmatpush1.msra.mxu0 %v116_v4  ;;  %v94_v13 = vrot.slane %v2400_v9, 1  ;;  %v85_v15 = vld [vmem:[#allocation2 + $0x28] sm:$0xff]  ;;  %v84_v16 = vld [vmem:[#allocation2 + $0x20] sm:$0xff]  ;;  %2200 = vmatprep.subr.msk.mxu1 %vm133_vm0, %v87_v11 }
  0x36   :  { %v2407_v14 = vld [vmem:[%s3001_s0 + $0x10] sm:$0xff]  ;;  %168 = vmatprep.subr.mxu0 %v115_v5  ;;  %v112_v17 = vld [vmem:[#allocation2 + $0x40] sm:$0xff]  ;;  %2204 = vmatpush1.msk.msra.mxu1 %vm133_vm0, %v86_v12  ;;  %v83_v20 = vld [vmem:[#allocation2 + $0x18] sm:$0xff]  ;;  %v670_v33 = vrot.slane %v2395_v8, 4  ;;  %v671_v36 = vrot.slane %v2400_v9, 4  ;;  %v516_v56 = vrot.slane %v2395_v8, 3 }
  0x37   :  { %169 = vmatpush1.msra.mxu0 %v114_v6  ;;  %v95_v18 = vsel %vm92_vm1, %v93_v10, %v94_v13  ;;  %v96_v19 = vrot.slane %v2407_v14, 1  ;;  %2201 = vmatprep.subr.mxu1 %v85_v15  ;;  %v2416_v21 = vld [vmem:[%s3001_s0 + $0x18] sm:$0xf]  ;;  %v82_v22 = vld [vmem:[#allocation2 + $0x10] sm:$0xff]  ;;  %v81_v23 = vld [vmem:[#allocation2 + $0x8] sm:$0xff]  ;;  %v673_v37 = vrot.slane %v2407_v14, 4 }
  0x38   :  { %170 = vmatprep.subr.mxu0 %v113_v7  ;;  %2205 = vmatpush1.msra.mxu1 %v84_v16  ;;  %v98_v25 = vrot.slane %v2416_v21, 1  ;;  %v2427_v26 = vld [vmem:[%s3001_s0 + $0x20] sm:$0xff]  ;;  %v2432_v27 = vld [vmem:[%s3001_s0 + $0x28] sm:$0xff]  ;;  %v2442_v32 = vld [vmem:[%s3001_s0 + $0x30] sm:$0xff]  ;;  %v675_v39 = vrot.slane %v2416_v21, 4  ;;  %v2460_v42 = vsel %vm133_vm0, %v670_v33, %v671_v36  ;;  %v517_v57 = vrot.slane %v2400_v9, 3 }
  0x39   :  { %171 = vmatpush1.msra.mxu0 %v112_v17  ;;  %2202 = vmatprep.subr.mxu1 %v83_v20  ;;  %v97_v24 = vsel %vm92_vm1, %v94_v13, %v96_v19  ;;  %v80_v28 = vld [vmem:[#allocation2] sm:$0xff]  ;;  %v104_v30 = vrot.slane %v2427_v26, 1  ;;  %v105_v31 = vrot.slane %v2432_v27, 1  ;;  %v2448_v34 = vld [vmem:[%s3001_s0 + $0x38] sm:$0xf]  ;;  %v677_v40 = vrot.slane %v2427_v26, 4 }
  0x3a   :  { %2128 = vmatmul.mubr.msk.f32.vlgmr.msra.gmra.mxu0 %vm120_vm2, %v95_v18  ;;  %2134 = vmatprep.subr.msk.mxu0 %vm133_vm0, %v87_v11  ;;  %v99_v29 = vsel %vm92_vm1, %v96_v19, %v98_v25  ;;  %v383_v35 = vld [vmem:[#allocation2 + $0xb8] sm:$0xf]  ;;  %v678_v41 = vrot.slane %v2432_v27, 4  ;;  %v2463_v43 = vsel %vm133_vm0, %v671_v36, %v673_v37  ;;  %v680_v44 = vrot.slane %v2442_v32, 4  ;;  %v537_v48 = vld [vmem:[#allocation2 + $0xf0] sm:$0xf] }
  0x3b   :  { %2135 = vmatpush1.msk.msra.mxu0 %vm133_vm0, %v86_v12  ;;  %210 = vmatprep.mubr.f32.mxu0 %v2319_v0  ;;  %v538_v38 = vld [vmem:[#allocation2 + $0xf8] sm:$0xf]  ;;  %v682_v45 = vrot.slane %v2448_v34, 4  ;;  %v106_v46 = vsel %vm92_vm1, %v104_v30, %v105_v31  ;;  %v107_v47 = vrot.slane %v2442_v32, 1  ;;  %v2472_v49 = vsel %vm133_vm0, %v673_v37, %v675_v39  ;;  %v536_v51 = vld [vmem:[#allocation2 + $0xe8] sm:$0xff]  ;;  %v535_v54 = vld [vmem:[#allocation2 + $0xe0] sm:$0xff] }
  0x3c   :  { %285 = vmatprep.subr.mxu0 %v85_v15  ;;  %2206 = vmatpush1.msra.mxu1 %v82_v22  ;;  %v2475_v50 = vsel %vm133_vm0, %v677_v40, %v678_v41  ;;  %v2479_v52 = vsel %vm133_vm0, %v678_v41, %v680_v44  ;;  %v534_v55 = vld [vmem:[#allocation2 + $0xd8] sm:$0xff]  ;;  %v109_v59 = vrot.slane %v2448_v34, 1  ;;  %v533_v60 = vld [vmem:[#allocation2 + $0xd0] sm:$0xff]  ;;  %v532_v61 = vld [vmem:[#allocation2 + $0xc8] sm:$0xff]  ;;  %v518_v63 = vsel %vm515_vm3, %v516_v56, %v517_v57  ;;  %s2320_s0 = smov 118   ;;  %s2321_s12 = smov 108  }
  0x3d   :  { %286 = vmatpush1.msra.mxu0 %v84_v16  ;;  %2203 = vmatprep.subr.mxu1 %v81_v23  ;;  %v2482_v53 = vsel %vm133_vm0, %v680_v44, %v682_v45  ;;  %v108_v58 = vsel %vm92_vm1, %v105_v31, %v107_v47  ;;  %v531_v62 = vld [vmem:[#allocation2 + $0xc0] sm:$0xff]  ;;  %v519_v1 = vrot.slane %v2407_v14, 3  ;;  %v521_v4 = vrot.slane %v2416_v21, 3  ;;  %v382_v5 = vld [vmem:[#allocation2 + $0xb0] sm:$0xf]  ;;  %v381_v6 = vld [vmem:[#allocation2 + $0xa8] sm:$0xff] }
  0x3e   :  { %2129 = vmatmul.mubr.msk.f32.gmra.mxu0 %vm120_vm2, %v97_v24  ;;  %287 = vmatprep.subr.mxu0 %v83_v20  ;;  %v110_v2 = vsel %vm92_vm1, %v107_v47, %v109_v59  ;;  %v380_v7 = vld [vmem:[#allocation2 + $0xa0] sm:$0xff]  ;;  %v523_v11 = vrot.slane %v2427_v26, 3  ;;  %v524_v12 = vrot.slane %v2432_v27, 3  ;;  %v379_v13 = vld [vmem:[#allocation2 + $0x98] sm:$0xff]  ;;  %v378_v15 = vld [vmem:[#allocation2 + $0x90] sm:$0xff]  ;;  %v526_v19 = vrot.slane %v2442_v32, 3 }
  0x3f   :  { %216 = vmatprep.mubr.f32.mxu0 %v2319_v0  ;;  %288 = vmatpush1.msra.mxu0 %v82_v22  ;;  %v520_v3 = vsel %vm515_vm3, %v517_v57, %v519_v1  ;;  %v522_v10 = vsel %vm515_vm3, %v519_v1, %v521_v4  ;;  %v377_v16 = vld [vmem:[#allocation2 + $0x88] sm:$0xff]  ;;  %v376_v17 = vld [vmem:[#allocation2 + $0x80] sm:$0xff]  ;;  %v692_v20 = vld [vmem:[#allocation2 + $0x138] sm:$0xf]  ;;  %v361_v24 = vrot.slane %v2395_v8, 2  ;;  %v362_v25 = vrot.slane %v2400_v9, 2 }
  0x40   :  { %2207 = vmatpush1.msra.mxu1 %v80_v28  ;;  %289 = vmatprep.subr.mxu0 %v81_v23  ;;  %v525_v18 = vsel %vm515_vm3, %v523_v11, %v524_v12  ;;  %v527_v22 = vsel %vm515_vm3, %v524_v12, %v526_v19  ;;  %v528_v23 = vrot.slane %v2448_v34, 3  ;;  %v691_v30 = vld [vmem:[#allocation2 + $0x130] sm:$0xf]  ;;  %v689_v31 = vld [vmem:[#allocation2 + $0x120] sm:$0xff]  ;;  %v688_v36 = vld [vmem:[#allocation2 + $0x118] sm:$0xff]  ;;  %v368_v40 = vrot.slane %v2427_v26, 2 }
  0x41   :  { %2140 = vmatmul.mubr.msk.f32.vlgmr.msra.gmra.mxu1 %vm120_vm2, %v2432_v27  ;;  %290 = vmatpush1.msra.mxu0 %v80_v28  ;;  %v687_v37 = vld [vmem:[#allocation2 + $0x110] sm:$0xff]  ;;  %v369_v41 = vrot.slane %v2432_v27, 2  ;;  %v371_v44 = vrot.slane %v2442_v32, 2  ;;  %v1131_v47 = vld [vmem:[#allocation6 + $0x2e0] sm:$0xff]  ;;  %v1024_v56 = vld [vmem:[#allocation6 + $0xb8] sm:$0xff]  ;;  %vm1590_vm8 = vcmask 1040384  }
  0x42   :  { %2130 = vmatmul.mubr.msk.f32.gmra.mxu0 %vm120_vm2, %v99_v29  ;;  %353 = vmatprep.mubr.f32.mxu1 %v2319_v0  ;;  %v529_v28 = vsel %vm515_vm3, %v526_v19, %v528_v23  ;;  %v363_v29 = vsel %vm360_vm4, %v361_v24, %v362_v25  ;;  %v1125_v57 = vld [vmem:[#allocation6 + $0x2b0] sm:$0xff]  ;;  %v1124_v59 = vld [vmem:[#allocation6 + $0x2a8] sm:$0xff]  ;;  %v1020_v1 = vld [vmem:[#allocation6 + $0x98] sm:$0xff]  ;;  %vm2048_vm9 = vcmask 883712   ;;  %vm2088_vm10 = vcmask 880640  }
  0x43   :  { %222 = vmatprep.mubr.f32.mxu0 %v2319_v0  ;;  %2142 = vmatprep.subr.msk.mxu0 %vm133_vm0, %v383_v35  ;;  %v366_v35 = vrot.slane %v2416_v21, 2  ;;  %v370_v21 = vsel %vm360_vm4, %v368_v40, %v369_v41  ;;  %v372_v45 = vsel %vm360_vm4, %v369_v41, %v371_v44  ;;  %v1120_v4 = vld [vmem:[#allocation6 + $0x288] sm:$0xff]  ;;  %v1016_v11 = vld [vmem:[#allocation6 + $0x78] sm:$0xff]  ;;  %v1117_v12 = vld [vmem:[#allocation6 + $0x270] sm:$0xff] }
  0x44   :  { %2150 = vmatprep.subr.msk.mxu1 %vm133_vm0, %v538_v38  ;;  %v685_v38 = vld [vmem:[#allocation2 + $0x100] sm:$0xff]  ;;  %v1011_v23 = vld [vmem:[#allocation6 + $0x50] sm:$0xff]  ;;  %v1112_v24 = vld [vmem:[#allocation6 + $0x248] sm:$0xff] }
  0x45   :  { %2141 = vmatmul.mubr.msk.f32.gmra.mxu1 %vm120_vm2, %v2442_v32  ;;  %v1032_v32 = vld [vmem:[#allocation6 + $0xf8] sm:$0xff]  ;;  %v1105_v41 = vld [vmem:[#allocation6 + $0x210] sm:$0xff] }
  0x46   :  { %2131 = vmatmul.mubr.msk.f32.gmra.mxu0 %vm120_vm2, %v106_v46  ;;  %2151 = vmatpush1.msk.msra.mxu1 %vm133_vm0, %v537_v48  ;;  %v1029_v46 = vld [vmem:[#allocation6 + $0xe0] sm:$0xff]  ;;  %v1028_v48 = vld [vmem:[#allocation6 + $0xd8] sm:$0xff] }
  0x47   :  { %228 = vmatprep.mubr.f32.mxu0 %v2319_v0  ;;  %583 = vmatprep.subr.mxu1 %v536_v51  ;;  %v1129_v51 = vld [vmem:[#allocation6 + $0x2d0] sm:$0xff]  ;;  %v1114_v19 = vld [vmem:[#allocation6 + $0x258] sm:$0xff] }
  0x48   :  { %584 = vmatpush1.msra.mxu1 %v535_v54  ;;  %621 = vmatprep.mubr.f32.mxu1 %v2319_v0  ;;  %v1025_v54 = vld [vmem:[#allocation6 + $0xc0] sm:$0xff]  ;;  %v1004_v40 = vld [vmem:[#allocation6 + $0x18] sm:$0xff] }
  0x49   :  { %585 = vmatprep.subr.mxu1 %v534_v55  ;;  %v1126_v55 = vld [vmem:[#allocation6 + $0x2b8] sm:$0xff] }
  0x4a   :  { %2132 = vmatmul.mubr.msk.f32.gmra.mxu0 %vm120_vm2, %v108_v58  ;;  %586 = vmatpush1.msra.mxu1 %v533_v60  ;;  %v1023_v58 = vld [vmem:[#allocation6 + $0xb0] sm:$0xff]  ;;  %v1022_v60 = vld [vmem:[#allocation6 + $0xa8] sm:$0xff] }
  0x4b   :  { %234 = vmatprep.mubr.f32.mxu0 %v2319_v0  ;;  %587 = vmatprep.subr.mxu1 %v532_v61  ;;  %v1123_v61 = vld [vmem:[#allocation6 + $0x2a0] sm:$0xff] }
  0x4c   :  { %588 = vmatpush1.msra.mxu1 %v531_v62  ;;  %v1021_v62 = vld [vmem:[#allocation6 + $0xa0] sm:$0xff] }
  0x4d   :  { %2152 = vmatmul.mubr.msk.f32.vlgmr.msra.gmra.mxu1 %vm120_vm2, %v518_v63  ;;  %v1122_v63 = vld [vmem:[#allocation6 + $0x298] sm:$0xff] }
  0x4e   :  { %2133 = vmatmul.mubr.msk.f32.gmra.mxu0 %vm120_vm2, %v110_v2  ;;  %627 = vmatprep.mubr.f32.mxu1 %v2319_v0  ;;  %v1121_v2 = vld [vmem:[#allocation6 + $0x290] sm:$0xff] }
  0x4f   :  { %323 = vmatprep.mubr.f32.mxu0 %v2319_v0 }
  0x51   :  { %2153 = vmatmul.mubr.msk.f32.gmra.mxu1 %vm120_vm2, %v520_v3  ;;  %v1019_v3 = vld [vmem:[#allocation6 + $0x90] sm:$0xff] }
  0x52   :  { %2136 = vmatmul.mubr.msk.f32.vlgmr.msra.gmra.mxu0 %vm120_vm2, %v2395_v8  ;;  %633 = vmatprep.mubr.f32.mxu1 %v2319_v0  ;;  %v364_v8 = vrot.slane %v2407_v14, 2 }
  0x53   :  { %2143 = vmatpush1.msk.msra.mxu0 %vm133_vm0, %v382_v5  ;;  %329 = vmatprep.mubr.f32.mxu0 %v2319_v0  ;;  %v1018_v5 = vld [vmem:[#allocation6 + $0x88] sm:$0xff] }
  0x54   :  { %428 = vmatprep.subr.mxu0 %v381_v6  ;;  %v365_v33 = vsel %vm360_vm4, %v362_v25, %v364_v8  ;;  %v367_v39 = vsel %vm360_vm4, %v364_v8, %v366_v35  ;;  %v1119_v6 = vld [vmem:[#allocation6 + $0x280] sm:$0xff]  ;;  %v1010_v25 = vld [vmem:[#allocation6 + $0x48] sm:$0xff]  ;;  %v1110_v8 = vld [vmem:[#allocation6 + $0x238] sm:$0xff] }
  0x55   :  { %429 = vmatpush1.msra.mxu0 %v380_v7  ;;  %2154 = vmatmul.mubr.msk.f32.gmra.mxu1 %vm120_vm2, %v522_v10  ;;  %v1017_v7 = vld [vmem:[#allocation6 + $0x80] sm:$0xff]  ;;  %v1118_v10 = vld [vmem:[#allocation6 + $0x278] sm:$0xff] }
  0x56   :  { %2137 = vmatmul.mubr.msk.f32.gmra.mxu0 %vm120_vm2, %v2400_v9  ;;  %430 = vmatprep.subr.mxu0 %v379_v13  ;;  %v690_v9 = vld [vmem:[#allocation2 + $0x128] sm:$0xff]  ;;  %v1015_v13 = vld [vmem:[#allocation6 + $0x70] sm:$0xff] }
  0x57   :  { %335 = vmatprep.mubr.f32.mxu0 %v2319_v0  ;;  %431 = vmatpush1.msra.mxu0 %v378_v15  ;;  %v1116_v15 = vld [vmem:[#allocation6 + $0x268] sm:$0xff] }
  0x58   :  { %432 = vmatprep.subr.mxu0 %v377_v16  ;;  %639 = vmatprep.mubr.f32.mxu1 %v2319_v0  ;;  %v1014_v16 = vld [vmem:[#allocation6 + $0x68] sm:$0xff] }
  0x59   :  { %433 = vmatpush1.msra.mxu0 %v376_v17  ;;  %2155 = vmatmul.mubr.msk.f32.gmra.mxu1 %vm120_vm2, %v525_v18  ;;  %v1115_v17 = vld [vmem:[#allocation6 + $0x260] sm:$0xff] }
  0x5a   :  { %2138 = vmatmul.mubr.msk.f32.gmra.mxu0 %vm120_vm2, %v2407_v14  ;;  %2158 = vmatprep.subr.msk.mxu0 %vm133_vm0, %v692_v20  ;;  %v686_v14 = vld [vmem:[#allocation2 + $0x108] sm:$0xff]  ;;  %v1012_v20 = vld [vmem:[#allocation6 + $0x58] sm:$0xff] }
  0x5b   :  { %341 = vmatprep.mubr.f32.mxu0 %v2319_v0  ;;  %645 = vmatprep.mubr.f32.mxu1 %v2319_v0  ;;  %v1013_v18 = vld [vmem:[#allocation6 + $0x60] sm:$0xff] }
  0x5d   :  { %2156 = vmatmul.mubr.msk.f32.gmra.mxu1 %vm120_vm2, %v527_v22  ;;  %v1113_v22 = vld [vmem:[#allocation6 + $0x250] sm:$0xff] }
  0x5e   :  { %2139 = vmatmul.mubr.msk.f32.gmra.mxu0 %vm120_vm2, %v2427_v26  ;;  %651 = vmatprep.mubr.f32.mxu1 %v2319_v0  ;;  %v373_v26 = vrot.slane %v2448_v34, 2  ;;  %v1031_v34 = vld [vmem:[#allocation6 + $0xf0] sm:$0xff] }
  0x5f   :  { %466 = vmatprep.mubr.f32.mxu0 %v2319_v0 }
  0x60   :  { %v374_v27 = vsel %vm360_vm4, %v371_v44, %v373_v26  ;;  %v1104_v44 = vld [vmem:[#allocation6 + $0x208] sm:$0xff] }
  0x61   :  { %2157 = vmatmul.mubr.msk.f32.gmra.mxu1 %vm120_vm2, %v529_v28  ;;  %v1111_v28 = vld [vmem:[#allocation6 + $0x240] sm:$0xff]  ;;  %v1002_v26 = vld [vmem:[#allocation6 + $0x8] sm:$0xff] }
  0x62   :  { %2144 = vmatmul.mubr.msk.f32.vlgmr.msra.gmra.mxu0 %vm120_vm2, %v363_v29  ;;  %v1009_v29 = vld [vmem:[#allocation6 + $0x40] sm:$0xff] }
  0x63   :  { %2159 = vmatpush1.msk.msra.mxu0 %vm133_vm0, %v691_v30  ;;  %472 = vmatprep.mubr.f32.mxu0 %v2319_v0  ;;  %v1008_v30 = vld [vmem:[#allocation6 + $0x38] sm:$0xff] }
  0x64   :  { %737 = vmatprep.subr.mxu0 %v690_v9  ;;  %v1109_v9 = vld [vmem:[#allocation6 + $0x230] sm:$0xff] }
  0x65   :  { %738 = vmatpush1.msra.mxu0 %v689_v31  ;;  %v1007_v31 = vld [vmem:[#allocation6 + $0x30] sm:$0xff] }
  0x66   :  { %2145 = vmatmul.mubr.msk.f32.gmra.mxu0 %vm120_vm2, %v365_v33  ;;  %739 = vmatprep.subr.mxu0 %v688_v36  ;;  %v1108_v33 = vld [vmem:[#allocation6 + $0x228] sm:$0xff] }
  0x67   :  { %478 = vmatprep.mubr.f32.mxu0 %v2319_v0  ;;  %740 = vmatpush1.msra.mxu0 %v687_v37  ;;  %v1006_v36 = vld [vmem:[#allocation6 + $0x28] sm:$0xff]  ;;  %v1107_v37 = vld [vmem:[#allocation6 + $0x220] sm:$0xff] }
  0x68   :  { %741 = vmatprep.subr.mxu0 %v686_v14  ;;  %v1005_v14 = vld [vmem:[#allocation6 + $0x20] sm:$0xff] }
  0x69   :  { %742 = vmatpush1.msra.mxu0 %v685_v38  ;;  %v1106_v38 = vld [vmem:[#allocation6 + $0x218] sm:$0xff] }
  0x6a   :  { %2146 = vmatmul.mubr.msk.f32.gmra.mxu0 %vm120_vm2, %v367_v39  ;;  %1282 = vmatprep.subr.mxu0 %v1032_v32  ;;  %v1001_v32 = vld [vmem:[#allocation6] sm:$0xff] }
  0x6b   :  { %484 = vmatprep.mubr.f32.mxu0 %v2319_v0 }
  0x6e   :  { %2147 = vmatmul.mubr.msk.f32.gmra.mxu0 %vm120_vm2, %v370_v21  ;;  %v1003_v21 = vld [vmem:[#allocation6 + $0x10] sm:$0xff] }
  0x6f   :  { %490 = vmatprep.mubr.f32.mxu0 %v2319_v0 }
  0x72   :  { %2148 = vmatmul.mubr.msk.f32.gmra.mxu0 %vm120_vm2, %v372_v45 }
  0x73   :  { %496 = vmatprep.mubr.f32.mxu0 %v2319_v0 }
  0x76   :  { %2149 = vmatmul.mubr.msk.f32.gmra.mxu0 %vm120_vm2, %v374_v27  ;;  %v1103_v27 = vld [vmem:[#allocation6 + $0x200] sm:$0xff] }
  0x77   :  { %775 = vmatprep.mubr.f32.mxu0 %v2319_v0 }
  0x7a   :  { %2160 = vmatmul.mubr.msk.f32.vlgmr.msra.gmra.mxu0 %vm120_vm2, %v2460_v42  ;;  %v1030_v42 = vld [vmem:[#allocation6 + $0xe8] sm:$0xff] }
  0x7b   :  { %781 = vmatprep.mubr.f32.mxu0 %v2319_v0  ;;  %1283 = vmatpush1.msra.mxu0 %v1031_v34  ;;  %v1102_v34 = vld [vmem:[#allocation6 + $0x1f8] sm:$0xff] }
  0x7c   :  { %1284 = vmatprep.subr.mxu0 %v1030_v42 }
  0x7d   :  { %1285 = vmatpush1.msra.mxu0 %v1029_v46  ;;  %v1101_v46 = vld [vmem:[#allocation6 + $0x1f0] sm:$0xff] }
  0x7e   :  { %2161 = vmatmul.mubr.msk.f32.gmra.mxu0 %vm120_vm2, %v2463_v43  ;;  %v1132_v43 = vld [vmem:[#allocation6 + $0x2e8] sm:$0xff]  ;;  %1286 = vmatprep.subr.mxu0 %v1028_v48  ;;  %v1162_v48 = vld [vmem:[#allocation6 + $0x3d8] sm:$0x3f] }
  0x7f   :  { %787 = vmatprep.mubr.f32.mxu0 %v2319_v0  ;;  %1178 = vmatprep.subr.mxu1 %v1132_v43  ;;  %v1062_v43 = vld [vmem:[#allocation6 + $0x1e8] sm:$0x3f] }
  0x80   :  { %1179 = vmatpush1.msra.mxu1 %v1131_v47  ;;  %v1061_v47 = vld [vmem:[#allocation6 + $0x1e0] sm:$0x3f] }
  0x82   :  { %2162 = vmatmul.mubr.msk.f32.gmra.mxu0 %vm120_vm2, %v2472_v49  ;;  %v1130_v49 = vld [vmem:[#allocation6 + $0x2d8] sm:$0xff] }
  0x83   :  { %793 = vmatprep.mubr.f32.mxu0 %v2319_v0  ;;  %1180 = vmatprep.subr.mxu1 %v1130_v49 }
  0x84   :  { %1181 = vmatpush1.msra.mxu1 %v1129_v51  ;;  %v1161_v51 = vld [vmem:[#allocation6 + $0x3d0] sm:$0x3f] }
  0x86   :  { %2163 = vmatmul.mubr.msk.f32.gmra.mxu0 %vm120_vm2, %v2475_v50  ;;  %v1027_v50 = vld [vmem:[#allocation6 + $0xd0] sm:$0xff] }
  0x87   :  { %799 = vmatprep.mubr.f32.mxu0 %v2319_v0  ;;  %1287 = vmatpush1.msra.mxu0 %v1027_v50  ;;  %v1060_v50 = vld [vmem:[#allocation6 + $0x1d8] sm:$0xff] }
  0x8a   :  { %2164 = vmatmul.mubr.msk.f32.gmra.mxu0 %vm120_vm2, %v2479_v52  ;;  %v1128_v52 = vld [vmem:[#allocation6 + $0x2c8] sm:$0xff] }
  0x8b   :  { %805 = vmatprep.mubr.f32.mxu0 %v2319_v0  ;;  %v1026_v0 = vld [vmem:[#allocation6 + $0xc8] sm:$0xff]  ;;  %1182 = vmatprep.subr.mxu1 %v1128_v52  ;;  %v1059_v52 = vld [vmem:[#allocation6 + $0x1d0] sm:$0xff] }
  0x8c   :  { %1288 = vmatprep.subr.mxu0 %v1026_v0  ;;  %v1160_v0 = vld [vmem:[#allocation6 + $0x3c8] sm:$0xff] }
  0x8d   :  { %1289 = vmatpush1.msra.mxu0 %v1025_v54  ;;  %v1058_v54 = vld [vmem:[#allocation6 + $0x1c8] sm:$0xff] }
  0x8e   :  { %2165 = vmatmul.mubr.msk.f32.gmra.mxu0 %vm120_vm2, %v2482_v53  ;;  %v1127_v53 = vld [vmem:[#allocation6 + $0x2c0] sm:$0xff]  ;;  %1290 = vmatprep.subr.mxu0 %v1024_v56 }
  0x8f   :  { %1183 = vmatpush1.msra.mxu1 %v1127_v53  ;;  %1291 = vmatpush1.msra.mxu0 %v1023_v58  ;;  %v1057_v56 = vld [vmem:[#allocation6 + $0x1c0] sm:$0xff] }
  0x90   :  { %1184 = vmatprep.subr.mxu1 %v1126_v55  ;;  %1292 = vmatprep.subr.mxu0 %v1022_v60  ;;  %v1159_v55 = vld [vmem:[#allocation6 + $0x3c0] sm:$0xff]  ;;  %v1157_v60 = vld [vmem:[#allocation6 + $0x3b0] sm:$0xff] }
  0x91   :  { %1185 = vmatpush1.msra.mxu1 %v1125_v57  ;;  %1293 = vmatpush1.msra.mxu0 %v1021_v62  ;;  %v1158_v57 = vld [vmem:[#allocation6 + $0x3b8] sm:$0xff]  ;;  %v1156_v62 = vld [vmem:[#allocation6 + $0x3a8] sm:$0xff] }
  0x92   :  { %1186 = vmatprep.subr.mxu1 %v1124_v59  ;;  %1294 = vmatprep.subr.mxu0 %v1020_v1  ;;  %v1056_v59 = vld [vmem:[#allocation6 + $0x1b8] sm:$0xff]  ;;  %v1054_v1 = vld [vmem:[#allocation6 + $0x1a8] sm:$0xff] }
  0x93   :  { %1187 = vmatpush1.msra.mxu1 %v1123_v61  ;;  %1295 = vmatpush1.msra.mxu0 %v1019_v3  ;;  %v1055_v61 = vld [vmem:[#allocation6 + $0x1b0] sm:$0xff]  ;;  %v1053_v3 = vld [vmem:[#allocation6 + $0x1a0] sm:$0xff] }
  0x94   :  { %1188 = vmatprep.subr.mxu1 %v1122_v63  ;;  %1296 = vmatprep.subr.mxu0 %v1018_v5 }
  0x95   :  { %1189 = vmatpush1.msra.mxu1 %v1121_v2  ;;  %1297 = vmatpush1.msra.mxu0 %v1017_v7  ;;  %v1155_v2 = vld [vmem:[#allocation6 + $0x3a0] sm:$0xff]  ;;  %v1153_v7 = vld [vmem:[#allocation6 + $0x390] sm:$0xff] }
  0x96   :  { %1190 = vmatprep.subr.mxu1 %v1120_v4  ;;  %1298 = vmatprep.subr.mxu0 %v1016_v11  ;;  %v1154_v4 = vld [vmem:[#allocation6 + $0x398] sm:$0xff]  ;;  %v1152_v11 = vld [vmem:[#allocation6 + $0x388] sm:$0xff] }
  0x97   :  { %1191 = vmatpush1.msra.mxu1 %v1119_v6  ;;  %1299 = vmatpush1.msra.mxu0 %v1015_v13  ;;  %v1052_v6 = vld [vmem:[#allocation6 + $0x198] sm:$0xff]  ;;  %v1050_v13 = vld [vmem:[#allocation6 + $0x188] sm:$0xff] }
  0x98   :  { %1192 = vmatprep.subr.mxu1 %v1118_v10  ;;  %1300 = vmatprep.subr.mxu0 %v1014_v16  ;;  %v1051_v10 = vld [vmem:[#allocation6 + $0x190] sm:$0xff]  ;;  %v1049_v16 = vld [vmem:[#allocation6 + $0x180] sm:$0xff] }
  0x99   :  { %1193 = vmatpush1.msra.mxu1 %v1117_v12  ;;  %1301 = vmatpush1.msra.mxu0 %v1013_v18 }
  0x9a   :  { %1194 = vmatprep.subr.mxu1 %v1116_v15  ;;  %1302 = vmatprep.subr.mxu0 %v1012_v20  ;;  %v1151_v15 = vld [vmem:[#allocation6 + $0x380] sm:$0xff]  ;;  %v1149_v20 = vld [vmem:[#allocation6 + $0x370] sm:$0xff] }
  0x9b   :  { %1195 = vmatpush1.msra.mxu1 %v1115_v17  ;;  %1303 = vmatpush1.msra.mxu0 %v1011_v23  ;;  %v1150_v17 = vld [vmem:[#allocation6 + $0x378] sm:$0xff]  ;;  %v1148_v23 = vld [vmem:[#allocation6 + $0x368] sm:$0xff] }
  0x9c   :  { %1196 = vmatprep.subr.mxu1 %v1114_v19  ;;  %1304 = vmatprep.subr.mxu0 %v1010_v25  ;;  %v1048_v19 = vld [vmem:[#allocation6 + $0x178] sm:$0xff]  ;;  %v1046_v25 = vld [vmem:[#allocation6 + $0x168] sm:$0xff] }
  0x9d   :  { %1197 = vmatpush1.msra.mxu1 %v1113_v22  ;;  %1305 = vmatpush1.msra.mxu0 %v1009_v29  ;;  %v1047_v22 = vld [vmem:[#allocation6 + $0x170] sm:$0xff] }
  0x9e   :  { %1198 = vmatprep.subr.mxu1 %v1112_v24  ;;  %1306 = vmatprep.subr.mxu0 %v1008_v30  ;;  %v1146_v30 = vld [vmem:[#allocation6 + $0x358] sm:$0xff] }
  0x9f   :  { %1199 = vmatpush1.msra.mxu1 %v1111_v28  ;;  %1307 = vmatpush1.msra.mxu0 %v1007_v31  ;;  %v1147_v28 = vld [vmem:[#allocation6 + $0x360] sm:$0xff]  ;;  %v1044_v31 = vld [vmem:[#allocation6 + $0x158] sm:$0xff] }
  0xa0   :  { %1200 = vmatprep.subr.mxu1 %v1110_v8  ;;  %1308 = vmatprep.subr.mxu0 %v1006_v36  ;;  %v1045_v8 = vld [vmem:[#allocation6 + $0x160] sm:$0xff]  ;;  %v1043_v36 = vld [vmem:[#allocation6 + $0x150] sm:$0xff] }
  0xa1   :  { %1201 = vmatpush1.msra.mxu1 %v1109_v9  ;;  %1309 = vmatpush1.msra.mxu0 %v1005_v14 }
  0xa2   :  { %1202 = vmatprep.subr.mxu1 %v1108_v33  ;;  %1310 = vmatprep.subr.mxu0 %v1004_v40  ;;  %v1145_v33 = vld [vmem:[#allocation6 + $0x350] sm:$0xff] }
  0xa3   :  { %1203 = vmatpush1.msra.mxu1 %v1107_v37  ;;  %1311 = vmatpush1.msra.mxu0 %v1003_v21  ;;  %v1144_v37 = vld [vmem:[#allocation6 + $0x348] sm:$0xff] }
  0xa4   :  { %1204 = vmatprep.subr.mxu1 %v1106_v38  ;;  %1312 = vmatprep.subr.mxu0 %v1002_v26  ;;  %v1042_v38 = vld [vmem:[#allocation6 + $0x148] sm:$0xff] }
  0xa5   :  { %1205 = vmatpush1.msra.mxu1 %v1105_v41  ;;  %1313 = vmatpush1.msra.mxu0 %v1001_v32  ;;  %v1041_v41 = vld [vmem:[#allocation6 + $0x140] sm:$0xff] }
  0xa6   :  { %1206 = vmatprep.subr.mxu1 %v1104_v44  ;;  %2172 = vmatprep.subr.msk.mxu0 %vm360_vm4, %v1062_v43 }
  0xa7   :  { %1207 = vmatpush1.msra.mxu1 %v1103_v27  ;;  %2173 = vmatpush2.msk.msra.mxu0 %vm360_vm4, %v1061_v47 }
  0xa8   :  { %1208 = vmatprep.subr.mxu1 %v1102_v34  ;;  %1318 = vmatprep.subr.mxu0 %v1060_v50 }
  0xa9   :  { %1209 = vmatpush1.msra.mxu1 %v1101_v46  ;;  %1319 = vmatpush2.msra.mxu0 %v1059_v52 }
  0xaa   :  { %2166 = vmatprep.subr.msk.mxu1 %vm360_vm4, %v1162_v48  ;;  %1320 = vmatprep.subr.mxu0 %v1058_v54 }
  0xab   :  { %2167 = vmatpush2.msk.msra.mxu1 %vm360_vm4, %v1161_v51  ;;  %1321 = vmatpush2.msra.mxu0 %v1057_v56 }
  0xac   :  { %1214 = vmatprep.subr.mxu1 %v1160_v0  ;;  %1322 = vmatprep.subr.mxu0 %v1056_v59 }
  0xad   :  { %1215 = vmatpush2.msra.mxu1 %v1159_v55  ;;  %1323 = vmatpush2.msra.mxu0 %v1055_v61 }
  0xae   :  { %1216 = vmatprep.subr.mxu1 %v1158_v57  ;;  %1324 = vmatprep.subr.mxu0 %v1054_v1 }
  0xaf   :  { %1217 = vmatpush2.msra.mxu1 %v1157_v60  ;;  %1325 = vmatpush2.msra.mxu0 %v1053_v3 }
  0xb0   :  { %1218 = vmatprep.subr.mxu1 %v1156_v62  ;;  %1326 = vmatprep.subr.mxu0 %v1052_v6  ;;  %v826_v62 = vlaneseq }
  0xb1   :  { %1219 = vmatpush2.msra.mxu1 %v1155_v2  ;;  %1327 = vmatpush2.msra.mxu0 %v1051_v10 }
  0xb2   :  { %1220 = vmatprep.subr.mxu1 %v1154_v4  ;;  %1328 = vmatprep.subr.mxu0 %v1050_v13  ;;  %v2621_v6 = vshrl.u32 %v826_v62, 7 }
  0xb3   :  { %1221 = vmatpush2.msra.mxu1 %v1153_v7  ;;  %1329 = vmatpush2.msra.mxu0 %v1049_v16 }
  0xb4   :  { %1222 = vmatprep.subr.mxu1 %v1152_v11  ;;  %1330 = vmatprep.subr.mxu0 %v1048_v19  ;;  %v828_v19 = vsub.s32 0, %v2621_v6 }
  0xb5   :  { %1223 = vmatpush2.msra.mxu1 %v1151_v15  ;;  %1331 = vmatpush2.msra.mxu0 %v1047_v22 }
  0xb6   :  { %1224 = vmatprep.subr.mxu1 %v1150_v17  ;;  %1332 = vmatprep.subr.mxu0 %v1046_v25  ;;  %v832_v25 = vsub.s32 1, %v2621_v6 }
  0xb7   :  { %1225 = vmatpush2.msra.mxu1 %v1149_v20  ;;  %1333 = vmatpush2.msra.mxu0 %v1045_v8 }
  0xb8   :  { %1226 = vmatprep.subr.mxu1 %v1148_v23  ;;  %1334 = vmatprep.subr.mxu0 %v1044_v31  ;;  %v824_v23 = vld [vmem:[#allocation4] sm:$0x3] }
  0xb9   :  { %1227 = vmatpush2.msra.mxu1 %v1147_v28  ;;  %1335 = vmatpush2.msra.mxu0 %v1043_v36 }
  0xba   :  { %1228 = vmatprep.subr.mxu1 %v1146_v30  ;;  %1336 = vmatprep.subr.mxu0 %v1042_v38 }
  0xbb   :  { %1229 = vmatpush2.msra.mxu1 %v1145_v33  ;;  %1337 = vmatpush2.msra.mxu0 %v1041_v41 }
  0xbc   :  { %1230 = vmatprep.subr.mxu1 %v1144_v37  ;;  %v2645_v37 = vrot.slane %v824_v23, %v832_v25 }
  0xfa   :  { %v2580_v35 = vpop.f32.mrf.mxu0 }
  0xfc   :  { %v2582_v39 = vpop.f32.mrf.mxu0 }
  0xfe   :  { %v2584_v45 = vpop.f32.mrf.mxu0 }
 0x100   :  { %v2586_v42 = vpop.f32.mrf.mxu0 }
 0x101   :  { %v2608_v29 = vpop.f32.mrf.mxu1 }
 0x102   :  { %v2588_v49 = vpop.f32.mrf.mxu0 }
 0x103   :  { %v2610_v40 = vpop.f32.mrf.mxu1 }
 0x104   :  { %v2591_v53 = vpop.f32.mrf.mxu0 }
 0x105   :  { %v2612_v26 = vpop.f32.mrf.mxu1 }
 0x106   :  { %v2596_v58 = vpop.f32.mrf.mxu0 }
 0x107   :  { %v2614_v34 = vpop.f32.mrf.mxu1 }
 0x108   :  { %v2598_v63 = vpop.f32.mrf.mxu0 }
 0x10a   :  { %v2600_v5 = vpop.f32.mrf.mxu0 }
 0x10b   :  { %v350_v38 = vadd.f32 %v2608_v29, %v2600_v5  ;;  %v1142_v29 = vld [vmem:[#allocation6 + $0x338] sm:$0xff] }
 0x10c   :  { %v2602_v12 = vpop.f32.mrf.mxu0 }
 0x10d   :  { %v623_v46 = vpop.f32.mrf.mxu1 }
 0x10e   :  { %v2604_v18 = vpop.f32.mrf.mxu0 }
 0x10f   :  { %v625_v50 = vpop.f32.mrf.mxu1 }
 0x110   :  { %v2606_v24 = vpop.f32.mrf.mxu0 }
 0x111   :  { %v629_v0 = vpop.f32.mrf.mxu1 }
 0x112   :  { %v325_v9 = vpop.f32.mrf.mxu0 }
 0x113   :  { %v631_v56 = vpop.f32.mrf.mxu1  ;;  %v326_v4 = vadd.f32 %v325_v9, %v2580_v35 }
 0x114   :  { %v327_v14 = vpop.f32.mrf.mxu0 }
 0x115   :  { %v635_v60 = vpop.f32.mrf.mxu1  ;;  %v328_v20 = vadd.f32 %v327_v14, %v2582_v39  ;;  %v2640_v39 = vrot.slane %v824_v23, %v828_v19  ;;  %v358_v23 = vadd.f32 %v2614_v34, %v2606_v24  ;;  %v1136_v24 = vld [vmem:[#allocation6 + $0x308] sm:$0xff]  ;;  %v1033_v34 = vld [vmem:[#allocation6 + $0x100] sm:$0xff] }
 0x116   :  { %v331_v21 = vpop.f32.mrf.mxu0 }
 0x117   :  { %v637_v2 = vpop.f32.mrf.mxu1  ;;  %v332_v10 = vadd.f32 %v331_v21, %v2584_v45 }
 0x118   :  { %v333_v44 = vpop.f32.mrf.mxu0 }
 0x119   :  { %v2626_v13 = vpop.f32.mrf.mxu1  ;;  %v334_v16 = vadd.f32 %v333_v44, %v2586_v42 }
 0x11a   :  { %v337_v27 = vpop.f32.mrf.mxu0 }
 0x11b   :  { %v338_v35 = vadd.f32 %v337_v27, %v2588_v49  ;;  %v2635_v8 = vpop.f32.mrf.mxu1 }
 0x11c   :  { %v339_v32 = vpop.f32.mrf.mxu0 }
 0x11d   :  { %v340_v42 = vadd.f32 %v339_v32, %v2591_v53  ;;  %v2649_v44 = vpop.f32.mrf.mxu1 }
 0x11e   :  { %v343_v43 = vpop.f32.mrf.mxu0 }
 0x11f   :  { %v344_v49 = vadd.f32 %v343_v43, %v2596_v58  ;;  %v1143_v58 = vld [vmem:[#allocation6 + $0x340] sm:$0xff]  ;;  %v1040_v43 = vld [vmem:[#allocation6 + $0x138] sm:$0xff]  ;;  %v649_v62 = vpop.f32.mrf.mxu1 }
 0x120   :  { %v345_v47 = vpop.f32.mrf.mxu0  ;;  %1231 = vmatpush2.msra.mxu1 %v1143_v58  ;;  %1338 = vmatprep.subr.mxu0 %v1040_v43 }
 0x121   :  { %v346_v27 = vadd.f32 %v345_v47, %v2598_v63  ;;  %v352_v63 = vadd.f32 %v2610_v40, %v2602_v12  ;;  %1232 = vmatprep.subr.mxu1 %v1142_v29 }
 0x122   :  { %v468_v48 = vpop.f32.mrf.mxu0 }
 0x123   :  { %v503_v11 = vadd.f32 %v468_v48, %v326_v4 }
 0x124   :  { %v470_v51 = vpop.f32.mrf.mxu0 }
 0x125   :  { %v658_v28 = vadd.f32 %v623_v46, %v503_v11  ;;  %v504_v30 = vadd.f32 %v470_v51, %v328_v20  ;;  %v1140_v11 = vld [vmem:[#allocation6 + $0x328] sm:$0xff] }
 0x126   :  { %v474_v52 = vpop.f32.mrf.mxu0 }
 0x127   :  { %v505_v17 = vadd.f32 %v474_v52, %v332_v10  ;;  %v659_v32 = vadd.f32 %v625_v50, %v504_v30 }
 0x128   :  { %v476_v54 = vpop.f32.mrf.mxu0 }
 0x129   :  { %v506_v45 = vadd.f32 %v476_v54, %v334_v16  ;;  %v660_v33 = vadd.f32 %v629_v0, %v505_v17  ;;  %v1039_v54 = vld [vmem:[#allocation6 + $0x130] sm:$0xff]  ;;  %v1037_v16 = vld [vmem:[#allocation6 + $0x120] sm:$0xff] }
 0x12a   :  { %v480_v55 = vpop.f32.mrf.mxu0  ;;  %1339 = vmatpush2.msra.mxu0 %v1039_v54 }
 0x12b   :  { %v507_v9 = vadd.f32 %v480_v55, %v338_v35  ;;  %v661_v41 = vadd.f32 %v631_v56, %v506_v45  ;;  %v1141_v56 = vld [vmem:[#allocation6 + $0x330] sm:$0xff] }
 0x12c   :  { %v482_v57 = vpop.f32.mrf.mxu0  ;;  %1233 = vmatpush2.msra.mxu1 %v1141_v56  ;;  %v1133_v56 = vld [vmem:[#allocation6 + $0x2f0] sm:$0xff] }
 0x12d   :  { %v508_v21 = vadd.f32 %v482_v57, %v340_v42  ;;  %v662_v46 = vadd.f32 %v635_v60, %v507_v9  ;;  %v1038_v57 = vld [vmem:[#allocation6 + $0x128] sm:$0xff]  ;;  %1234 = vmatprep.subr.mxu1 %v1140_v11 }
 0x12e   :  { %v486_v59 = vpop.f32.mrf.mxu0  ;;  %1340 = vmatprep.subr.mxu0 %v1038_v57  ;;  %v1034_v9 = vld [vmem:[#allocation6 + $0x108] sm:$0xff] }
 0x12f   :  { %v509_v48 = vadd.f32 %v486_v59, %v344_v49  ;;  %v356_v59 = vadd.f32 %v2612_v26, %v2604_v18  ;;  %v663_v60 = vadd.f32 %v637_v2, %v508_v21  ;;  %1341 = vmatpush2.msra.mxu0 %v1037_v16  ;;  %v1139_v18 = vld [vmem:[#allocation6 + $0x320] sm:$0xff]  ;;  %v1036_v26 = vld [vmem:[#allocation6 + $0x118] sm:$0xff] }
 0x130   :  { %v488_v61 = vpop.f32.mrf.mxu0  ;;  %1235 = vmatpush2.msra.mxu1 %v1139_v18  ;;  %1342 = vmatprep.subr.mxu0 %v1036_v26 }
 0x131   :  { %v510_v47 = vadd.f32 %v488_v61, %v346_v27  ;;  %v664_v2 = vadd.f32 %v2626_v13, %v509_v48  ;;  %v1137_v13 = vld [vmem:[#allocation6 + $0x310] sm:$0xff]  ;;  %v1639_v27 = vld [vmem:[#allocation6 + $0x6c8] sm:$0xff] }
 0x132   :  { %v2616_v1 = vpop.f32.mrf.mxu0 }
 0x133   :  { %v511_v12 = vadd.f32 %v2616_v1, %v350_v38  ;;  %v1138_v1 = vld [vmem:[#allocation6 + $0x318] sm:$0xff] }
 0x134   :  { %v2618_v3 = vpop.f32.mrf.mxu0  ;;  %1236 = vmatprep.subr.mxu1 %v1138_v1 }
 0x135   :  { %v512_v40 = vadd.f32 %v2618_v3, %v352_v63  ;;  %v1035_v3 = vld [vmem:[#allocation6 + $0x110] sm:$0xff]  ;;  %1237 = vmatpush2.msra.mxu1 %v1137_v13 }
 0x136   :  { %v2623_v7 = vpop.f32.mrf.mxu0  ;;  %1343 = vmatpush2.msra.mxu0 %v1035_v3  ;;  %1238 = vmatprep.subr.mxu1 %v1136_v24 }
 0x137   :  { %1344 = vmatprep.subr.mxu0 %v1034_v9  ;;  %v667_v38 = vadd.f32 %v649_v62, %v512_v40 }
 0x138   :  { %v2628_v15 = vpop.f32.mrf.mxu0  ;;  %1345 = vmatpush2.msra.mxu0 %v1033_v34 }
 0x139   :  { %1685 = vmatprep.subr.mxu0 %v1639_v27 }
 0x13a   :  { %v777_v22 = vpop.f32.mrf.mxu0 }
 0x13b   :  { %v812_v36 = vadd.f32 %v777_v22, %v658_v28  ;;  %v665_v28 = vadd.f32 %v2635_v8, %v510_v47  ;;  %v666_v8 = vadd.f32 %v2649_v44, %v511_v12  ;;  %v1134_v44 = vld [vmem:[#allocation6 + $0x2f8] sm:$0xff] }
 0x13c   :  { %v779_v31 = vpop.f32.mrf.mxu0 }
 0x13d   :  { %v2653_v52 = vadd.f32 %v2640_v39, %v812_v36  ;;  %v813_v50 = vadd.f32 %v779_v31, %v659_v32  ;;  %v653_v31 = vpop.f32.mrf.mxu1 }
 0x13e   :  { %v783_v14 = vpop.f32.mrf.mxu0 }
 0x13f   :  { %v814_v53 = vadd.f32 %v783_v14, %v660_v33  ;;  %v860_v20 = vrot.slane %v2653_v52, 1  ;;  %v2677_v45 = vadd.f32 %v2645_v37, %v813_v50  ;;  %v513_v14 = vadd.f32 %v2623_v7, %v356_v59  ;;  %v655_v54 = vpop.f32.mrf.mxu1 }
 0x140   :  { %v785_v51 = vpop.f32.mrf.mxu0  ;;  %v514_v7 = vadd.f32 %v2628_v15, %v358_v23 }
 0x141   :  { %v2656_v0 = vadd.f32 %v2640_v39, %v814_v53  ;;  %v815_v5 = vadd.f32 %v785_v51, %v661_v41  ;;  %v1135_v53 = vld [vmem:[#allocation6 + $0x300] sm:$0xff]  ;;  %v863_v58 = vrot.slane %v2677_v45, 1  ;;  %v668_v57 = vadd.f32 %v653_v31, %v513_v14 }
 0x142   :  { %v789_v55 = vpop.f32.mrf.mxu0  ;;  %1239 = vmatpush2.msra.mxu1 %v1135_v53  ;;  %v669_v11 = vadd.f32 %v655_v54, %v514_v7 }
 0x143   :  { %v861_v4 = vrot.slane %v2656_v0, 1  ;;  %v816_v10 = vadd.f32 %v789_v55, %v662_v46  ;;  %v2666_v61 = vadd.f32 %v2645_v37, %v815_v5  ;;  %1240 = vmatprep.subr.mxu1 %v1134_v44 }
 0x144   :  { %v791_v17 = vpop.f32.mrf.mxu0  ;;  %1241 = vmatpush2.msra.mxu1 %v1133_v56 }
 0x145   :  { %v2671_v35 = vadd.f32 %v2640_v39, %v816_v10  ;;  %v817_v22 = vadd.f32 %v791_v17, %v663_v60  ;;  %v862_v49 = vsel %vm92_vm1, %v860_v20, %v861_v4  ;;  %v864_v41 = vrot.slane %v2666_v61, 1  ;;  %v1433_v60 = vld [vmem:[#allocation6 + $0x4d8] sm:$0xff] }
 0x146   :  { %v795_v30 = vpop.f32.mrf.mxu0  ;;  %v2693_v5 = vmax.f32 %v2653_v52, %v862_v49  ;;  %1479 = vmatprep.subr.mxu1 %v1433_v60 }
 0x147   :  { %v866_v42 = vrot.slane %v2671_v35, 1  ;;  %v2681_v33 = vadd.f32 %v2645_v37, %v817_v22  ;;  %v818_v36 = vadd.f32 %v795_v30, %v664_v2  ;;  %v865_v10 = vsel %vm92_vm1, %v863_v58, %v864_v41 }
 0x148   :  { %v797_v21 = vpop.f32.mrf.mxu0  ;;  %v895_v26 = vmax.f32 %v2677_v45, %v865_v10 }
 0x149   :  { %v868_v32 = vrot.slane %v2681_v33, 1  ;;  %v842_v46 = vadd.f32 %v2640_v39, %v818_v36  ;;  %v819_v48 = vadd.f32 %v797_v21, %v665_v28  ;;  %v867_v51 = vsel %vm92_vm1, %v861_v4, %v866_v42 }
 0x14a   :  { %v801_v43 = vpop.f32.mrf.mxu0  ;;  %v2696_v29 = vmax.f32 %v2656_v0, %v867_v51 }
 0x14b   :  { %v870_v63 = vrot.slane %v842_v46, 1  ;;  %v843_v47 = vadd.f32 %v2645_v37, %v819_v48  ;;  %v820_v50 = vadd.f32 %v801_v43, %v666_v8  ;;  %v869_v55 = vsel %vm92_vm1, %v864_v41, %v868_v32 }
 0x14c   :  { %v803_v15 = vpop.f32.mrf.mxu0  ;;  %v897_v59 = vmax.f32 %v2666_v61, %v869_v55  ;;  %v2217_v52 = vpack.i.bf16 %v2696_v29, %v2693_v5 }
 0x14d   :  { %v872_v0 = vrot.slane %v843_v47, 1  ;;  %v844_v62 = vadd.f32 %v2640_v39, %v820_v50  ;;  %v821_v4 = vadd.f32 %v803_v15, %v667_v38  ;;  %v871_v17 = vsel %vm92_vm1, %v866_v42, %v870_v63 }
 0x14e   :  { %v807_v16 = vpop.f32.mrf.mxu0  ;;  %924 = vrot.lane.b32.xlu1 %v897_v59, %s2320_s0  ;;  %2218 = vrot.lane.b32.xlu0 %v2217_v52, %s2320_s0  ;;  %v2715_v23 = vmax.f32 %v2671_v35, %v871_v17 }
 0x14f   :  { %v874_v12 = vrot.slane %v844_v62, 1  ;;  %v845_v40 = vadd.f32 %v2645_v37, %v821_v4  ;;  %v822_v61 = vadd.f32 %v807_v16, %v668_v57  ;;  %v873_v2 = vsel %vm92_vm1, %v868_v32, %v872_v0  ;;  %v1635_v4 = vld [vmem:[#allocation6 + $0x6a8] sm:$0xff] }
 0x150   :  { %v809_v18 = vpop.f32.mrf.mxu0  ;;  %v899_v9 = vmax.f32 %v2681_v33, %v873_v2 }
 0x151   :  { %v876_v20 = vrot.slane %v845_v40, 1  ;;  %v846_v22 = vadd.f32 %v2640_v39, %v822_v61  ;;  %v823_v1 = vadd.f32 %v809_v18, %v669_v11  ;;  %v875_v3 = vsel %vm92_vm1, %v870_v63, %v874_v12  ;;  %v1638_v63 = vld [vmem:[#allocation6 + $0x6c0] sm:$0xff] }
 0x152   :  { %920 = vrot.lane.b32.xlu0 %v895_v26, %s2320_s0  ;;  %v2717_v28 = vmax.f32 %v842_v46, %v875_v3  ;;  %v1430_v18 = vld [vmem:[#allocation6 + $0x4c0] sm:$0xff]  ;;  %v1429_v3 = vld [vmem:[#allocation6 + $0x4b8] sm:$0xff] }
 0x153   :  { %v878_v30 = vrot.slane %v846_v22, 1  ;;  %v847_v13 = vadd.f32 %v2645_v37, %v823_v1  ;;  %v877_v39 = vsel %vm92_vm1, %v872_v0, %v876_v20 }
 0x154   :  { %v2222_v45 = vpack.i.bf16 %v2717_v28, %v2715_v23  ;;  %v2727_v35 = vmax.f32 %v843_v47, %v877_v39  ;;  %v1427_v39 = vld [vmem:[#allocation6 + $0x4a8] sm:$0xff] }
 0x155   :  { %v880_v31 = vrot.slane %v847_v13, 1  ;;  %v879_v42 = vsel %vm92_vm1, %v874_v12, %v878_v30  ;;  %v2738_v49 = vmax.f32 %v846_v22, %v878_v30  ;;  %v1431_v12 = vld [vmem:[#allocation6 + $0x4c8] sm:$0xff] }
 0x156   :  { %2223 = vrot.lane.b32.xlu1 %v2222_v45, %s2320_s0  ;;  %928 = vrot.lane.b32.xlu0 %v899_v9, %s2320_s0  ;;  %v2729_v36 = vmax.f32 %v844_v62, %v879_v42  ;;  %v1432_v62 = vld [vmem:[#allocation6 + $0x4d0] sm:$0xff]  ;;  %v1631_v45 = vld [vmem:[#allocation6 + $0x688] sm:$0xff]  ;;  %v1630_v42 = vld [vmem:[#allocation6 + $0x680] sm:$0xff] }
 0x157   :  { %v881_v37 = vsel %vm92_vm1, %v876_v20, %v880_v31  ;;  %v2744_v24 = vmax.f32 %v847_v13, %v880_v31  ;;  %v1428_v13 = vld [vmem:[#allocation6 + $0x4b0] sm:$0xff] }
 0x158   :  { %v2736_v33 = vmax.f32 %v845_v40, %v881_v37  ;;  %v1634_v40 = vld [vmem:[#allocation6 + $0x6a0] sm:$0xff] }
 0x15a   :  { %932 = vrot.lane.b32.xlu1 %v2727_v35, %s2320_s0  ;;  %934 = vrot.lane.b32.xlu0 %v2729_v36, %s2320_s0 }
 0x15e   :  { %936 = vrot.lane.b32.xlu1 %v2736_v33, %s2320_s0  ;;  %938 = vrot.lane.b32.xlu0 %v2738_v49, %s2320_s0 }
 0x162   :  { %940 = vrot.lane.b32.xlu1 %v2744_v24, %s2320_s0 }
 0x1c0   :  { %v925_v34 = vpop.permute.xlu1 %924  ;;  %v2219_v8 = vpop.permute.xlu0 %2218 }
 0x1c1   :  { %v964_v14 = vmax.f32 %v897_v59, %v925_v34  ;;  %v2221_v38 = vunpack.i.h.bf16 %v2219_v8  ;;  %v2220_v21 = vunpack.i.l.bf16 %v2219_v8  ;;  %v1426_v8 = vld [vmem:[#allocation6 + $0x4a0] sm:$0xff] }
 0x1c3   :  { %v944_v41 = vsel %vm942_vm5, %v2221_v38, %v925_v34  ;;  %v2750_v32 = vmax.f32 %v964_v14, 0.0  ;;  %v1629_v14 = vld [vmem:[#allocation6 + $0x678] sm:$0xff] }
 0x1c4   :  { %v963_v53 = vmax.f32 %v2696_v29, %v944_v41  ;;  %v921_v27 = vpop.permute.xlu0 %920  ;;  %v1637_v29 = vld [vmem:[#allocation6 + $0x6b8] sm:$0xff] }
 0x1c5   :  { %v943_v46 = vsel %vm942_vm5, %v2220_v21, %v921_v27  ;;  %v962_v48 = vmax.f32 %v895_v26, %v921_v27  ;;  %v1073_v56 = vrot.slane %v2750_v32, 2  ;;  %v1633_v26 = vld [vmem:[#allocation6 + $0x698] sm:$0xff] }
 0x1c6   :  { %v2753_v51 = vmax.f32 %v963_v53, 0.0  ;;  %v961_v44 = vmax.f32 %v2693_v5, %v943_v46  ;;  %v1636_v5 = vld [vmem:[#allocation6 + $0x6b0] sm:$0xff] }
 0x1c7   :  { %v2756_v7 = vmax.f32 %v962_v48, 0.0 }
 0x1c8   :  { %v2758_v58 = vmax.f32 %v961_v44, 0.0  ;;  %v2224_v43 = vpop.permute.xlu1 %2223  ;;  %v929_v54 = vpop.permute.xlu0 %928  ;;  %v1070_v15 = vrot.slane %v2753_v51, 2 }
 0x1c9   :  { %v2225_v47 = vunpack.i.l.bf16 %v2224_v43  ;;  %v966_v50 = vmax.f32 %v899_v9, %v929_v54  ;;  %2174 = vmatprep.mubr.msk.f32.mxu0 %vm942_vm5, %v2756_v7  ;;  %v1072_v55 = vrot.slane %v2756_v7, 2  ;;  %v2226_v59 = vunpack.i.h.bf16 %v2224_v43  ;;  %v1425_v43 = vld [vmem:[#allocation6 + $0x498] sm:$0xff] }
 0x1ca   :  { %1347 = vmatmul.mubr.f32.vlgmr.msra.gmra.mxu0 %v2758_v58  ;;  %v1069_v57 = vrot.slane %v2758_v58, 2 }
 0x1cb   :  { %v945_v52 = vsel %vm942_vm5, %v2225_v47, %v929_v54  ;;  %v2768_v60 = vmax.f32 %v966_v50, 0.0  ;;  %1686 = vmatpush1.msra.mxu0 %v1638_v63  ;;  %v1074_v0 = vsel %vm360_vm4, %v1072_v55, %v1073_v56  ;;  %v1628_v54 = vld [vmem:[#allocation6 + $0x670] sm:$0xff] }
 0x1cc   :  { %v965_v10 = vmax.f32 %v2715_v23, %v945_v52  ;;  %1687 = vmatprep.subr.mxu0 %v1637_v29  ;;  %v933_v11 = vpop.permute.xlu1 %932  ;;  %2168 = vmatprep.mubr.msk.f32.mxu1 %vm942_vm5, %v1074_v0  ;;  %v1071_v16 = vsel %vm360_vm4, %v1069_v57, %v1070_v15  ;;  %v935_v1 = vpop.permute.xlu0 %934  ;;  %v1632_v23 = vld [vmem:[#allocation6 + $0x690] sm:$0xff]  ;;  %v1423_v0 = vld [vmem:[#allocation6 + $0x488] sm:$0xff] }
 0x1cd   :  { %v946_v61 = vsel %vm942_vm5, %v2226_v59, %v933_v11  ;;  %v968_v17 = vmax.f32 %v2727_v35, %v933_v11  ;;  %1688 = vmatpush1.msra.mxu0 %v1636_v5  ;;  %1243 = vmatmul.mubr.f32.vlgmr.msra.gmra.mxu1 %v1071_v16  ;;  %v1077_v2 = vrot.slane %v2768_v60, 2  ;;  %v1424_v57 = vld [vmem:[#allocation6 + $0x490] sm:$0xff]  ;;  %v1422_v11 = vld [vmem:[#allocation6 + $0x480] sm:$0xff]  ;;  %v1625_v16 = vld [vmem:[#allocation6 + $0x658] sm:$0xff] }
 0x1ce   :  { %v2777_v20 = vmax.f32 %v965_v10, 0.0  ;;  %v967_v22 = vmax.f32 %v2717_v28, %v946_v61  ;;  %1480 = vmatpush1.msra.mxu1 %v1432_v62  ;;  %1689 = vmatprep.subr.mxu0 %v1635_v4  ;;  %v1626_v62 = vld [vmem:[#allocation6 + $0x660] sm:$0xff]  ;;  %v1421_v61 = vld [vmem:[#allocation6 + $0x478] sm:$0xff] }
 0x1cf   :  { %v2780_v30 = vmax.f32 %v968_v17, 0.0  ;;  %1481 = vmatprep.subr.mxu1 %v1431_v12  ;;  %1690 = vmatpush1.msra.mxu0 %v1634_v40  ;;  %v1078_v28 = vsel %vm360_vm4, %v1073_v56, %v1077_v2  ;;  %v1624_v17 = vld [vmem:[#allocation6 + $0x650] sm:$0xff] }
 0x1d0   :  { %v2782_v9 = vmax.f32 %v967_v22, 0.0  ;;  %1482 = vmatpush1.msra.mxu1 %v1430_v18  ;;  %1691 = vmatprep.subr.mxu0 %v1633_v26  ;;  %v937_v31 = vpop.permute.xlu1 %936  ;;  %v1075_v35 = vrot.slane %v2777_v20, 2  ;;  %v939_v63 = vpop.permute.xlu0 %938  ;;  %v1372_v26 = vrot.slane %v2753_v51, 4 }
 0x1d1   :  { %v947_v37 = vsel %vm942_vm5, %v935_v1, %v937_v31  ;;  %v970_v34 = vmax.f32 %v2736_v33, %v937_v31  ;;  %1483 = vmatprep.subr.mxu1 %v1429_v3  ;;  %1692 = vmatpush1.msra.mxu0 %v1632_v23  ;;  %v1085_v38 = vrot.slane %v2780_v30, 3  ;;  %v990_v41 = vrot.slane %v2780_v30, 1  ;;  %v1420_v23 = vld [vmem:[#allocation6 + $0x470] sm:$0xff] }
 0x1d2   :  { %v969_v21 = vmax.f32 %v2729_v36, %v947_v37  ;;  %1484 = vmatpush1.msra.mxu1 %v1428_v13  ;;  %1693 = vmatprep.subr.mxu0 %v1631_v45  ;;  %v1076_v53 = vsel %vm360_vm4, %v1070_v15, %v1075_v35  ;;  %v1084_v27 = vrot.slane %v2782_v9, 3  ;;  %v989_v46 = vrot.slane %v2782_v9, 1  ;;  %v1627_v15 = vld [vmem:[#allocation6 + $0x668] sm:$0xff] }
 0x1d3   :  { %v2794_v48 = vmax.f32 %v970_v34, 0.0  ;;  %1485 = vmatprep.subr.mxu1 %v1427_v39  ;;  %1694 = vmatpush1.msra.mxu0 %v1630_v42  ;;  %v1099_v33 = vsel %vm92_vm1, %v1078_v28, %v1085_v38  ;;  %v1000_v44 = vsel %vm92_vm1, %v2750_v32, %v990_v41  ;;  %v1377_v1 = vrot.slane %v2777_v20, 4  ;;  %v1623_v13 = vld [vmem:[#allocation6 + $0x648] sm:$0xff]  ;;  %v1622_v42 = vld [vmem:[#allocation6 + $0x640] sm:$0xff]  ;;  %v1621_v34 = vld [vmem:[#allocation6 + $0x638] sm:$0xff] }
 0x1d4   :  { %v2799_v36 = vmax.f32 %v969_v21, 0.0  ;;  %1486 = vmatpush1.msra.mxu1 %v1426_v8  ;;  %1695 = vmatprep.subr.mxu0 %v1629_v14  ;;  %v941_v47 = vpop.permute.xlu1 %940  ;;  %v1098_v50 = vsel %vm92_vm1, %v1076_v53, %v1084_v27  ;;  %v999_v29 = vsel %vm92_vm1, %v2753_v51, %v989_v46  ;;  %v1385_v3 = vrot.slane %v2782_v9, 5  ;;  %v1419_v45 = vld [vmem:[#allocation6 + $0x468] sm:$0xff]  ;;  %v1418_v28 = vld [vmem:[#allocation6 + $0x460] sm:$0xff] }
 0x1d5   :  { %v2805_v55 = vrot.slane %v2794_v48, 1  ;;  %v948_v56 = vsel %vm942_vm5, %v939_v63, %v941_v47  ;;  %v972_v5 = vmax.f32 %v2744_v24, %v941_v47  ;;  %2169 = vmatprep.mubr.msk.f32.mxu1 %vm942_vm5, %v1099_v33  ;;  %2175 = vmatprep.mubr.msk.f32.mxu0 %vm942_vm5, %v1000_v44  ;;  %v1088_v59 = vrot.slane %v2794_v48, 3 }
 0x1d6   :  { %v971_v52 = vmax.f32 %v2738_v49, %v948_v56  ;;  %1487 = vmatprep.subr.mxu1 %v1425_v43  ;;  %1696 = vmatpush1.msra.mxu0 %v1628_v54  ;;  %v1086_v4 = vrot.slane %v2799_v36, 3  ;;  %v2815_v10 = vrot.slane %v2799_v36, 1  ;;  %v1378_v39 = vsel %vm133_vm0, %v1372_v26, %v1377_v1  ;;  %v1416_v43 = vld [vmem:[#allocation6 + $0x450] sm:$0xff]  ;;  %v1619_v54 = vld [vmem:[#allocation6 + $0x628] sm:$0xff]  ;;  %v1406_v1 = vld [vmem:[#allocation6 + $0x400] sm:$0xff] }
 0x1d7   :  { %v2817_v24 = vmax.f32 %v972_v5, 0.0  ;;  %1249 = vmatmul.mubr.f32.gmra.mxu1 %v1098_v50  ;;  %1353 = vmatmul.mubr.f32.gmra.mxu0 %v999_v29  ;;  %v1089_v49 = vsel %vm515_vm3, %v1085_v38, %v1088_v59  ;;  %v994_v40 = vsel %vm92_vm1, %v990_v41, %v2805_v55  ;;  %v2838_v35 = vsel %vm92_vm1, %v1378_v39, %v1385_v3  ;;  %v1417_v38 = vld [vmem:[#allocation6 + $0x458] sm:$0xff]  ;;  %v1620_v41 = vld [vmem:[#allocation6 + $0x630] sm:$0xff]  ;;  %v1415_v50 = vld [vmem:[#allocation6 + $0x448] sm:$0xff] }
 0x1d8   :  { %v2819_v12 = vmax.f32 %v971_v52, 0.0  ;;  %1488 = vmatpush1.msra.mxu1 %v1424_v57  ;;  %1697 = vmatprep.subr.mxu0 %v1627_v15  ;;  %v1087_v18 = vsel %vm515_vm3, %v1084_v27, %v1086_v4  ;;  %v992_v2 = vsel %vm92_vm1, %v989_v46, %v2815_v10  ;;  %v1387_v37 = vrot.slane %v2799_v36, 5  ;;  %v1414_v57 = vld [vmem:[#allocation6 + $0x440] sm:$0xff]  ;;  %v1617_v15 = vld [vmem:[#allocation6 + $0x618] sm:$0xff]  ;;  %v1403_v39 = vld [vmem:[#allocation6 + $0x3e8] sm:$0xff] }
 0x1d9   :  { %1489 = vmatprep.subr.mxu1 %v1423_v0  ;;  %1698 = vmatpush1.msra.mxu0 %v1626_v62  ;;  %v1092_v22 = vrot.slane %v2817_v24, 3  ;;  %v2845_v14 = vsel %vm92_vm1, %v2768_v60, %v2805_v55  ;;  %v2857_v53 = vsel %vm92_vm1, %v2777_v20, %v2815_v10  ;;  %v1784_v27 = vrot.slane %v2817_v24, 1  ;;  %v1413_v52 = vld [vmem:[#allocation6 + $0x438] sm:$0xff]  ;;  %v1616_v0 = vld [vmem:[#allocation6 + $0x610] sm:$0xff] }
 0x1da   :  { %1490 = vmatpush1.msra.mxu1 %v1422_v11  ;;  %1699 = vmatprep.subr.mxu0 %v1625_v16  ;;  %v1090_v31 = vrot.slane %v2819_v12, 3  ;;  %v2852_v21 = vsel %vm1384_vm6, %v1385_v3, %v1387_v37  ;;  %v1374_v33 = vrot.slane %v2756_v7, 4  ;;  %v1782_v44 = vrot.slane %v2819_v12, 1  ;;  %v1412_v62 = vld [vmem:[#allocation6 + $0x430] sm:$0xff]  ;;  %v1614_v11 = vld [vmem:[#allocation6 + $0x600] sm:$0xff]  ;;  %v1609_v3 = vld [vmem:[#allocation6 + $0x5d8] sm:$0xff] }
 0x1db   :  { %2170 = vmatprep.mubr.msk.f32.mxu1 %vm942_vm5, %v1089_v49  ;;  %2176 = vmatprep.mubr.msk.f32.mxu0 %vm942_vm5, %v994_v40  ;;  %v1093_v8 = vsel %vm515_vm3, %v1088_v59, %v1092_v22  ;;  %v1580_v63 = vrot.slane %v2756_v7, 6  ;;  %v2869_v47 = vsel %vm92_vm1, %v2805_v55, %v1784_v27  ;;  %v1375_v29 = vrot.slane %v2750_v32, 4  ;;  %v1618_v7 = vld [vmem:[#allocation6 + $0x620] sm:$0xff]  ;;  %v1613_v49 = vld [vmem:[#allocation6 + $0x5f8] sm:$0xff] }
 0x1dc   :  { %1491 = vmatprep.subr.mxu1 %v1421_v61  ;;  %1700 = vmatpush1.msra.mxu0 %v1624_v17  ;;  %v1091_v46 = vsel %vm515_vm3, %v1086_v4, %v1090_v31  ;;  %v2876_v56 = vsel %vm92_vm1, %v2815_v10, %v1782_v44  ;;  %v1581_v5 = vrot.slane %v2750_v32, 6  ;;  %v1615_v4 = vld [vmem:[#allocation6 + $0x608] sm:$0xff]  ;;  %v1410_v16 = vld [vmem:[#allocation6 + $0x420] sm:$0xff]  ;;  %v1409_v40 = vld [vmem:[#allocation6 + $0x418] sm:$0xff] }
 0x1dd   :  { %1255 = vmatmul.mubr.f32.gmra.mxu1 %v1087_v18  ;;  %1359 = vmatmul.mubr.f32.gmra.mxu0 %v992_v2  ;;  %v1612_v61 = vld [vmem:[#allocation6 + $0x5f0] sm:$0xff]  ;;  %v1611_v18 = vld [vmem:[#allocation6 + $0x5e8] sm:$0xff]  ;;  %v1610_v22 = vld [vmem:[#allocation6 + $0x5e0] sm:$0xff] }
 0x1de   :  { %1492 = vmatpush1.msra.mxu1 %v1420_v23  ;;  %1701 = vmatprep.subr.mxu0 %v1623_v13  ;;  %v1582_v59 = vsel %vm1576_vm7, %v1580_v63, %v1581_v5  ;;  %v1408_v17 = vld [vmem:[#allocation6 + $0x410] sm:$0xff]  ;;  %v1407_v2 = vld [vmem:[#allocation6 + $0x408] sm:$0xff]  ;;  %v1405_v23 = vld [vmem:[#allocation6 + $0x3f8] sm:$0xff] }
 0x1df   :  { %2177 = vmatprep.mubr.msk.f32.mxu0 %vm942_vm5, %v2805_v55  ;;  %1493 = vmatprep.subr.mxu1 %v1419_v45  ;;  %v1376_v55 = vsel %vm133_vm0, %v1374_v33, %v1375_v29  ;;  %v1608_v13 = vld [vmem:[#allocation6 + $0x5d0] sm:$0xff]  ;;  %v1669_v31 = vld [vmem:[#allocation6 + $0x7b8] sm:$0x3f]  ;;  %v1663_v63 = vld [vmem:[#allocation6 + $0x788] sm:$0xff] }
 0x1e0   :  { %1702 = vmatpush1.msra.mxu0 %v1622_v42  ;;  %1494 = vmatpush1.msra.mxu1 %v1418_v28  ;;  %v1404_v45 = vld [vmem:[#allocation6 + $0x3f0] sm:$0xff]  ;;  %v1402_v28 = vld [vmem:[#allocation6 + $0x3e0] sm:$0xff]  ;;  %v1461_v33 = vld [vmem:[#allocation6 + $0x5b8] sm:$0xff] }
 0x1e1   :  { %1703 = vmatprep.subr.mxu0 %v1621_v34  ;;  %2171 = vmatprep.mubr.msk.f32.mxu1 %vm942_vm5, %v1093_v8  ;;  %v1668_v42 = vld [vmem:[#allocation6 + $0x7b0] sm:$0x3f]  ;;  %v1667_v34 = vld [vmem:[#allocation6 + $0x7a8] sm:$0xff] }
 0x1e2   :  { %1495 = vmatprep.subr.mxu1 %v1417_v38  ;;  %1704 = vmatpush1.msra.mxu0 %v1620_v41  ;;  %v1463_v8 = vld [vmem:[#allocation6 + $0x5c8] sm:$0x3f]  ;;  %v1666_v38 = vld [vmem:[#allocation6 + $0x7a0] sm:$0xff] }
 0x1e3   :  { %1261 = vmatmul.mubr.f32.gmra.mxu1 %v1091_v46  ;;  %1365 = vmatmul.mubr.f32.gmra.mxu0 %v2815_v10  ;;  %v1411_v10 = vld [vmem:[#allocation6 + $0x428] sm:$0xff]  ;;  %v1462_v41 = vld [vmem:[#allocation6 + $0x5c0] sm:$0x3f]  ;;  %v1665_v46 = vld [vmem:[#allocation6 + $0x798] sm:$0xff] }
 0x1e4   :  { %1496 = vmatpush1.msra.mxu1 %v1416_v43  ;;  %1705 = vmatprep.subr.mxu0 %v1619_v54  ;;  %v1664_v43 = vld [vmem:[#allocation6 + $0x790] sm:$0xff] }
 0x1e5   :  { %1497 = vmatprep.subr.mxu1 %v1415_v50  ;;  %2180 = vmatprep.mubr.msk.f32.mxu1 %vm942_vm5, %v1376_v55  ;;  %v1460_v54 = vld [vmem:[#allocation6 + $0x5b0] sm:$0xff]  ;;  %v1459_v50 = vld [vmem:[#allocation6 + $0x5a8] sm:$0xff]  ;;  %v1458_v55 = vld [vmem:[#allocation6 + $0x5a0] sm:$0xff] }
 0x1e6   :  { %1706 = vmatpush1.msra.mxu0 %v1618_v7  ;;  %2186 = vmatprep.mubr.msk.f32.mxu0 %vm942_vm5, %v1582_v59  ;;  %v1662_v7 = vld [vmem:[#allocation6 + $0x780] sm:$0xff]  ;;  %v1660_v59 = vld [vmem:[#allocation6 + $0x770] sm:$0xff] }
 0x1e7   :  { %1498 = vmatpush1.msra.mxu1 %v1414_v57  ;;  %1707 = vmatprep.subr.mxu0 %v1617_v15  ;;  %v1661_v57 = vld [vmem:[#allocation6 + $0x778] sm:$0xff] }
 0x1e8   :  { %1499 = vmatprep.subr.mxu1 %v1413_v52  ;;  %1708 = vmatpush1.msra.mxu0 %v1616_v0  ;;  %v1457_v15 = vld [vmem:[#allocation6 + $0x598] sm:$0xff]  ;;  %v1456_v52 = vld [vmem:[#allocation6 + $0x590] sm:$0xff]  ;;  %v1659_v0 = vld [vmem:[#allocation6 + $0x768] sm:$0xff] }
 0x1e9   :  { %1500 = vmatpush1.msra.mxu1 %v1412_v62  ;;  %1709 = vmatprep.subr.mxu0 %v1615_v4  ;;  %v1455_v62 = vld [vmem:[#allocation6 + $0x588] sm:$0xff]  ;;  %v1658_v4 = vld [vmem:[#allocation6 + $0x760] sm:$0xff] }
 0x1ea   :  { %1501 = vmatprep.subr.mxu1 %v1411_v10  ;;  %1710 = vmatpush1.msra.mxu0 %v1614_v11  ;;  %v1454_v10 = vld [vmem:[#allocation6 + $0x580] sm:$0xff]  ;;  %v1657_v11 = vld [vmem:[#allocation6 + $0x758] sm:$0xff] }
 0x1eb   :  { %1502 = vmatpush1.msra.mxu1 %v1410_v16  ;;  %1711 = vmatprep.subr.mxu0 %v1613_v49  ;;  %v1453_v16 = vld [vmem:[#allocation6 + $0x578] sm:$0xff]  ;;  %v1656_v49 = vld [vmem:[#allocation6 + $0x750] sm:$0xff] }
 0x1ec   :  { %1503 = vmatprep.subr.mxu1 %v1409_v40  ;;  %1712 = vmatpush1.msra.mxu0 %v1612_v61  ;;  %v1452_v40 = vld [vmem:[#allocation6 + $0x570] sm:$0xff]  ;;  %v1655_v61 = vld [vmem:[#allocation6 + $0x748] sm:$0xff] }
 0x1ed   :  { %1504 = vmatpush1.msra.mxu1 %v1408_v17  ;;  %1713 = vmatprep.subr.mxu0 %v1611_v18  ;;  %v1451_v17 = vld [vmem:[#allocation6 + $0x568] sm:$0xff]  ;;  %v1654_v18 = vld [vmem:[#allocation6 + $0x740] sm:$0xff] }
 0x1ee   :  { %1505 = vmatprep.subr.mxu1 %v1407_v2  ;;  %1714 = vmatpush1.msra.mxu0 %v1610_v22  ;;  %v1450_v2 = vld [vmem:[#allocation6 + $0x560] sm:$0xff]  ;;  %v1653_v22 = vld [vmem:[#allocation6 + $0x738] sm:$0xff] }
 0x1ef   :  { %1506 = vmatpush1.msra.mxu1 %v1406_v1  ;;  %1715 = vmatprep.subr.mxu0 %v1609_v3  ;;  %v1449_v1 = vld [vmem:[#allocation6 + $0x558] sm:$0xff]  ;;  %v1652_v3 = vld [vmem:[#allocation6 + $0x730] sm:$0xff] }
 0x1f0   :  { %1507 = vmatprep.subr.mxu1 %v1405_v23  ;;  %1716 = vmatpush1.msra.mxu0 %v1608_v13  ;;  %v1448_v23 = vld [vmem:[#allocation6 + $0x550] sm:$0xff]  ;;  %v1651_v13 = vld [vmem:[#allocation6 + $0x728] sm:$0xff] }
 0x1f1   :  { %1508 = vmatpush1.msra.mxu1 %v1404_v45  ;;  %2184 = vmatprep.subr.msk.mxu0 %vm360_vm4, %v1669_v31  ;;  %v1447_v45 = vld [vmem:[#allocation6 + $0x548] sm:$0xff]  ;;  %v1650_v31 = vld [vmem:[#allocation6 + $0x720] sm:$0xff] }
 0x1f2   :  { %1509 = vmatprep.subr.mxu1 %v1403_v39  ;;  %2185 = vmatpush2.msk.msra.mxu0 %vm360_vm4, %v1668_v42  ;;  %v1446_v39 = vld [vmem:[#allocation6 + $0x540] sm:$0xff]  ;;  %v1649_v42 = vld [vmem:[#allocation6 + $0x718] sm:$0xff] }
 0x1f3   :  { %1510 = vmatpush1.msra.mxu1 %v1402_v28  ;;  %1721 = vmatprep.subr.mxu0 %v1667_v34  ;;  %v1445_v28 = vld [vmem:[#allocation6 + $0x538] sm:$0xff]  ;;  %v1648_v34 = vld [vmem:[#allocation6 + $0x710] sm:$0xff] }
 0x1f4   :  { %2178 = vmatprep.subr.msk.mxu1 %vm360_vm4, %v1463_v8  ;;  %1722 = vmatpush2.msra.mxu0 %v1666_v38  ;;  %v1444_v8 = vld [vmem:[#allocation6 + $0x530] sm:$0xff]  ;;  %v1647_v38 = vld [vmem:[#allocation6 + $0x708] sm:$0xff] }
 0x1f5   :  { %2179 = vmatpush2.msk.msra.mxu1 %vm360_vm4, %v1462_v41  ;;  %1723 = vmatprep.subr.mxu0 %v1665_v46  ;;  %v1443_v41 = vld [vmem:[#allocation6 + $0x528] sm:$0xff]  ;;  %v1646_v46 = vld [vmem:[#allocation6 + $0x700] sm:$0xff] }
 0x1f6   :  { %1515 = vmatprep.subr.mxu1 %v1461_v33  ;;  %1724 = vmatpush2.msra.mxu0 %v1664_v43  ;;  %v1442_v33 = vld [vmem:[#allocation6 + $0x520] sm:$0xff]  ;;  %v1645_v43 = vld [vmem:[#allocation6 + $0x6f8] sm:$0xff] }
 0x1f7   :  { %1516 = vmatpush2.msra.mxu1 %v1460_v54  ;;  %1725 = vmatprep.subr.mxu0 %v1663_v63  ;;  %v1441_v54 = vld [vmem:[#allocation6 + $0x518] sm:$0xff]  ;;  %v1644_v63 = vld [vmem:[#allocation6 + $0x6f0] sm:$0xff] }
 0x1f8   :  { %1517 = vmatprep.subr.mxu1 %v1459_v50  ;;  %1726 = vmatpush2.msra.mxu0 %v1662_v7  ;;  %v1440_v50 = vld [vmem:[#allocation6 + $0x510] sm:$0xff]  ;;  %v1643_v7 = vld [vmem:[#allocation6 + $0x6e8] sm:$0xff] }
 0x1f9   :  { %1518 = vmatpush2.msra.mxu1 %v1458_v55  ;;  %1727 = vmatprep.subr.mxu0 %v1661_v57  ;;  %v1439_v55 = vld [vmem:[#allocation6 + $0x508] sm:$0xff]  ;;  %v1642_v57 = vld [vmem:[#allocation6 + $0x6e0] sm:$0xff] }
 0x1fa   :  { %1519 = vmatprep.subr.mxu1 %v1457_v15  ;;  %1728 = vmatpush2.msra.mxu0 %v1660_v59  ;;  %v1438_v15 = vld [vmem:[#allocation6 + $0x500] sm:$0xff]  ;;  %v1641_v59 = vld [vmem:[#allocation6 + $0x6d8] sm:$0xff] }
 0x1fb   :  { %1520 = vmatpush2.msra.mxu1 %v1456_v52  ;;  %1729 = vmatprep.subr.mxu0 %v1659_v0  ;;  %v1577_v52 = vrot.slane %v2758_v58, 6  ;;  %v1585_v0 = vrot.slane %v2768_v60, 6 }
 0x1fc   :  { %1521 = vmatprep.subr.mxu1 %v1455_v62  ;;  %1730 = vmatpush2.msra.mxu0 %v1658_v4  ;;  %v1437_v62 = vld [vmem:[#allocation6 + $0x4f8] sm:$0xff]  ;;  %v1640_v4 = vld [vmem:[#allocation6 + $0x6d0] sm:$0xff] }
 0x1fd   :  { %1522 = vmatpush2.msra.mxu1 %v1454_v10  ;;  %1731 = vmatprep.subr.mxu0 %v1657_v11  ;;  %v1592_v10 = vrot.slane %v2780_v30, 7  ;;  %v1583_v11 = vrot.slane %v2777_v20, 6  ;;  %v1586_v20 = vsel %vm1576_vm7, %v1581_v5, %v1585_v0  ;;  %v1822_v5 = vld [vmem:[#allocation6 + $0x8b0] sm:$0xff]  ;;  %v1809_v0 = vld [vmem:[#allocation6 + $0x848] sm:$0xff] }
 0x1fe   :  { %1523 = vmatprep.subr.mxu1 %v1453_v16  ;;  %1732 = vmatpush2.msra.mxu0 %v1656_v49  ;;  %v1436_v16 = vld [vmem:[#allocation6 + $0x4f0] sm:$0xff]  ;;  %v1578_v49 = vrot.slane %v2753_v51, 6 }
 0x1ff   :  { %1524 = vmatpush2.msra.mxu1 %v1452_v40  ;;  %1733 = vmatprep.subr.mxu0 %v1655_v61  ;;  %v1435_v40 = vld [vmem:[#allocation6 + $0x4e8] sm:$0xff]  ;;  %v1371_v61 = vrot.slane %v2758_v58, 4  ;;  %v1823_v58 = vld [vmem:[#allocation6 + $0x8b8] sm:$0xff] }
 0x200   :  { %1525 = vmatprep.subr.mxu1 %v1451_v17  ;;  %1734 = vmatpush2.msra.mxu0 %v1654_v18  ;;  %v1379_v17 = vrot.slane %v2768_v60, 4  ;;  %v1579_v18 = vsel %vm1576_vm7, %v1577_v52, %v1578_v49  ;;  %v1584_v60 = vsel %vm1576_vm7, %v1578_v49, %v1583_v11  ;;  %v1810_v52 = vld [vmem:[#allocation6 + $0x850] sm:$0xff]  ;;  %v1805_v11 = vld [vmem:[#allocation6 + $0x828] sm:$0xff]  ;;  %v1803_v49 = vld [vmem:[#allocation6 + $0x818] sm:$0xff] }
 0x201   :  { %1526 = vmatpush2.msra.mxu1 %v1450_v2  ;;  %1735 = vmatprep.subr.mxu0 %v1653_v22  ;;  %v1434_v2 = vld [vmem:[#allocation6 + $0x4e0] sm:$0xff]  ;;  %v1386_v22 = vrot.slane %v2780_v30, 5  ;;  %v1373_v30 = vsel %vm133_vm0, %v1371_v61, %v1372_v26  ;;  %v1389_v26 = vrot.slane %v2794_v48, 5  ;;  %v1799_v61 = vld [vmem:[#allocation6 + $0x7f8] sm:$0xff] }
 0x202   :  { %1527 = vmatprep.subr.mxu1 %v1449_v1  ;;  %1736 = vmatpush2.msra.mxu0 %v1652_v3  ;;  %v1591_v1 = vrot.slane %v2782_v9, 7  ;;  %v1606_v3 = vsel %vm92_vm1, %v1586_v20, %v1592_v10  ;;  %v1380_v9 = vsel %vm133_vm0, %v1375_v29, %v1379_v17  ;;  %v1819_v29 = vld [vmem:[#allocation6 + $0x898] sm:$0xff]  ;;  %v1798_v17 = vld [vmem:[#allocation6 + $0x7f0] sm:$0xff] }
 0x203   :  { %1528 = vmatpush2.msra.mxu1 %v1448_v23  ;;  %1737 = vmatprep.subr.mxu0 %v1651_v13  ;;  %v1595_v23 = vrot.slane %v2794_v48, 7  ;;  %v1400_v13 = vsel %vm92_vm1, %v1380_v9, %v1386_v22  ;;  %v1795_v20 = vld [vmem:[#allocation6 + $0x7d8] sm:$0xff]  ;;  %v1848_v9 = vld [vmem:[#allocation6 + $0x980] sm:$0xff] }
 0x204   :  { %1529 = vmatprep.subr.mxu1 %v1447_v45  ;;  %1738 = vmatpush2.msra.mxu0 %v1650_v31  ;;  %v1605_v45 = vsel %vm92_vm1, %v1584_v60, %v1591_v1  ;;  %v1821_v31 = vld [vmem:[#allocation6 + $0x8a8] sm:$0xff]  ;;  %v1851_v60 = vld [vmem:[#allocation6 + $0x998] sm:$0xff] }
 0x205   :  { %1530 = vmatpush2.msra.mxu1 %v1446_v39  ;;  %1739 = vmatprep.subr.mxu0 %v1649_v42  ;;  %v1596_v39 = vsel %vm1590_vm8, %v1592_v10, %v1595_v23  ;;  %v1820_v42 = vld [vmem:[#allocation6 + $0x8a0] sm:$0xff]  ;;  %v1806_v10 = vld [vmem:[#allocation6 + $0x830] sm:$0xff] }
 0x206   :  { %1531 = vmatprep.subr.mxu1 %v1445_v28  ;;  %1740 = vmatpush2.msra.mxu0 %v1648_v34  ;;  %v1593_v28 = vrot.slane %v2799_v36, 7  ;;  %v1599_v34 = vrot.slane %v2817_v24, 7  ;;  %v1802_v36 = vld [vmem:[#allocation6 + $0x810] sm:$0xff] }
 0x207   :  { %1532 = vmatpush2.msra.mxu1 %v1444_v8  ;;  %1741 = vmatprep.subr.mxu0 %v1647_v38  ;;  %v1818_v8 = vld [vmem:[#allocation6 + $0x890] sm:$0xff]  ;;  %v1390_v38 = vsel %vm1384_vm6, %v1386_v22, %v1389_v26  ;;  %v1793_v22 = vld [vmem:[#allocation6 + $0x7c8] sm:$0xff] }
 0x208   :  { %1533 = vmatprep.subr.mxu1 %v1443_v41  ;;  %1742 = vmatpush2.msra.mxu0 %v1646_v46  ;;  %v1594_v41 = vsel %vm1590_vm8, %v1591_v1, %v1593_v28  ;;  %v1817_v46 = vld [vmem:[#allocation6 + $0x888] sm:$0xff]  ;;  %v1600_v48 = vsel %vm1590_vm8, %v1595_v23, %v1599_v34  ;;  %v1792_v1 = vld [vmem:[#allocation6 + $0x7c0] sm:$0xff]  ;;  %v1850_v23 = vld [vmem:[#allocation6 + $0x990] sm:$0xff] }
 0x209   :  { %1534 = vmatpush2.msra.mxu1 %v1442_v33  ;;  %1743 = vmatprep.subr.mxu0 %v1645_v43  ;;  %v1816_v33 = vld [vmem:[#allocation6 + $0x880] sm:$0xff]  ;;  %v1393_v43 = vrot.slane %v2817_v24, 5  ;;  %v1838_v34 = vld [vmem:[#allocation6 + $0x930] sm:$0xff] }
 0x20a   :  { %1535 = vmatprep.subr.mxu1 %v1441_v54  ;;  %1744 = vmatpush2.msra.mxu0 %v1644_v63  ;;  %v1597_v54 = vrot.slane %v2819_v12, 7  ;;  %v1814_v63 = vld [vmem:[#allocation6 + $0x870] sm:$0xff] }
 0x20b   :  { %1536 = vmatpush2.msra.mxu1 %v1440_v50  ;;  %1745 = vmatprep.subr.mxu0 %v1643_v7  ;;  %v1394_v50 = vsel %vm1384_vm6, %v1389_v26, %v1393_v43  ;;  %v1841_v26 = vld [vmem:[#allocation6 + $0x948] sm:$0xff]  ;;  %v1831_v43 = vld [vmem:[#allocation6 + $0x8f8] sm:$0xff] }
 0x20c   :  { %1537 = vmatprep.subr.mxu1 %v1439_v55  ;;  %1746 = vmatpush2.msra.mxu0 %v1642_v57  ;;  %v1598_v7 = vsel %vm1590_vm8, %v1593_v28, %v1597_v54  ;;  %v1813_v55 = vld [vmem:[#allocation6 + $0x868] sm:$0xff]  ;;  %v1391_v57 = vrot.slane %v2819_v12, 5  ;;  %v1840_v28 = vld [vmem:[#allocation6 + $0x940] sm:$0xff]  ;;  %v1830_v54 = vld [vmem:[#allocation6 + $0x8f0] sm:$0xff] }
 0x20d   :  { %1538 = vmatpush2.msra.mxu1 %v1438_v15  ;;  %1747 = vmatprep.subr.mxu0 %v1641_v59  ;;  %v1812_v15 = vld [vmem:[#allocation6 + $0x860] sm:$0xff]  ;;  %v1811_v59 = vld [vmem:[#allocation6 + $0x858] sm:$0xff] }
 0x20e   :  { %1539 = vmatprep.subr.mxu1 %v1437_v62  ;;  %1748 = vmatpush2.msra.mxu0 %v1640_v4  ;;  %v1808_v62 = vld [vmem:[#allocation6 + $0x840] sm:$0xff]  ;;  %v1807_v4 = vld [vmem:[#allocation6 + $0x838] sm:$0xff] }
 0x20f   :  { %1540 = vmatpush2.msra.mxu1 %v1436_v16  ;;  %1750 = vmatmul.mubr.f32.vlgmr.msra.gmra.mxu0 %v1579_v18  ;;  %v1804_v16 = vld [vmem:[#allocation6 + $0x820] sm:$0xff] }
 0x210   :  { %1541 = vmatprep.subr.mxu1 %v1435_v40  ;;  %2187 = vmatprep.mubr.msk.f32.mxu0 %vm942_vm5, %v1606_v3  ;;  %v1800_v40 = vld [vmem:[#allocation6 + $0x800] sm:$0xff]  ;;  %v1853_v3 = vld [vmem:[#allocation6 + $0x9a8] sm:$0x3f] }
 0x211   :  { %1542 = vmatpush2.msra.mxu1 %v1434_v2  ;;  %v1796_v18 = vld [vmem:[#allocation6 + $0x7e0] sm:$0xff]  ;;  %v1794_v2 = vld [vmem:[#allocation6 + $0x7d0] sm:$0xff] }
 0x212   :  { %1544 = vmatmul.mubr.f32.vlgmr.msra.gmra.mxu1 %v1373_v30  ;;  %1869 = vmatprep.subr.mxu1 %v1823_v58  ;;  %v1852_v58 = vld [vmem:[#allocation6 + $0x9a0] sm:$0x3f]  ;;  %v1849_v30 = vld [vmem:[#allocation6 + $0x988] sm:$0xff] }
 0x213   :  { %2181 = vmatprep.mubr.msk.f32.mxu1 %vm942_vm5, %v1400_v13  ;;  %1756 = vmatmul.mubr.f32.gmra.mxu0 %v1605_v45  ;;  %v1846_v13 = vld [vmem:[#allocation6 + $0x970] sm:$0xff]  ;;  %v1845_v45 = vld [vmem:[#allocation6 + $0x968] sm:$0xff] }
 0x214   :  { %1870 = vmatpush1.msra.mxu1 %v1822_v5  ;;  %2188 = vmatprep.mubr.msk.f32.mxu0 %vm942_vm5, %v1596_v39  ;;  %v1847_v5 = vld [vmem:[#allocation6 + $0x978] sm:$0xff] }
 0x215   :  { %1871 = vmatprep.subr.mxu1 %v1821_v31  ;;  %v1844_v31 = vld [vmem:[#allocation6 + $0x960] sm:$0xff]  ;;  %v1843_v39 = vld [vmem:[#allocation6 + $0x958] sm:$0xff] }
 0x216   :  { %1872 = vmatpush1.msra.mxu1 %v1820_v42  ;;  %v1842_v42 = vld [vmem:[#allocation6 + $0x950] sm:$0xff] }
 0x217   :  { %1550 = vmatmul.mubr.f32.gmra.mxu1 %v2838_v35  ;;  %1873 = vmatprep.subr.mxu1 %v1819_v29  ;;  %v1815_v35 = vld [vmem:[#allocation6 + $0x878] sm:$0xff] }
 0x218   :  { %2182 = vmatprep.mubr.msk.f32.mxu1 %vm942_vm5, %v1390_v38  ;;  %1762 = vmatmul.mubr.f32.gmra.mxu0 %v1594_v41  ;;  %v1839_v29 = vld [vmem:[#allocation6 + $0x938] sm:$0xff]  ;;  %v1836_v38 = vld [vmem:[#allocation6 + $0x920] sm:$0xff] }
 0x219   :  { %1874 = vmatpush1.msra.mxu1 %v1818_v8  ;;  %2189 = vmatprep.mubr.msk.f32.mxu0 %vm942_vm5, %v1600_v48  ;;  %v1837_v8 = vld [vmem:[#allocation6 + $0x928] sm:$0xff]  ;;  %v1835_v41 = vld [vmem:[#allocation6 + $0x918] sm:$0xff] }
 0x21a   :  { %1875 = vmatprep.subr.mxu1 %v1817_v46  ;;  %v1834_v46 = vld [vmem:[#allocation6 + $0x910] sm:$0xff]  ;;  %v1833_v48 = vld [vmem:[#allocation6 + $0x908] sm:$0xff] }
 0x21b   :  { %1876 = vmatpush1.msra.mxu1 %v1816_v33  ;;  %v1832_v33 = vld [vmem:[#allocation6 + $0x900] sm:$0xff] }
 0x21c   :  { %1556 = vmatmul.mubr.f32.gmra.mxu1 %v2852_v21  ;;  %1877 = vmatprep.subr.mxu1 %v1815_v35  ;;  %v1392_v21 = vsel %vm1384_vm6, %v1387_v37, %v1391_v57  ;;  %v1801_v37 = vld [vmem:[#allocation6 + $0x808] sm:$0xff]  ;;  %v1824_v57 = vld [vmem:[#allocation6 + $0x8c0] sm:$0xff] }
 0x21d   :  { %2183 = vmatprep.mubr.msk.f32.mxu1 %vm942_vm5, %v1394_v50  ;;  %1768 = vmatmul.mubr.f32.gmra.mxu0 %v1598_v7  ;;  %v1829_v35 = vld [vmem:[#allocation6 + $0x8e8] sm:$0xff]  ;;  %v1827_v50 = vld [vmem:[#allocation6 + $0x8d8] sm:$0xff]  ;;  %v1826_v7 = vld [vmem:[#allocation6 + $0x8d0] sm:$0xff] }
 0x21e   :  { %1878 = vmatpush1.msra.mxu1 %v1814_v63  ;;  %v1828_v63 = vld [vmem:[#allocation6 + $0x8e0] sm:$0xff] }
 0x21f   :  { %1879 = vmatprep.subr.mxu1 %v1813_v55  ;;  %v1825_v55 = vld [vmem:[#allocation6 + $0x8c8] sm:$0xff] }
 0x220   :  { %1880 = vmatpush1.msra.mxu1 %v1812_v15 }
 0x221   :  { %1562 = vmatmul.mubr.f32.gmra.mxu1 %v1392_v21  ;;  %1881 = vmatprep.subr.mxu1 %v1811_v59 }
 0x222   :  { %1882 = vmatpush1.msra.mxu1 %v1810_v52  ;;  %2192 = vmatprep.mubr.msk.f32.mxu1 %vm942_vm5, %v2750_v32  ;;  %v1797_v32 = vld [vmem:[#allocation6 + $0x7e8] sm:$0xff] }
 0x223   :  { %1883 = vmatprep.subr.mxu1 %v1809_v0 }
 0x224   :  { %1884 = vmatpush1.msra.mxu1 %v1808_v62 }
 0x225   :  { %1885 = vmatprep.subr.mxu1 %v1807_v4 }
 0x226   :  { %1886 = vmatpush1.msra.mxu1 %v1806_v10 }
 0x227   :  { %1887 = vmatprep.subr.mxu1 %v1805_v11 }
 0x228   :  { %1888 = vmatpush1.msra.mxu1 %v1804_v16 }
 0x229   :  { %1889 = vmatprep.subr.mxu1 %v1803_v49 }
 0x22a   :  { %1890 = vmatpush1.msra.mxu1 %v1802_v36 }
 0x22b   :  { %1891 = vmatprep.subr.mxu1 %v1801_v37 }
 0x22c   :  { %1892 = vmatpush1.msra.mxu1 %v1800_v40 }
 0x22d   :  { %1893 = vmatprep.subr.mxu1 %v1799_v61 }
 0x22e   :  { %1894 = vmatpush1.msra.mxu1 %v1798_v17 }
 0x22f   :  { %1895 = vmatprep.subr.mxu1 %v1797_v32 }
 0x230   :  { %1896 = vmatpush1.msra.mxu1 %v1796_v18 }
 0x231   :  { %1897 = vmatprep.subr.mxu1 %v1795_v20 }
 0x232   :  { %1898 = vmatpush1.msra.mxu1 %v1794_v2 }
 0x233   :  { %1899 = vmatprep.subr.mxu1 %v1793_v22 }
 0x234   :  { %1900 = vmatpush1.msra.mxu1 %v1792_v1 }
 0x235   :  { %2190 = vmatprep.subr.msk.mxu1 %vm360_vm4, %v1853_v3 }
 0x236   :  { %2191 = vmatpush2.msk.msra.mxu1 %vm360_vm4, %v1852_v58 }
 0x237   :  { %1905 = vmatprep.subr.mxu1 %v1851_v60 }
 0x238   :  { %1906 = vmatpush2.msra.mxu1 %v1850_v23 }
 0x239   :  { %1907 = vmatprep.subr.mxu1 %v1849_v30 }
 0x23a   :  { %1908 = vmatpush2.msra.mxu1 %v1848_v9 }
 0x23b   :  { %1909 = vmatprep.subr.mxu1 %v1847_v5 }
 0x23c   :  { %1910 = vmatpush2.msra.mxu1 %v1846_v13 }
 0x23d   :  { %1911 = vmatprep.subr.mxu1 %v1845_v45 }
 0x23e   :  { %1912 = vmatpush2.msra.mxu1 %v1844_v31  ;;  %v1966_v31 = vld [vmem:[#allocation7] sm:$0x3] }
 0x23f   :  { %1913 = vmatprep.subr.mxu1 %v1843_v39 }
 0x240   :  { %1914 = vmatpush2.msra.mxu1 %v1842_v42 }
 0x241   :  { %1915 = vmatprep.subr.mxu1 %v1841_v26 }
 0x242   :  { %1916 = vmatpush2.msra.mxu1 %v1840_v28 }
 0x243   :  { %1917 = vmatprep.subr.mxu1 %v1839_v29 }
 0x244   :  { %1918 = vmatpush2.msra.mxu1 %v1838_v34 }
 0x245   :  { %1919 = vmatprep.subr.mxu1 %v1837_v8 }
 0x246   :  { %1920 = vmatpush2.msra.mxu1 %v1836_v38 }
 0x247   :  { %1921 = vmatprep.subr.mxu1 %v1835_v41 }
 0x248   :  { %1922 = vmatpush2.msra.mxu1 %v1834_v46 }
 0x249   :  { %1923 = vmatprep.subr.mxu1 %v1833_v48  ;;  %v1971_v48 = vrot.slane %v1966_v31, %v828_v19 }
 0x24a   :  { %1924 = vmatpush2.msra.mxu1 %v1832_v33 }
 0x24b   :  { %1925 = vmatprep.subr.mxu1 %v1831_v43 }
 0x24c   :  { %1926 = vmatpush2.msra.mxu1 %v1830_v54 }
 0x24d   :  { %1927 = vmatprep.subr.mxu1 %v1829_v35 }
 0x24e   :  { %1928 = vmatpush2.msra.mxu1 %v1828_v63 }
 0x24f   :  { %1929 = vmatprep.subr.mxu1 %v1827_v50  ;;  %v1975_v50 = vrot.slane %v1966_v31, %v832_v25 }
 0x250   :  { %1930 = vmatpush2.msra.mxu1 %v1826_v7 }
 0x251   :  { %1931 = vmatprep.subr.mxu1 %v1825_v55 }
 0x252   :  { %1932 = vmatpush2.msra.mxu1 %v1824_v57 }
 0x253   :  { %1934 = vmatmul.mubr.f32.vlgmr.msra.gmra.mxu1 %v2753_v51 }
 0x254   :  { %2193 = vmatprep.mubr.msk.f32.mxu1 %vm942_vm5, %v2845_v14 }
 0x257   :  { %1940 = vmatmul.mubr.f32.gmra.mxu1 %v2857_v53 }
 0x258   :  { %2194 = vmatprep.mubr.msk.f32.mxu1 %vm942_vm5, %v2869_v47 }
 0x25b   :  { %1946 = vmatmul.mubr.f32.gmra.mxu1 %v2876_v56 }
 0x25c   :  { %2195 = vmatprep.mubr.msk.f32.mxu1 %vm942_vm5, %v1784_v27 }
 0x25f   :  { %1952 = vmatmul.mubr.f32.gmra.mxu1 %v1782_v44 }
 0x28a   :  { %v1348_v21 = vpop.f32.mrf.mxu0 }
 0x28c   :  { %v1350_v0 = vpop.f32.mrf.mxu0 }
 0x28d   :  { %v1244_v15 = vpop.f32.mrf.mxu1 }
 0x28e   :  { %v1349_v34 = vadd.f32 %v1348_v21, %v1244_v15 }
 0x28f   :  { %v1246_v59 = vpop.f32.mrf.mxu1 }
 0x290   :  { %v1351_v54 = vadd.f32 %v1350_v0, %v1246_v59 }
 0x297   :  { %v1250_v51 = vpop.f32.mrf.mxu1  ;;  %v1354_v62 = vpop.f32.mrf.mxu0 }
 0x298   :  { %v1355_v20 = vadd.f32 %v1354_v62, %v1250_v51 }
 0x299   :  { %v1252_v52 = vpop.f32.mrf.mxu1  ;;  %v1356_v47 = vpop.f32.mrf.mxu0 }
 0x29a   :  { %v1357_v22 = vadd.f32 %v1356_v47, %v1252_v52 }
 0x29d   :  { %v1256_v14 = vpop.f32.mrf.mxu1  ;;  %v1360_v56 = vpop.f32.mrf.mxu0 }
 0x29e   :  { %v1361_v60 = vadd.f32 %v1360_v56, %v1256_v14 }
 0x29f   :  { %v1258_v53 = vpop.f32.mrf.mxu1  ;;  %v1362_v24 = vpop.f32.mrf.mxu0 }
 0x2a0   :  { %v1363_v9 = vadd.f32 %v1362_v24, %v1258_v53 }
 0x2a3   :  { %v1262_v4 = vpop.f32.mrf.mxu1  ;;  %v1366_v27 = vpop.f32.mrf.mxu0 }
 0x2a4   :  { %v1367_v42 = vadd.f32 %v1366_v27, %v1262_v4 }
 0x2a5   :  { %v1264_v10 = vpop.f32.mrf.mxu1  ;;  %v1368_v12 = vpop.f32.mrf.mxu0 }
 0x2a6   :  { %v1369_v8 = vadd.f32 %v1368_v12, %v1264_v10 }
 0x2cf   :  { %v1751_v36 = vpop.f32.mrf.mxu0 }
 0x2d1   :  { %v1753_v40 = vpop.f32.mrf.mxu0 }
 0x2d2   :  { %v1545_v11 = vpop.f32.mrf.mxu1 }
 0x2d3   :  { %v1757_v17 = vpop.f32.mrf.mxu0  ;;  %v1568_v35 = vadd.f32 %v1545_v11, %v1349_v34 }
 0x2d4   :  { %v1547_v16 = vpop.f32.mrf.mxu1 }
 0x2d5   :  { %v1759_v18 = vpop.f32.mrf.mxu0  ;;  %v1569_v15 = vadd.f32 %v1547_v16, %v1351_v54  ;;  %v1774_v19 = vadd.f32 %v1751_v36, %v1568_v35 }
 0x2d7   :  { %v1551_v49 = vpop.f32.mrf.mxu1  ;;  %v1775_v25 = vadd.f32 %v1753_v40, %v1569_v15 }
 0x2d8   :  { %v1570_v1 = vadd.f32 %v1551_v49, %v1355_v20  ;;  %v1763_v3 = vpop.f32.mrf.mxu0 }
 0x2d9   :  { %v1553_v44 = vpop.f32.mrf.mxu1 }
 0x2da   :  { %v1571_v23 = vadd.f32 %v1553_v44, %v1357_v22  ;;  %v1765_v5 = vpop.f32.mrf.mxu0  ;;  %v1776_v45 = vadd.f32 %v1757_v17, %v1570_v1 }
 0x2dc   :  { %v1557_v37 = vpop.f32.mrf.mxu1  ;;  %v1777_v29 = vadd.f32 %v1759_v18, %v1571_v23 }
 0x2dd   :  { %v1572_v13 = vadd.f32 %v1557_v37, %v1361_v60  ;;  %v1769_v41 = vpop.f32.mrf.mxu0 }
 0x2de   :  { %v1559_v61 = vpop.f32.mrf.mxu1 }
 0x2df   :  { %v1573_v26 = vadd.f32 %v1559_v61, %v1363_v9  ;;  %v1778_v43 = vadd.f32 %v1763_v3, %v1572_v13  ;;  %v1771_v14 = vpop.f32.mrf.mxu0 }
 0x2e1   :  { %v1563_v32 = vpop.f32.mrf.mxu1  ;;  %v1779_v51 = vadd.f32 %v1765_v5, %v1573_v26 }
 0x2e2   :  { %v1574_v46 = vadd.f32 %v1563_v32, %v1367_v42 }
 0x2e3   :  { %v1565_v2 = vpop.f32.mrf.mxu1 }
 0x2e4   :  { %v1575_v63 = vadd.f32 %v1565_v2, %v1369_v8  ;;  %v1780_v4 = vadd.f32 %v1769_v41, %v1574_v46 }
 0x2e6   :  { %v1781_v10 = vadd.f32 %v1771_v14, %v1575_v63 }
 0x313   :  { %v1935_v58 = vpop.f32.mrf.mxu1 }
 0x314   :  { %v1958_v6 = vadd.f32 %v1935_v58, %v1774_v19 }
 0x315   :  { %v1937_v30 = vpop.f32.mrf.mxu1 }
 0x316   :  { %v1959_v61 = vadd.f32 %v1937_v30, %v1775_v25  ;;  %v1978_v20 = vadd.f32 %v1971_v48, %v1958_v6 }
 0x317   :  { %v1941_v39 = vpop.f32.mrf.mxu1 }
 0x318   :  { %v1960_v28 = vadd.f32 %v1941_v39, %v1776_v45  ;;  %v1979_v40 = vadd.f32 %v1975_v50, %v1959_v61  ;;  %v1994_v58 = vrot.slane %v1978_v20, 2 }
 0x319   :  { %v1943_v38 = vpop.f32.mrf.mxu1 }
 0x31a   :  { %v1961_v33 = vadd.f32 %v1943_v38, %v1777_v29  ;;  %v1980_v55 = vadd.f32 %v1971_v48, %v1960_v28  ;;  %v1997_v30 = vrot.slane %v1979_v40, 2 }
 0x31b   :  { %v1947_v7 = vpop.f32.mrf.mxu1 }
 0x31c   :  { %v1962_v57 = vadd.f32 %v1947_v7, %v1778_v43  ;;  %v1981_v52 = vadd.f32 %v1975_v50, %v1961_v33  ;;  %v1995_v59 = vrot.slane %v1980_v55, 2 }
 0x31d   :  { %v1949_v21 = vpop.f32.mrf.mxu1 }
 0x31e   :  { %v1982_v53 = vadd.f32 %v1971_v48, %v1962_v57  ;;  %v1963_v62 = vadd.f32 %v1949_v21, %v1779_v51  ;;  %v1998_v24 = vrot.slane %v1981_v52, 2  ;;  %v1996_v9 = vsel %vm360_vm4, %v1994_v58, %v1995_v59 }
 0x31f   :  { %v1953_v47 = vpop.f32.mrf.mxu1  ;;  %v2016_v45 = vmax.f32 %v1978_v20, %v1996_v9 }
 0x320   :  { %v2000_v0 = vrot.slane %v1982_v53, 2  ;;  %v1983_v56 = vadd.f32 %v1975_v50, %v1963_v62  ;;  %v1964_v11 = vadd.f32 %v1953_v47, %v1780_v4  ;;  %v1999_v13 = vsel %vm360_vm4, %v1997_v30, %v1998_v24 }
 0x321   :  { %v1955_v27 = vpop.f32.mrf.mxu1  ;;  %v2017_v31 = vmax.f32 %v1979_v40, %v1999_v13 }
 0x322   :  { %v2002_v49 = vrot.slane %v1983_v56, 2  ;;  %v1984_v12 = vadd.f32 %v1971_v48, %v1964_v11  ;;  %v1965_v16 = vadd.f32 %v1955_v27, %v1781_v10  ;;  %v2001_v44 = vsel %vm360_vm4, %v1995_v59, %v2000_v0 }
 0x323   :  { %v2018_v37 = vmax.f32 %v1980_v55, %v2001_v44 }
 0x324   :  { %v2004_v17 = vrot.slane %v1984_v12, 2  ;;  %v1985_v32 = vadd.f32 %v1975_v50, %v1965_v16  ;;  %v2003_v36 = vsel %vm360_vm4, %v1998_v24, %v2002_v49 }
 0x325   :  { %2036 = vrot.lane.b32.xlu0 %v2018_v37, %s2321_s12  ;;  %v2019_v18 = vmax.f32 %v1981_v52, %v2003_v36 }
 0x326   :  { %v2006_v2 = vrot.slane %v1985_v32, 2  ;;  %v2022_v22 = vmax.f32 %v1984_v12, %v2004_v17  ;;  %v2005_v3 = vsel %vm360_vm4, %v2000_v0, %v2004_v17 }
 0x327   :  { %2038 = vrot.lane.b32.xlu1 %v2019_v18, %s2321_s12  ;;  %v2020_v23 = vmax.f32 %v1982_v53, %v2005_v3 }
 0x328   :  { %v2023_v1 = vmax.f32 %v1985_v32, %v2006_v2  ;;  %v2007_v60 = vsel %vm360_vm4, %v2002_v49, %v2006_v2 }
 0x329   :  { %2044 = vrot.lane.b32.xlu0 %v2022_v22, %s2321_s12  ;;  %v2021_v5 = vmax.f32 %v1983_v56, %v2007_v60 }
 0x32b   :  { %2046 = vrot.lane.b32.xlu1 %v2023_v1, %s2321_s12 }
 0x32d   :  { %2040 = vrot.lane.b32.xlu0 %v2020_v23, %s2321_s12 }
 0x32f   :  { %2042 = vrot.lane.b32.xlu1 %v2021_v5, %s2321_s12 }
 0x331   :  { %2032 = vrot.lane.b32.xlu0 %v2016_v45, %s2321_s12 }
 0x333   :  { %2034 = vrot.lane.b32.xlu1 %v2017_v31, %s2321_s12 }
 0x397   :  { %v2037_v39 = vpop.permute.xlu0 %2036 }
 0x399   :  { %v2039_v42 = vpop.permute.xlu1 %2038 }
 0x39a   :  { %v2050_v26 = vsel %vm2048_vm9, %v2037_v39, %v2039_v42  ;;  %v2064_v28 = vmax.f32 %v2019_v18, %v2039_v42 }
 0x39b   :  { %v2063_v29 = vmax.f32 %v2018_v37, %v2050_v26  ;;  %v2045_v34 = vpop.permute.xlu0 %2044 }
 0x39c   :  { %v2072_v8 = vmax.f32 %v2064_v28, 0.0 }
 0x39d   :  { %v2071_v38 = vmax.f32 %v2063_v29, 0.0  ;;  %v2047_v41 = vpop.permute.xlu1 %2046 }
 0x39e   :  { %2089 = vst.msk [vmem:[%s3006_s5 + $0x18] sm:$0x1f] %vm2088_vm10, %v2072_v8  ;;  %v2052_v46 = vsel %vm2048_vm9, %v2045_v34, %v2047_v41  ;;  %v2068_v48 = vmax.f32 %v2023_v1, %v2047_v41  ;;  %v2099_v51 = vrot.slane %v2072_v8, 7 }
 0x39f   :  { %2087 = vst [vmem:[%s3006_s5 + $0x10] sm:$0x1f] %v2071_v38  ;;  %v2067_v33 = vmax.f32 %v2022_v22, %v2052_v46  ;;  %v2041_v43 = vpop.permute.xlu0 %2040  ;;  %v2096_v19 = vrot.slane %v2071_v38, 7 }
 0x3a0   :  { %v2076_v35 = vmax.f32 %v2068_v48, 0.0 }
 0x3a1   :  { %v2043_v54 = vpop.permute.xlu1 %2042  ;;  %v2075_v7 = vmax.f32 %v2067_v33, 0.0 }
 0x3a2   :  { %v2051_v63 = vsel %vm2048_vm9, %v2041_v43, %v2043_v54  ;;  %v2066_v50 = vmax.f32 %v2021_v5, %v2043_v54  ;;  %v2104_v14 = vrot.slane %v2076_v35, 7 }
 0x3a3   :  { %v2065_v55 = vmax.f32 %v2020_v23, %v2051_v63  ;;  %v2033_v52 = vpop.permute.xlu0 %2032  ;;  %v2102_v47 = vrot.slane %v2075_v7, 7 }
 0x3a4   :  { %v2074_v57 = vmax.f32 %v2066_v50, 0.0 }
 0x3a5   :  { %v2073_v15 = vmax.f32 %v2065_v55, 0.0  ;;  %v2035_v21 = vpop.permute.xlu1 %2034 }
 0x3a6   :  { %v2100_v53 = vrot.slane %v2074_v57, 7  ;;  %v2049_v62 = vsel %vm2048_vm9, %v2033_v52, %v2035_v21  ;;  %v2062_v4 = vmax.f32 %v2017_v31, %v2035_v21 }
 0x3a7   :  { %v2097_v10 = vrot.slane %v2073_v15, 7  ;;  %v2061_v59 = vmax.f32 %v2016_v45, %v2049_v62 }
 0x3a8   :  { %v2101_v0 = vsel %vm1590_vm8, %v2099_v51, %v2100_v53  ;;  %v2105_v56 = vsel %vm1590_vm8, %v2100_v53, %v2104_v14  ;;  %v2070_v11 = vmax.f32 %v2062_v4, 0.0 }
 0x3a9   :  { %v2098_v6 = vsel %vm1590_vm8, %v2096_v19, %v2097_v10  ;;  %v2103_v25 = vsel %vm1590_vm8, %v2097_v10, %v2102_v47  ;;  %2197 = vst.msk [vmem:[%s3006_s5 + $0x28] sm:$0xff] %vm2048_vm9, %v2101_v0  ;;  %v2069_v24 = vmax.f32 %v2061_v59, 0.0 }
 0x3aa   :  { %2199 = vst.msk [vmem:[%s3006_s5 + $0x38] sm:$0x1f] %vm2088_vm10, %v2105_v56  ;;  %2196 = vst [vmem:[%s3006_s5 + $0x20] sm:$0xff] %v2098_v6 }
 0x3ab   :  { %2198 = vst [vmem:[%s3006_s5 + $0x30] sm:$0x1f] %v2103_v25  ;;  %2086 = vst.msk [vmem:[%s3006_s5 + $0x8] sm:$0xff] %vm2048_vm9, %v2070_v11 }
 0x3ac   :  { %2085 = vst [vmem:[%s3006_s5] sm:$0xff] %v2069_v24 }
 0x3ad   :  { %2119 = vsyncpa [#allocation3], 1 }
 0x3ae   :  { %2120 = vsyncpa [#allocation5], 1 }
 0x3af   :  { %2121 = vsyncpa [#allocation8], 1 }

</bundles_post_ra>
